<compile_context>
chip_gen: v6e
topology: v6e:2x2x1
jax: 0.10.0
libtpu: 0.0.40
codegen_flags: <defaults>
</compile_context>

<pallas_src>
import functools
import math

import jax
import jax.numpy as jnp
from jax.experimental import pallas as pl
from jax.experimental.pallas import tpu as pltpu

# ---- small ViT config (ViT-B/16 structure, scaled down) ----
IMG = 32            # image size
PATCH = 16          # patch size (as in vit_b_16)
CHANNELS = 3        # RGB
HIDDEN = 32         # hidden dim
NUM_HEADS = 4
HEAD_DIM = HIDDEN // NUM_HEADS
MLP_DIM = 64
NUM_LAYERS = 2
NUM_FTRS = 16       # backbone.heads.head.out_features (1000 in the real model)
NUM_CLASSES = 3     # self.fc output
SEQ = (IMG // PATCH) ** 2 + 1   # class token + patches
LN_EPS = 1e-6       # torchvision ViT uses LayerNorm(eps=1e-6)


# --------------------------- in-kernel helpers (values only) ---------------------------

def _layernorm(x, g, b):
    mu = jnp.mean(x, axis=-1, keepdims=True)
    var = jnp.mean(jnp.square(x - mu), axis=-1, keepdims=True)
    return (x - mu) * jax.lax.rsqrt(var + LN_EPS) * g + b


def _erf(x):
    # TODO(synk): lax.erf has no guaranteed Mosaic lowering; use Abramowitz-Stegun 7.1.26
    # (|err| < 1.5e-7, effectively exact in f32) built from mul/add/recip/exp/select only.
    sgn = jnp.where(x >= 0.0, 1.0, -1.0)
    ax = x * sgn
    # reciprocal on the EUP slot instead of a multi-op VPU f32 divide
    t = pl.reciprocal(1.0 + 0.3275911 * ax, approx=False)
    poly = ((((1.061405429 * t - 1.453152027) * t + 1.421413741) * t
             - 0.284496736) * t + 0.254829592) * t
    return sgn * (1.0 - poly * jnp.exp(-ax * ax))


def _gelu(x):
    # torch nn.GELU() default (exact erf form)
    return 0.5 * x * (1.0 + _erf(x * (1.0 / math.sqrt(2.0))))


# --------------------------- fused ViT forward kernel (one image / grid step) -----------

def _vit_fused_kernel(patches_ref, seq_base_ref,
                      patch_w_ref,
                      ln1_g_ref, ln1_b_ref,
                      qkv_w_ref, qkv_b_ref,          # (L, 3, H, HIDDEN, HEAD_DIM) / (L,3,H,1,HEAD_DIM)
                      out_w_ref, out_b_ref,          # (L, H, HEAD_DIM, HIDDEN)    / (L,1,HIDDEN)
                      ln2_g_ref, ln2_b_ref,
                      mlp_w1_ref, mlp_b1_ref, mlp_w2_ref, mlp_b2_ref,
                      lnf_g_ref, lnf_b_ref,
                      head_w_ref, head_b_ref, fc_w_ref, fc_b_ref,
                      o_ref, *, num_layers):
    f32 = jnp.float32

    # Patch embedding (Conv2d(C, D, P, stride=P) expressed as a matmul) fused with the
    # class-token / positional-embedding add: row 0 of `patches` is zero and its content
    # (cls + pos[0]) comes from seq_base; patch rows get pos + conv bias via seq_base.
    patches = patches_ref[0]                                    # (SEQ, C*P*P)
    x = jnp.dot(patches, patch_w_ref[...], preferred_element_type=f32)
    x = x + seq_base_ref[...]                                   # (SEQ, HIDDEN)

    scale = 1.0 / math.sqrt(HEAD_DIM)

    for l in range(num_layers):                                 # statically unrolled
        # ---- pre-LN multi-head self-attention (no mask needed: one image per step) ----
        h = _layernorm(x, ln1_g_ref[l], ln1_b_ref[l])
        proj = out_b_ref[l]                                     # (1, HIDDEN), broadcasts
        for hd in range(NUM_HEADS):
            # per-head projections from pre-split weights (static leading-axis indexing;
            # no non-128-aligned lane slices of the activation)
            q = jnp.dot(h, qkv_w_ref[l, 0, hd], preferred_element_type=f32) + qkv_b_ref[l, 0, hd]
            k = jnp.dot(h, qkv_w_ref[l, 1, hd], preferred_element_type=f32) + qkv_b_ref[l, 1, hd]
            v = jnp.dot(h, qkv_w_ref[l, 2, hd], preferred_element_type=f32) + qkv_b_ref[l, 2, hd]
            # q @ k^T without an explicit transpose (NT dot_general)
            s = jax.lax.dot_general(q, k, (((1,), (1,)), ((), ())),
                                    preferred_element_type=f32) * scale
            s = s - jnp.max(s, axis=-1, keepdims=True)
            p = jnp.exp(s)
            p = p * pl.reciprocal(jnp.sum(p, axis=-1, keepdims=True), approx=True)
            attn = jnp.dot(p, v, preferred_element_type=f32)
            # out-projection of concatenated heads == sum over heads of per-head projections
            proj = proj + jnp.dot(attn, out_w_ref[l, hd], preferred_element_type=f32)
        x = x + proj

        # ---- pre-LN MLP (Linear -> GELU -> Linear), GELU fused in-kernel ----
        h = _layernorm(x, ln2_g_ref[l], ln2_b_ref[l])
        h = jnp.dot(h, mlp_w1_ref[l], preferred_element_type=f32) + mlp_b1_ref[l]
        h = _gelu(h)
        h = jnp.dot(h, mlp_w2_ref[l], preferred_element_type=f32) + mlp_b2_ref[l]
        x = x + h

    # class-token row FIRST, then final LN / heads.head / fc on (1, HIDDEN) only
    cls_tok = x[0:1, :]
    cls_tok = _layernorm(cls_tok, lnf_g_ref[...], lnf_b_ref[...])
    feats = jnp.dot(cls_tok, head_w_ref[...], preferred_element_type=f32) + head_b_ref[...]
    logits = jnp.dot(feats, fc_w_ref[...], preferred_element_type=f32) + fc_b_ref[...]
    o_ref[0] = logits.astype(o_ref.dtype)


# --------------------------- wrapper ---------------------------

def vit_classifier_forward(params, x):
    # x: (B, C, H, W) -- NCHW float32, same as PyTorch
    B, C, H, W = x.shape
    nh, nw = H // PATCH, W // PATCH
    n_patches = nh * nw
    assert n_patches + 1 == SEQ
    cpp = C * PATCH * PATCH

    # patchify == Conv2d(C, HIDDEN, kernel=P, stride=P) expressed as a matmul
    # (layout plumbing only; the matmul itself runs inside the fused kernel).
    patches = x.reshape(B, C, nh, PATCH, nw, PATCH).transpose(0, 2, 4, 1, 3, 5)
    patches = patches.reshape(B, n_patches, cpp)
    # one zero row per image at position 0 stands in for the class token
    patches = jnp.concatenate(
        [jnp.zeros((B, 1, cpp), jnp.float32), patches], axis=1)      # (B, SEQ, cpp)

    # per-row additive base: cls row -> cls + pos[0]; patch rows -> pos[i] + conv bias
    seq_base = jnp.concatenate(
        [params["cls"] + params["pos"][0:1],
         params["pos"][1:] + params["patch_b"]], axis=0)             # (SEQ, HIDDEN)

    weights = (
        params["patch_w"],
        params["ln1_g"], params["ln1_b"], params["qkv_w"], params["qkv_b"],
        params["out_w"], params["out_b"],
        params["ln2_g"], params["ln2_b"],
        params["mlp_w1"], params["mlp_b1"], params["mlp_w2"], params["mlp_b2"],
        params["ln_g"], params["ln_b"],
        params["head_w"], params["head_b"], params["fc_w"], params["fc_b"],
    )

    def resident_spec(a):
        # full-array block, constant block index -> stays VMEM-resident across grid steps
        nd = a.ndim
        return pl.BlockSpec(a.shape, lambda b, nd=nd: (0,) * nd)

    out = pl.pallas_call(
        functools.partial(_vit_fused_kernel, num_layers=NUM_LAYERS),
        out_shape=jax.ShapeDtypeStruct((B, 1, NUM_CLASSES), jnp.float32),
        grid=(B,),
        in_specs=[pl.BlockSpec((1, SEQ, cpp), lambda b: (b, 0, 0)),   # per-image patches
                  resident_spec(seq_base)] + [resident_spec(w) for w in weights],
        out_specs=pl.BlockSpec((1, 1, NUM_CLASSES), lambda b: (b, 0, 0)),
        compiler_params=pltpu.CompilerParams(dimension_semantics=("parallel",)),
    )(patches, seq_base, *weights)
    return out.reshape(B, NUM_CLASSES)


# --------------------------- deterministic init ---------------------------
# TODO(synk): weights='IMAGENET1K_V1' checkpoint cannot be loaded; synthetic random weights.

def init_params(key):
    ks = jax.random.split(key, 9)
    L = NUM_LAYERS

    def nrm(k, shape, scale=0.02):
        return (scale * jax.random.normal(k, shape)).astype(jnp.float32)

    return {
        "patch_w": nrm(ks[0], (CHANNELS * PATCH * PATCH, HIDDEN)),
        "patch_b": jnp.zeros((1, HIDDEN), jnp.float32),
        "cls": nrm(ks[1], (1, HIDDEN)),
        "pos": nrm(ks[2], (SEQ, HIDDEN)),
        "ln_g": jnp.ones((1, HIDDEN), jnp.float32),
        "ln_b": jnp.zeros((1, HIDDEN), jnp.float32),
        "head_w": nrm(ks[3], (HIDDEN, NUM_FTRS)),
        "head_b": jnp.zeros((1, NUM_FTRS), jnp.float32),
        "fc_w": nrm(ks[4], (NUM_FTRS, NUM_CLASSES)),
        "fc_b": jnp.zeros((1, NUM_CLASSES), jnp.float32),
        # per-layer parameters stacked along a leading layer axis; QKV / out-projection
        # weights are pre-split per head: (L, 3, NUM_HEADS, HIDDEN, HEAD_DIM) packed
        # [Wq|Wk|Wv] like in_proj, and (L, NUM_HEADS, HEAD_DIM, HIDDEN) for out_proj.
        "ln1_g": jnp.ones((L, 1, HIDDEN), jnp.float32),
        "ln1_b": jnp.zeros((L, 1, HIDDEN), jnp.float32),
        "qkv_w": nrm(ks[5], (L, 3, NUM_HEADS, HIDDEN, HEAD_DIM)),
        "qkv_b": jnp.zeros((L, 3, NUM_HEADS, 1, HEAD_DIM), jnp.float32),
        "out_w": nrm(ks[6], (L, NUM_HEADS, HEAD_DIM, HIDDEN)),
        "out_b": jnp.zeros((L, 1, HIDDEN), jnp.float32),
        "ln2_g": jnp.ones((L, 1, HIDDEN), jnp.float32),
        "ln2_b": jnp.zeros((L, 1, HIDDEN), jnp.float32),
        "mlp_w1": nrm(ks[7], (L, HIDDEN, MLP_DIM)),
        "mlp_b1": jnp.zeros((L, 1, MLP_DIM), jnp.float32),
        "mlp_w2": nrm(ks[8], (L, MLP_DIM, HIDDEN)),
        "mlp_b2": jnp.zeros((L, 1, HIDDEN), jnp.float32),
    }


if __name__ == "__main__":
    key = jax.random.PRNGKey(0)
    pkey, xkey = jax.random.split(key)
    params = init_params(pkey)
    x = jax.random.normal(xkey, (2, CHANNELS, IMG, IMG), dtype=jnp.float32)

    fwd = jax.jit(vit_classifier_forward)
    out = fwd(params, x)
    jax.block_until_ready(out)
    assert out.shape == (2, NUM_CLASSES), out.shape
    assert bool(jnp.all(jnp.isfinite(out)))
    print("KERNEL_OK")
</pallas_src>

<mosaic_0001>
module attributes {stable_mosaic.version = 11 : i64} {
  func.func @_vit_fused_kernel(%arg0: i32, %arg1: memref<1x5x768xf32, #tpu.memory_space<vmem>>, %arg2: memref<5x32xf32, #tpu.memory_space<vmem>>, %arg3: memref<768x32xf32, #tpu.memory_space<vmem>>, %arg4: memref<2x1x32xf32, #tpu.memory_space<vmem>>, %arg5: memref<2x1x32xf32, #tpu.memory_space<vmem>>, %arg6: memref<2x3x4x32x8xf32, #tpu.memory_space<vmem>>, %arg7: memref<2x3x4x1x8xf32, #tpu.memory_space<vmem>>, %arg8: memref<2x4x8x32xf32, #tpu.memory_space<vmem>>, %arg9: memref<2x1x32xf32, #tpu.memory_space<vmem>>, %arg10: memref<2x1x32xf32, #tpu.memory_space<vmem>>, %arg11: memref<2x1x32xf32, #tpu.memory_space<vmem>>, %arg12: memref<2x32x64xf32, #tpu.memory_space<vmem>>, %arg13: memref<2x1x64xf32, #tpu.memory_space<vmem>>, %arg14: memref<2x64x32xf32, #tpu.memory_space<vmem>>, %arg15: memref<2x1x32xf32, #tpu.memory_space<vmem>>, %arg16: memref<1x32xf32, #tpu.memory_space<vmem>>, %arg17: memref<1x32xf32, #tpu.memory_space<vmem>>, %arg18: memref<32x16xf32, #tpu.memory_space<vmem>>, %arg19: memref<1x16xf32, #tpu.memory_space<vmem>>, %arg20: memref<16x3xf32, #tpu.memory_space<vmem>>, %arg21: memref<1x3xf32, #tpu.memory_space<vmem>>, %arg22: memref<1x1x3xf32, #tpu.memory_space<vmem>>) attributes {dimension_semantics = [#tpu.dimension_semantics<parallel>], iteration_bounds = array<i64: 2>, scalar_prefetch = 0 : i64, scratch_operands = 0 : i64, tpu.core_type = #tpu.core_type<tc>, window_params = [{transform_indices = @transform_0, window_bounds = array<i64: 1, 5, 768>}, {pipeline_mode = #tpu.pipeline_mode<synchronous>, transform_indices = @transform_1, window_bounds = array<i64: 5, 32>}, {pipeline_mode = #tpu.pipeline_mode<synchronous>, transform_indices = @transform_2, window_bounds = array<i64: 768, 32>}, {pipeline_mode = #tpu.pipeline_mode<synchronous>, transform_indices = @transform_3, window_bounds = array<i64: 2, 1, 32>}, {pipeline_mode = #tpu.pipeline_mode<synchronous>, transform_indices = @transform_4, window_bounds = array<i64: 2, 1, 32>}, {pipeline_mode = #tpu.pipeline_mode<synchronous>, transform_indices = @transform_5, window_bounds = array<i64: 2, 3, 4, 32, 8>}, {pipeline_mode = #tpu.pipeline_mode<synchronous>, transform_indices = @transform_6, window_bounds = array<i64: 2, 3, 4, 1, 8>}, {pipeline_mode = #tpu.pipeline_mode<synchronous>, transform_indices = @transform_7, window_bounds = array<i64: 2, 4, 8, 32>}, {pipeline_mode = #tpu.pipeline_mode<synchronous>, transform_indices = @transform_8, window_bounds = array<i64: 2, 1, 32>}, {pipeline_mode = #tpu.pipeline_mode<synchronous>, transform_indices = @transform_9, window_bounds = array<i64: 2, 1, 32>}, {pipeline_mode = #tpu.pipeline_mode<synchronous>, transform_indices = @transform_10, window_bounds = array<i64: 2, 1, 32>}, {pipeline_mode = #tpu.pipeline_mode<synchronous>, transform_indices = @transform_11, window_bounds = array<i64: 2, 32, 64>}, {pipeline_mode = #tpu.pipeline_mode<synchronous>, transform_indices = @transform_12, window_bounds = array<i64: 2, 1, 64>}, {pipeline_mode = #tpu.pipeline_mode<synchronous>, transform_indices = @transform_13, window_bounds = array<i64: 2, 64, 32>}, {pipeline_mode = #tpu.pipeline_mode<synchronous>, transform_indices = @transform_14, window_bounds = array<i64: 2, 1, 32>}, {pipeline_mode = #tpu.pipeline_mode<synchronous>, transform_indices = @transform_15, window_bounds = array<i64: 1, 32>}, {pipeline_mode = #tpu.pipeline_mode<synchronous>, transform_indices = @transform_16, window_bounds = array<i64: 1, 32>}, {pipeline_mode = #tpu.pipeline_mode<synchronous>, transform_indices = @transform_17, window_bounds = array<i64: 32, 16>}, {pipeline_mode = #tpu.pipeline_mode<synchronous>, transform_indices = @transform_18, window_bounds = array<i64: 1, 16>}, {pipeline_mode = #tpu.pipeline_mode<synchronous>, transform_indices = @transform_19, window_bounds = array<i64: 16, 3>}, {pipeline_mode = #tpu.pipeline_mode<synchronous>, transform_indices = @transform_20, window_bounds = array<i64: 1, 3>}, {transform_indices = @transform_21, window_bounds = array<i64: 1, 1, 3>}]} {
    %c0 = arith.constant 0 : index
    %c0_0 = arith.constant 0 : index
    %c0_1 = arith.constant 0 : index
    %0 = vector.load %arg1[%c0, %c0_0, %c0_1] : memref<1x5x768xf32, #tpu.memory_space<vmem>>, vector<1x5x768xf32>
    %1 = vector.shape_cast %0 : vector<1x5x768xf32> to vector<5x768xf32>
    %c0_2 = arith.constant 0 : index
    %c0_3 = arith.constant 0 : index
    %2 = vector.load %arg3[%c0_2, %c0_3] : memref<768x32xf32, #tpu.memory_space<vmem>>, vector<768x32xf32>
    %cst = arith.constant dense<0.000000e+00> : vector<5x32xf32>
    %3 = tpu.matmul %1, %2, %cst {dimension_numbers = #tpu.dot_dimension_numbers<[1], [0], [0], [1], [0, 0, 1, 1], [], []>} : vector<5x768xf32>, vector<768x32xf32>, vector<5x32xf32> -> vector<5x32xf32>
    %c0_4 = arith.constant 0 : index
    %c0_5 = arith.constant 0 : index
    %4 = vector.load %arg2[%c0_4, %c0_5] : memref<5x32xf32, #tpu.memory_space<vmem>>, vector<5x32xf32>
    %5 = arith.addf %3, %4 : vector<5x32xf32>
    %c0_6 = arith.constant 0 : index
    %c0_7 = arith.constant 0 : index
    %c0_8 = arith.constant 0 : index
    %6 = vector.load %arg4[%c0_6, %c0_7, %c0_8] : memref<2x1x32xf32, #tpu.memory_space<vmem>>, vector<1x1x32xf32>
    %7 = vector.shape_cast %6 : vector<1x1x32xf32> to vector<1x32xf32>
    %c0_9 = arith.constant 0 : index
    %c0_10 = arith.constant 0 : index
    %c0_11 = arith.constant 0 : index
    %8 = vector.load %arg5[%c0_9, %c0_10, %c0_11] : memref<2x1x32xf32, #tpu.memory_space<vmem>>, vector<1x1x32xf32>
    %9 = vector.shape_cast %8 : vector<1x1x32xf32> to vector<1x32xf32>
    %cst_12 = arith.constant dense<0.000000e+00> : vector<5xf32>
    %10 = vector.multi_reduction <add>, %5, %cst_12 [1] : vector<5x32xf32> to vector<5xf32>
    %11 = vector.shape_cast %10 : vector<5xf32> to vector<5x1xf32>
    %cst_13 = arith.constant 3.200000e+01 : f32
    %12 = vector.broadcast %cst_13 : f32 to vector<5x1xf32>
    %13 = arith.divf %11, %12 : vector<5x1xf32>
    %14 = vector.broadcast %13 : vector<5x1xf32> to vector<5x32xf32>
    %15 = arith.subf %5, %14 : vector<5x32xf32>
    %16 = arith.mulf %15, %15 : vector<5x32xf32>
    %cst_14 = arith.constant dense<0.000000e+00> : vector<5xf32>
    %17 = vector.multi_reduction <add>, %16, %cst_14 [1] : vector<5x32xf32> to vector<5xf32>
    %18 = vector.shape_cast %17 : vector<5xf32> to vector<5x1xf32>
    %cst_15 = arith.constant 3.200000e+01 : f32
    %19 = vector.broadcast %cst_15 : f32 to vector<5x1xf32>
    %20 = arith.divf %18, %19 : vector<5x1xf32>
    %21 = vector.broadcast %13 : vector<5x1xf32> to vector<5x32xf32>
    %22 = arith.subf %5, %21 : vector<5x32xf32>
    %cst_16 = arith.constant 9.99999997E-7 : f32
    %23 = vector.broadcast %cst_16 : f32 to vector<5x1xf32>
    %24 = arith.addf %20, %23 : vector<5x1xf32>
    %25 = math.rsqrt %24 : vector<5x1xf32>
    %26 = vector.broadcast %25 : vector<5x1xf32> to vector<5x32xf32>
    %27 = arith.mulf %22, %26 : vector<5x32xf32>
    %28 = vector.broadcast %7 : vector<1x32xf32> to vector<5x32xf32>
    %29 = arith.mulf %27, %28 : vector<5x32xf32>
    %30 = vector.broadcast %9 : vector<1x32xf32> to vector<5x32xf32>
    %31 = arith.addf %29, %30 : vector<5x32xf32>
    %c0_17 = arith.constant 0 : index
    %c0_18 = arith.constant 0 : index
    %c0_19 = arith.constant 0 : index
    %32 = vector.load %arg9[%c0_17, %c0_18, %c0_19] : memref<2x1x32xf32, #tpu.memory_space<vmem>>, vector<1x1x32xf32>
    %33 = vector.shape_cast %32 : vector<1x1x32xf32> to vector<1x32xf32>
    %c0_20 = arith.constant 0 : index
    %c0_21 = arith.constant 0 : index
    %c0_22 = arith.constant 0 : index
    %c0_23 = arith.constant 0 : index
    %c0_24 = arith.constant 0 : index
    %34 = vector.load %arg6[%c0_20, %c0_21, %c0_22, %c0_23, %c0_24] : memref<2x3x4x32x8xf32, #tpu.memory_space<vmem>>, vector<1x1x1x32x8xf32>
    %35 = vector.shape_cast %34 : vector<1x1x1x32x8xf32> to vector<32x8xf32>
    %cst_25 = arith.constant dense<0.000000e+00> : vector<5x8xf32>
    %36 = tpu.matmul %31, %35, %cst_25 {dimension_numbers = #tpu.dot_dimension_numbers<[1], [0], [0], [1], [0, 0, 1, 1], [], []>} : vector<5x32xf32>, vector<32x8xf32>, vector<5x8xf32> -> vector<5x8xf32>
    %c0_26 = arith.constant 0 : index
    %c0_27 = arith.constant 0 : index
    %c0_28 = arith.constant 0 : index
    %c0_29 = arith.constant 0 : index
    %c0_30 = arith.constant 0 : index
    %37 = vector.load %arg7[%c0_26, %c0_27, %c0_28, %c0_29, %c0_30] : memref<2x3x4x1x8xf32, #tpu.memory_space<vmem>>, vector<1x1x1x1x8xf32>
    %38 = vector.shape_cast %37 : vector<1x1x1x1x8xf32> to vector<1x8xf32>
    %39 = vector.broadcast %38 : vector<1x8xf32> to vector<5x8xf32>
    %40 = arith.addf %36, %39 : vector<5x8xf32>
    %c0_31 = arith.constant 0 : index
    %c1 = arith.constant 1 : index
    %c0_32 = arith.constant 0 : index
    %c0_33 = arith.constant 0 : index
    %c0_34 = arith.constant 0 : index
    %41 = vector.load %arg6[%c0_31, %c1, %c0_32, %c0_33, %c0_34] : memref<2x3x4x32x8xf32, #tpu.memory_space<vmem>>, vector<1x1x1x32x8xf32>
    %42 = vector.shape_cast %41 : vector<1x1x1x32x8xf32> to vector<32x8xf32>
    %cst_35 = arith.constant dense<0.000000e+00> : vector<5x8xf32>
    %43 = tpu.matmul %31, %42, %cst_35 {dimension_numbers = #tpu.dot_dimension_numbers<[1], [0], [0], [1], [0, 0, 1, 1], [], []>} : vector<5x32xf32>, vector<32x8xf32>, vector<5x8xf32> -> vector<5x8xf32>
    %c0_36 = arith.constant 0 : index
    %c1_37 = arith.constant 1 : index
    %c0_38 = arith.constant 0 : index
    %c0_39 = arith.constant 0 : index
    %c0_40 = arith.constant 0 : index
    %44 = vector.load %arg7[%c0_36, %c1_37, %c0_38, %c0_39, %c0_40] : memref<2x3x4x1x8xf32, #tpu.memory_space<vmem>>, vector<1x1x1x1x8xf32>
    %45 = vector.shape_cast %44 : vector<1x1x1x1x8xf32> to vector<1x8xf32>
    %46 = vector.broadcast %45 : vector<1x8xf32> to vector<5x8xf32>
    %47 = arith.addf %43, %46 : vector<5x8xf32>
    %c0_41 = arith.constant 0 : index
    %c2 = arith.constant 2 : index
    %c0_42 = arith.constant 0 : index
    %c0_43 = arith.constant 0 : index
    %c0_44 = arith.constant 0 : index
    %48 = vector.load %arg6[%c0_41, %c2, %c0_42, %c0_43, %c0_44] : memref<2x3x4x32x8xf32, #tpu.memory_space<vmem>>, vector<1x1x1x32x8xf32>
    %49 = vector.shape_cast %48 : vector<1x1x1x32x8xf32> to vector<32x8xf32>
    %cst_45 = arith.constant dense<0.000000e+00> : vector<5x8xf32>
    %50 = tpu.matmul %31, %49, %cst_45 {dimension_numbers = #tpu.dot_dimension_numbers<[1], [0], [0], [1], [0, 0, 1, 1], [], []>} : vector<5x32xf32>, vector<32x8xf32>, vector<5x8xf32> -> vector<5x8xf32>
    %c0_46 = arith.constant 0 : index
    %c2_47 = arith.constant 2 : index
    %c0_48 = arith.constant 0 : index
    %c0_49 = arith.constant 0 : index
    %c0_50 = arith.constant 0 : index
    %51 = vector.load %arg7[%c0_46, %c2_47, %c0_48, %c0_49, %c0_50] : memref<2x3x4x1x8xf32, #tpu.memory_space<vmem>>, vector<1x1x1x1x8xf32>
    %52 = vector.shape_cast %51 : vector<1x1x1x1x8xf32> to vector<1x8xf32>
    %53 = vector.broadcast %52 : vector<1x8xf32> to vector<5x8xf32>
    %54 = arith.addf %50, %53 : vector<5x8xf32>
    %cst_51 = arith.constant dense<0.000000e+00> : vector<5x5xf32>
    %55 = tpu.matmul %40, %47, %cst_51 {dimension_numbers = #tpu.dot_dimension_numbers<[1], [1], [0], [0], [0, 0, 1, 0], [], []>} : vector<5x8xf32>, vector<5x8xf32>, vector<5x5xf32> -> vector<5x5xf32>
    %cst_52 = arith.constant 0.353553385 : f32
    %56 = vector.broadcast %cst_52 : f32 to vector<5x5xf32>
    %57 = arith.mulf %55, %56 : vector<5x5xf32>
    %cst_53 = arith.constant dense<0xFF800000> : vector<5xf32>
    %58 = vector.multi_reduction <maximumf>, %57, %cst_53 [1] : vector<5x5xf32> to vector<5xf32>
    %59 = vector.shape_cast %58 : vector<5xf32> to vector<5x1xf32>
    %60 = vector.broadcast %59 : vector<5x1xf32> to vector<5x5xf32>
    %61 = arith.subf %57, %60 : vector<5x5xf32>
    %62 = math.exp %61 : vector<5x5xf32>
    %cst_54 = arith.constant dense<0.000000e+00> : vector<5xf32>
    %63 = vector.multi_reduction <add>, %62, %cst_54 [1] : vector<5x5xf32> to vector<5xf32>
    %64 = vector.shape_cast %63 : vector<5xf32> to vector<5x1xf32>
    %65 = tpu.reciprocal %64 {approx = true} : vector<5x1xf32> -> vector<5x1xf32>
    %66 = vector.broadcast %65 : vector<5x1xf32> to vector<5x5xf32>
    %67 = arith.mulf %62, %66 : vector<5x5xf32>
    %cst_55 = arith.constant dense<0.000000e+00> : vector<5x8xf32>
    %68 = tpu.matmul %67, %54, %cst_55 {dimension_numbers = #tpu.dot_dimension_numbers<[1], [0], [0], [1], [0, 0, 1, 1], [], []>} : vector<5x5xf32>, vector<5x8xf32>, vector<5x8xf32> -> vector<5x8xf32>
    %c0_56 = arith.constant 0 : index
    %c0_57 = arith.constant 0 : index
    %c0_58 = arith.constant 0 : index
    %c0_59 = arith.constant 0 : index
    %69 = vector.load %arg8[%c0_56, %c0_57, %c0_58, %c0_59] : memref<2x4x8x32xf32, #tpu.memory_space<vmem>>, vector<1x1x8x32xf32>
    %70 = vector.shape_cast %69 : vector<1x1x8x32xf32> to vector<8x32xf32>
    %cst_60 = arith.constant dense<0.000000e+00> : vector<5x32xf32>
    %71 = tpu.matmul %68, %70, %cst_60 {dimension_numbers = #tpu.dot_dimension_numbers<[1], [0], [0], [1], [0, 0, 1, 1], [], []>} : vector<5x8xf32>, vector<8x32xf32>, vector<5x32xf32> -> vector<5x32xf32>
    %72 = vector.broadcast %33 : vector<1x32xf32> to vector<5x32xf32>
    %73 = arith.addf %72, %71 : vector<5x32xf32>
    %c0_61 = arith.constant 0 : index
    %c0_62 = arith.constant 0 : index
    %c1_63 = arith.constant 1 : index
    %c0_64 = arith.constant 0 : index
    %c0_65 = arith.constant 0 : index
    %74 = vector.load %arg6[%c0_61, %c0_62, %c1_63, %c0_64, %c0_65] : memref<2x3x4x32x8xf32, #tpu.memory_space<vmem>>, vector<1x1x1x32x8xf32>
    %75 = vector.shape_cast %74 : vector<1x1x1x32x8xf32> to vector<32x8xf32>
    %cst_66 = arith.constant dense<0.000000e+00> : vector<5x8xf32>
    %76 = tpu.matmul %31, %75, %cst_66 {dimension_numbers = #tpu.dot_dimension_numbers<[1], [0], [0], [1], [0, 0, 1, 1], [], []>} : vector<5x32xf32>, vector<32x8xf32>, vector<5x8xf32> -> vector<5x8xf32>
    %c0_67 = arith.constant 0 : index
    %c0_68 = arith.constant 0 : index
    %c1_69 = arith.constant 1 : index
    %c0_70 = arith.constant 0 : index
    %c0_71 = arith.constant 0 : index
    %77 = vector.load %arg7[%c0_67, %c0_68, %c1_69, %c0_70, %c0_71] : memref<2x3x4x1x8xf32, #tpu.memory_space<vmem>>, vector<1x1x1x1x8xf32>
    %78 = vector.shape_cast %77 : vector<1x1x1x1x8xf32> to vector<1x8xf32>
    %79 = vector.broadcast %78 : vector<1x8xf32> to vector<5x8xf32>
    %80 = arith.addf %76, %79 : vector<5x8xf32>
    %c0_72 = arith.constant 0 : index
    %c1_73 = arith.constant 1 : index
    %c1_74 = arith.constant 1 : index
    %c0_75 = arith.constant 0 : index
    %c0_76 = arith.constant 0 : index
    %81 = vector.load %arg6[%c0_72, %c1_73, %c1_74, %c0_75, %c0_76] : memref<2x3x4x32x8xf32, #tpu.memory_space<vmem>>, vector<1x1x1x32x8xf32>
    %82 = vector.shape_cast %81 : vector<1x1x1x32x8xf32> to vector<32x8xf32>
    %cst_77 = arith.constant dense<0.000000e+00> : vector<5x8xf32>
    %83 = tpu.matmul %31, %82, %cst_77 {dimension_numbers = #tpu.dot_dimension_numbers<[1], [0], [0], [1], [0, 0, 1, 1], [], []>} : vector<5x32xf32>, vector<32x8xf32>, vector<5x8xf32> -> vector<5x8xf32>
    %c0_78 = arith.constant 0 : index
    %c1_79 = arith.constant 1 : index
    %c1_80 = arith.constant 1 : index
    %c0_81 = arith.constant 0 : index
    %c0_82 = arith.constant 0 : index
    %84 = vector.load %arg7[%c0_78, %c1_79, %c1_80, %c0_81, %c0_82] : memref<2x3x4x1x8xf32, #tpu.memory_space<vmem>>, vector<1x1x1x1x8xf32>
    %85 = vector.shape_cast %84 : vector<1x1x1x1x8xf32> to vector<1x8xf32>
    %86 = vector.broadcast %85 : vector<1x8xf32> to vector<5x8xf32>
    %87 = arith.addf %83, %86 : vector<5x8xf32>
    %c0_83 = arith.constant 0 : index
    %c2_84 = arith.constant 2 : index
    %c1_85 = arith.constant 1 : index
    %c0_86 = arith.constant 0 : index
    %c0_87 = arith.constant 0 : index
    %88 = vector.load %arg6[%c0_83, %c2_84, %c1_85, %c0_86, %c0_87] : memref<2x3x4x32x8xf32, #tpu.memory_space<vmem>>, vector<1x1x1x32x8xf32>
    %89 = vector.shape_cast %88 : vector<1x1x1x32x8xf32> to vector<32x8xf32>
    %cst_88 = arith.constant dense<0.000000e+00> : vector<5x8xf32>
    %90 = tpu.matmul %31, %89, %cst_88 {dimension_numbers = #tpu.dot_dimension_numbers<[1], [0], [0], [1], [0, 0, 1, 1], [], []>} : vector<5x32xf32>, vector<32x8xf32>, vector<5x8xf32> -> vector<5x8xf32>
    %c0_89 = arith.constant 0 : index
    %c2_90 = arith.constant 2 : index
    %c1_91 = arith.constant 1 : index
    %c0_92 = arith.constant 0 : index
    %c0_93 = arith.constant 0 : index
    %91 = vector.load %arg7[%c0_89, %c2_90, %c1_91, %c0_92, %c0_93] : memref<2x3x4x1x8xf32, #tpu.memory_space<vmem>>, vector<1x1x1x1x8xf32>
    %92 = vector.shape_cast %91 : vector<1x1x1x1x8xf32> to vector<1x8xf32>
    %93 = vector.broadcast %92 : vector<1x8xf32> to vector<5x8xf32>
    %94 = arith.addf %90, %93 : vector<5x8xf32>
    %cst_94 = arith.constant dense<0.000000e+00> : vector<5x5xf32>
    %95 = tpu.matmul %80, %87, %cst_94 {dimension_numbers = #tpu.dot_dimension_numbers<[1], [1], [0], [0], [0, 0, 1, 0], [], []>} : vector<5x8xf32>, vector<5x8xf32>, vector<5x5xf32> -> vector<5x5xf32>
    %cst_95 = arith.constant 0.353553385 : f32
    %96 = vector.broadcast %cst_95 : f32 to vector<5x5xf32>
    %97 = arith.mulf %95, %96 : vector<5x5xf32>
    %cst_96 = arith.constant dense<0xFF800000> : vector<5xf32>
    %98 = vector.multi_reduction <maximumf>, %97, %cst_96 [1] : vector<5x5xf32> to vector<5xf32>
    %99 = vector.shape_cast %98 : vector<5xf32> to vector<5x1xf32>
    %100 = vector.broadcast %99 : vector<5x1xf32> to vector<5x5xf32>
    %101 = arith.subf %97, %100 : vector<5x5xf32>
    %102 = math.exp %101 : vector<5x5xf32>
    %cst_97 = arith.constant dense<0.000000e+00> : vector<5xf32>
    %103 = vector.multi_reduction <add>, %102, %cst_97 [1] : vector<5x5xf32> to vector<5xf32>
    %104 = vector.shape_cast %103 : vector<5xf32> to vector<5x1xf32>
    %105 = tpu.reciprocal %104 {approx = true} : vector<5x1xf32> -> vector<5x1xf32>
    %106 = vector.broadcast %105 : vector<5x1xf32> to vector<5x5xf32>
    %107 = arith.mulf %102, %106 : vector<5x5xf32>
    %cst_98 = arith.constant dense<0.000000e+00> : vector<5x8xf32>
    %108 = tpu.matmul %107, %94, %cst_98 {dimension_numbers = #tpu.dot_dimension_numbers<[1], [0], [0], [1], [0, 0, 1, 1], [], []>} : vector<5x5xf32>, vector<5x8xf32>, vector<5x8xf32> -> vector<5x8xf32>
    %c0_99 = arith.constant 0 : index
    %c1_100 = arith.constant 1 : index
    %c0_101 = arith.constant 0 : index
    %c0_102 = arith.constant 0 : index
    %109 = vector.load %arg8[%c0_99, %c1_100, %c0_101, %c0_102] : memref<2x4x8x32xf32, #tpu.memory_space<vmem>>, vector<1x1x8x32xf32>
    %110 = vector.shape_cast %109 : vector<1x1x8x32xf32> to vector<8x32xf32>
    %cst_103 = arith.constant dense<0.000000e+00> : vector<5x32xf32>
    %111 = tpu.matmul %108, %110, %cst_103 {dimension_numbers = #tpu.dot_dimension_numbers<[1], [0], [0], [1], [0, 0, 1, 1], [], []>} : vector<5x8xf32>, vector<8x32xf32>, vector<5x32xf32> -> vector<5x32xf32>
    %112 = arith.addf %73, %111 : vector<5x32xf32>
    %c0_104 = arith.constant 0 : index
    %c0_105 = arith.constant 0 : index
    %c2_106 = arith.constant 2 : index
    %c0_107 = arith.constant 0 : index
    %c0_108 = arith.constant 0 : index
    %113 = vector.load %arg6[%c0_104, %c0_105, %c2_106, %c0_107, %c0_108] : memref<2x3x4x32x8xf32, #tpu.memory_space<vmem>>, vector<1x1x1x32x8xf32>
    %114 = vector.shape_cast %113 : vector<1x1x1x32x8xf32> to vector<32x8xf32>
    %cst_109 = arith.constant dense<0.000000e+00> : vector<5x8xf32>
    %115 = tpu.matmul %31, %114, %cst_109 {dimension_numbers = #tpu.dot_dimension_numbers<[1], [0], [0], [1], [0, 0, 1, 1], [], []>} : vector<5x32xf32>, vector<32x8xf32>, vector<5x8xf32> -> vector<5x8xf32>
    %c0_110 = arith.constant 0 : index
    %c0_111 = arith.constant 0 : index
    %c2_112 = arith.constant 2 : index
    %c0_113 = arith.constant 0 : index
    %c0_114 = arith.constant 0 : index
    %116 = vector.load %arg7[%c0_110, %c0_111, %c2_112, %c0_113, %c0_114] : memref<2x3x4x1x8xf32, #tpu.memory_space<vmem>>, vector<1x1x1x1x8xf32>
    %117 = vector.shape_cast %116 : vector<1x1x1x1x8xf32> to vector<1x8xf32>
    %118 = vector.broadcast %117 : vector<1x8xf32> to vector<5x8xf32>
    %119 = arith.addf %115, %118 : vector<5x8xf32>
    %c0_115 = arith.constant 0 : index
    %c1_116 = arith.constant 1 : index
    %c2_117 = arith.constant 2 : index
    %c0_118 = arith.constant 0 : index
    %c0_119 = arith.constant 0 : index
    %120 = vector.load %arg6[%c0_115, %c1_116, %c2_117, %c0_118, %c0_119] : memref<2x3x4x32x8xf32, #tpu.memory_space<vmem>>, vector<1x1x1x32x8xf32>
    %121 = vector.shape_cast %120 : vector<1x1x1x32x8xf32> to vector<32x8xf32>
    %cst_120 = arith.constant dense<0.000000e+00> : vector<5x8xf32>
    %122 = tpu.matmul %31, %121, %cst_120 {dimension_numbers = #tpu.dot_dimension_numbers<[1], [0], [0], [1], [0, 0, 1, 1], [], []>} : vector<5x32xf32>, vector<32x8xf32>, vector<5x8xf32> -> vector<5x8xf32>
    %c0_121 = arith.constant 0 : index
    %c1_122 = arith.constant 1 : index
    %c2_123 = arith.constant 2 : index
    %c0_124 = arith.constant 0 : index
    %c0_125 = arith.constant 0 : index
    %123 = vector.load %arg7[%c0_121, %c1_122, %c2_123, %c0_124, %c0_125] : memref<2x3x4x1x8xf32, #tpu.memory_space<vmem>>, vector<1x1x1x1x8xf32>
    %124 = vector.shape_cast %123 : vector<1x1x1x1x8xf32> to vector<1x8xf32>
    %125 = vector.broadcast %124 : vector<1x8xf32> to vector<5x8xf32>
    %126 = arith.addf %122, %125 : vector<5x8xf32>
    %c0_126 = arith.constant 0 : index
    %c2_127 = arith.constant 2 : index
    %c2_128 = arith.constant 2 : index
    %c0_129 = arith.constant 0 : index
    %c0_130 = arith.constant 0 : index
    %127 = vector.load %arg6[%c0_126, %c2_127, %c2_128, %c0_129, %c0_130] : memref<2x3x4x32x8xf32, #tpu.memory_space<vmem>>, vector<1x1x1x32x8xf32>
    %128 = vector.shape_cast %127 : vector<1x1x1x32x8xf32> to vector<32x8xf32>
    %cst_131 = arith.constant dense<0.000000e+00> : vector<5x8xf32>
    %129 = tpu.matmul %31, %128, %cst_131 {dimension_numbers = #tpu.dot_dimension_numbers<[1], [0], [0], [1], [0, 0, 1, 1], [], []>} : vector<5x32xf32>, vector<32x8xf32>, vector<5x8xf32> -> vector<5x8xf32>
    %c0_132 = arith.constant 0 : index
    %c2_133 = arith.constant 2 : index
    %c2_134 = arith.constant 2 : index
    %c0_135 = arith.constant 0 : index
    %c0_136 = arith.constant 0 : index
    %130 = vector.load %arg7[%c0_132, %c2_133, %c2_134, %c0_135, %c0_136] : memref<2x3x4x1x8xf32, #tpu.memory_space<vmem>>, vector<1x1x1x1x8xf32>
    %131 = vector.shape_cast %130 : vector<1x1x1x1x8xf32> to vector<1x8xf32>
    %132 = vector.broadcast %131 : vector<1x8xf32> to vector<5x8xf32>
    %133 = arith.addf %129, %132 : vector<5x8xf32>
    %cst_137 = arith.constant dense<0.000000e+00> : vector<5x5xf32>
    %134 = tpu.matmul %119, %126, %cst_137 {dimension_numbers = #tpu.dot_dimension_numbers<[1], [1], [0], [0], [0, 0, 1, 0], [], []>} : vector<5x8xf32>, vector<5x8xf32>, vector<5x5xf32> -> vector<5x5xf32>
    %cst_138 = arith.constant 0.353553385 : f32
    %135 = vector.broadcast %cst_138 : f32 to vector<5x5xf32>
    %136 = arith.mulf %134, %135 : vector<5x5xf32>
    %cst_139 = arith.constant dense<0xFF800000> : vector<5xf32>
    %137 = vector.multi_reduction <maximumf>, %136, %cst_139 [1] : vector<5x5xf32> to vector<5xf32>
    %138 = vector.shape_cast %137 : vector<5xf32> to vector<5x1xf32>
    %139 = vector.broadcast %138 : vector<5x1xf32> to vector<5x5xf32>
    %140 = arith.subf %136, %139 : vector<5x5xf32>
    %141 = math.exp %140 : vector<5x5xf32>
    %cst_140 = arith.constant dense<0.000000e+00> : vector<5xf32>
    %142 = vector.multi_reduction <add>, %141, %cst_140 [1] : vector<5x5xf32> to vector<5xf32>
    %143 = vector.shape_cast %142 : vector<5xf32> to vector<5x1xf32>
    %144 = tpu.reciprocal %143 {approx = true} : vector<5x1xf32> -> vector<5x1xf32>
    %145 = vector.broadcast %144 : vector<5x1xf32> to vector<5x5xf32>
    %146 = arith.mulf %141, %145 : vector<5x5xf32>
    %cst_141 = arith.constant dense<0.000000e+00> : vector<5x8xf32>
    %147 = tpu.matmul %146, %133, %cst_141 {dimension_numbers = #tpu.dot_dimension_numbers<[1], [0], [0], [1], [0, 0, 1, 1], [], []>} : vector<5x5xf32>, vector<5x8xf32>, vector<5x8xf32> -> vector<5x8xf32>
    %c0_142 = arith.constant 0 : index
    %c2_143 = arith.constant 2 : index
    %c0_144 = arith.constant 0 : index
    %c0_145 = arith.constant 0 : index
    %148 = vector.load %arg8[%c0_142, %c2_143, %c0_144, %c0_145] : memref<2x4x8x32xf32, #tpu.memory_space<vmem>>, vector<1x1x8x32xf32>
    %149 = vector.shape_cast %148 : vector<1x1x8x32xf32> to vector<8x32xf32>
    %cst_146 = arith.constant dense<0.000000e+00> : vector<5x32xf32>
    %150 = tpu.matmul %147, %149, %cst_146 {dimension_numbers = #tpu.dot_dimension_numbers<[1], [0], [0], [1], [0, 0, 1, 1], [], []>} : vector<5x8xf32>, vector<8x32xf32>, vector<5x32xf32> -> vector<5x32xf32>
    %151 = arith.addf %112, %150 : vector<5x32xf32>
    %c0_147 = arith.constant 0 : index
    %c0_148 = arith.constant 0 : index
    %c3 = arith.constant 3 : index
    %c0_149 = arith.constant 0 : index
    %c0_150 = arith.constant 0 : index
    %152 = vector.load %arg6[%c0_147, %c0_148, %c3, %c0_149, %c0_150] : memref<2x3x4x32x8xf32, #tpu.memory_space<vmem>>, vector<1x1x1x32x8xf32>
    %153 = vector.shape_cast %152 : vector<1x1x1x32x8xf32> to vector<32x8xf32>
    %cst_151 = arith.constant dense<0.000000e+00> : vector<5x8xf32>
    %154 = tpu.matmul %31, %153, %cst_151 {dimension_numbers = #tpu.dot_dimension_numbers<[1], [0], [0], [1], [0, 0, 1, 1], [], []>} : vector<5x32xf32>, vector<32x8xf32>, vector<5x8xf32> -> vector<5x8xf32>
    %c0_152 = arith.constant 0 : index
    %c0_153 = arith.constant 0 : index
    %c3_154 = arith.constant 3 : index
    %c0_155 = arith.constant 0 : index
    %c0_156 = arith.constant 0 : index
    %155 = vector.load %arg7[%c0_152, %c0_153, %c3_154, %c0_155, %c0_156] : memref<2x3x4x1x8xf32, #tpu.memory_space<vmem>>, vector<1x1x1x1x8xf32>
    %156 = vector.shape_cast %155 : vector<1x1x1x1x8xf32> to vector<1x8xf32>
    %157 = vector.broadcast %156 : vector<1x8xf32> to vector<5x8xf32>
    %158 = arith.addf %154, %157 : vector<5x8xf32>
    %c0_157 = arith.constant 0 : index
    %c1_158 = arith.constant 1 : index
    %c3_159 = arith.constant 3 : index
    %c0_160 = arith.constant 0 : index
    %c0_161 = arith.constant 0 : index
    %159 = vector.load %arg6[%c0_157, %c1_158, %c3_159, %c0_160, %c0_161] : memref<2x3x4x32x8xf32, #tpu.memory_space<vmem>>, vector<1x1x1x32x8xf32>
    %160 = vector.shape_cast %159 : vector<1x1x1x32x8xf32> to vector<32x8xf32>
    %cst_162 = arith.constant dense<0.000000e+00> : vector<5x8xf32>
    %161 = tpu.matmul %31, %160, %cst_162 {dimension_numbers = #tpu.dot_dimension_numbers<[1], [0], [0], [1], [0, 0, 1, 1], [], []>} : vector<5x32xf32>, vector<32x8xf32>, vector<5x8xf32> -> vector<5x8xf32>
    %c0_163 = arith.constant 0 : index
    %c1_164 = arith.constant 1 : index
    %c3_165 = arith.constant 3 : index
    %c0_166 = arith.constant 0 : index
    %c0_167 = arith.constant 0 : index
    %162 = vector.load %arg7[%c0_163, %c1_164, %c3_165, %c0_166, %c0_167] : memref<2x3x4x1x8xf32, #tpu.memory_space<vmem>>, vector<1x1x1x1x8xf32>
    %163 = vector.shape_cast %162 : vector<1x1x1x1x8xf32> to vector<1x8xf32>
    %164 = vector.broadcast %163 : vector<1x8xf32> to vector<5x8xf32>
    %165 = arith.addf %161, %164 : vector<5x8xf32>
    %c0_168 = arith.constant 0 : index
    %c2_169 = arith.constant 2 : index
    %c3_170 = arith.constant 3 : index
    %c0_171 = arith.constant 0 : index
    %c0_172 = arith.constant 0 : index
    %166 = vector.load %arg6[%c0_168, %c2_169, %c3_170, %c0_171, %c0_172] : memref<2x3x4x32x8xf32, #tpu.memory_space<vmem>>, vector<1x1x1x32x8xf32>
    %167 = vector.shape_cast %166 : vector<1x1x1x32x8xf32> to vector<32x8xf32>
    %cst_173 = arith.constant dense<0.000000e+00> : vector<5x8xf32>
    %168 = tpu.matmul %31, %167, %cst_173 {dimension_numbers = #tpu.dot_dimension_numbers<[1], [0], [0], [1], [0, 0, 1, 1], [], []>} : vector<5x32xf32>, vector<32x8xf32>, vector<5x8xf32> -> vector<5x8xf32>
    %c0_174 = arith.constant 0 : index
    %c2_175 = arith.constant 2 : index
    %c3_176 = arith.constant 3 : index
    %c0_177 = arith.constant 0 : index
    %c0_178 = arith.constant 0 : index
    %169 = vector.load %arg7[%c0_174, %c2_175, %c3_176, %c0_177, %c0_178] : memref<2x3x4x1x8xf32, #tpu.memory_space<vmem>>, vector<1x1x1x1x8xf32>
    %170 = vector.shape_cast %169 : vector<1x1x1x1x8xf32> to vector<1x8xf32>
    %171 = vector.broadcast %170 : vector<1x8xf32> to vector<5x8xf32>
    %172 = arith.addf %168, %171 : vector<5x8xf32>
    %cst_179 = arith.constant dense<0.000000e+00> : vector<5x5xf32>
    %173 = tpu.matmul %158, %165, %cst_179 {dimension_numbers = #tpu.dot_dimension_numbers<[1], [1], [0], [0], [0, 0, 1, 0], [], []>} : vector<5x8xf32>, vector<5x8xf32>, vector<5x5xf32> -> vector<5x5xf32>
    %cst_180 = arith.constant 0.353553385 : f32
    %174 = vector.broadcast %cst_180 : f32 to vector<5x5xf32>
    %175 = arith.mulf %173, %174 : vector<5x5xf32>
    %cst_181 = arith.constant dense<0xFF800000> : vector<5xf32>
    %176 = vector.multi_reduction <maximumf>, %175, %cst_181 [1] : vector<5x5xf32> to vector<5xf32>
    %177 = vector.shape_cast %176 : vector<5xf32> to vector<5x1xf32>
    %178 = vector.broadcast %177 : vector<5x1xf32> to vector<5x5xf32>
    %179 = arith.subf %175, %178 : vector<5x5xf32>
    %180 = math.exp %179 : vector<5x5xf32>
    %cst_182 = arith.constant dense<0.000000e+00> : vector<5xf32>
    %181 = vector.multi_reduction <add>, %180, %cst_182 [1] : vector<5x5xf32> to vector<5xf32>
    %182 = vector.shape_cast %181 : vector<5xf32> to vector<5x1xf32>
    %183 = tpu.reciprocal %182 {approx = true} : vector<5x1xf32> -> vector<5x1xf32>
    %184 = vector.broadcast %183 : vector<5x1xf32> to vector<5x5xf32>
    %185 = arith.mulf %180, %184 : vector<5x5xf32>
    %cst_183 = arith.constant dense<0.000000e+00> : vector<5x8xf32>
    %186 = tpu.matmul %185, %172, %cst_183 {dimension_numbers = #tpu.dot_dimension_numbers<[1], [0], [0], [1], [0, 0, 1, 1], [], []>} : vector<5x5xf32>, vector<5x8xf32>, vector<5x8xf32> -> vector<5x8xf32>
    %c0_184 = arith.constant 0 : index
    %c3_185 = arith.constant 3 : index
    %c0_186 = arith.constant 0 : index
    %c0_187 = arith.constant 0 : index
    %187 = vector.load %arg8[%c0_184, %c3_185, %c0_186, %c0_187] : memref<2x4x8x32xf32, #tpu.memory_space<vmem>>, vector<1x1x8x32xf32>
    %188 = vector.shape_cast %187 : vector<1x1x8x32xf32> to vector<8x32xf32>
    %cst_188 = arith.constant dense<0.000000e+00> : vector<5x32xf32>
    %189 = tpu.matmul %186, %188, %cst_188 {dimension_numbers = #tpu.dot_dimension_numbers<[1], [0], [0], [1], [0, 0, 1, 1], [], []>} : vector<5x8xf32>, vector<8x32xf32>, vector<5x32xf32> -> vector<5x32xf32>
    %190 = arith.addf %151, %189 : vector<5x32xf32>
    %191 = arith.addf %5, %190 : vector<5x32xf32>
    %c0_189 = arith.constant 0 : index
    %c0_190 = arith.constant 0 : index
    %c0_191 = arith.constant 0 : index
    %192 = vector.load %arg10[%c0_189, %c0_190, %c0_191] : memref<2x1x32xf32, #tpu.memory_space<vmem>>, vector<1x1x32xf32>
    %193 = vector.shape_cast %192 : vector<1x1x32xf32> to vector<1x32xf32>
    %c0_192 = arith.constant 0 : index
    %c0_193 = arith.constant 0 : index
    %c0_194 = arith.constant 0 : index
    %194 = vector.load %arg11[%c0_192, %c0_193, %c0_194] : memref<2x1x32xf32, #tpu.memory_space<vmem>>, vector<1x1x32xf32>
    %195 = vector.shape_cast %194 : vector<1x1x32xf32> to vector<1x32xf32>
    %cst_195 = arith.constant dense<0.000000e+00> : vector<5xf32>
    %196 = vector.multi_reduction <add>, %191, %cst_195 [1] : vector<5x32xf32> to vector<5xf32>
    %197 = vector.shape_cast %196 : vector<5xf32> to vector<5x1xf32>
    %cst_196 = arith.constant 3.200000e+01 : f32
    %198 = vector.broadcast %cst_196 : f32 to vector<5x1xf32>
    %199 = arith.divf %197, %198 : vector<5x1xf32>
    %200 = vector.broadcast %199 : vector<5x1xf32> to vector<5x32xf32>
    %201 = arith.subf %191, %200 : vector<5x32xf32>
    %202 = arith.mulf %201, %201 : vector<5x32xf32>
    %cst_197 = arith.constant dense<0.000000e+00> : vector<5xf32>
    %203 = vector.multi_reduction <add>, %202, %cst_197 [1] : vector<5x32xf32> to vector<5xf32>
    %204 = vector.shape_cast %203 : vector<5xf32> to vector<5x1xf32>
    %cst_198 = arith.constant 3.200000e+01 : f32
    %205 = vector.broadcast %cst_198 : f32 to vector<5x1xf32>
    %206 = arith.divf %204, %205 : vector<5x1xf32>
    %207 = vector.broadcast %199 : vector<5x1xf32> to vector<5x32xf32>
    %208 = arith.subf %191, %207 : vector<5x32xf32>
    %cst_199 = arith.constant 9.99999997E-7 : f32
    %209 = vector.broadcast %cst_199 : f32 to vector<5x1xf32>
    %210 = arith.addf %206, %209 : vector<5x1xf32>
    %211 = math.rsqrt %210 : vector<5x1xf32>
    %212 = vector.broadcast %211 : vector<5x1xf32> to vector<5x32xf32>
    %213 = arith.mulf %208, %212 : vector<5x32xf32>
    %214 = vector.broadcast %193 : vector<1x32xf32> to vector<5x32xf32>
    %215 = arith.mulf %213, %214 : vector<5x32xf32>
    %216 = vector.broadcast %195 : vector<1x32xf32> to vector<5x32xf32>
    %217 = arith.addf %215, %216 : vector<5x32xf32>
    %c0_200 = arith.constant 0 : index
    %c0_201 = arith.constant 0 : index
    %c0_202 = arith.constant 0 : index
    %218 = vector.load %arg12[%c0_200, %c0_201, %c0_202] : memref<2x32x64xf32, #tpu.memory_space<vmem>>, vector<1x32x64xf32>
    %219 = vector.shape_cast %218 : vector<1x32x64xf32> to vector<32x64xf32>
    %cst_203 = arith.constant dense<0.000000e+00> : vector<5x64xf32>
    %220 = tpu.matmul %217, %219, %cst_203 {dimension_numbers = #tpu.dot_dimension_numbers<[1], [0], [0], [1], [0, 0, 1, 1], [], []>} : vector<5x32xf32>, vector<32x64xf32>, vector<5x64xf32> -> vector<5x64xf32>
    %c0_204 = arith.constant 0 : index
    %c0_205 = arith.constant 0 : index
    %c0_206 = arith.constant 0 : index
    %221 = vector.load %arg13[%c0_204, %c0_205, %c0_206] : memref<2x1x64xf32, #tpu.memory_space<vmem>>, vector<1x1x64xf32>
    %222 = vector.shape_cast %221 : vector<1x1x64xf32> to vector<1x64xf32>
    %223 = vector.broadcast %222 : vector<1x64xf32> to vector<5x64xf32>
    %224 = arith.addf %220, %223 : vector<5x64xf32>
    %cst_207 = arith.constant 5.000000e-01 : f32
    %225 = vector.broadcast %cst_207 : f32 to vector<5x64xf32>
    %226 = arith.mulf %225, %224 : vector<5x64xf32>
    %cst_208 = arith.constant 0.707106769 : f32
    %227 = vector.broadcast %cst_208 : f32 to vector<5x64xf32>
    %228 = arith.mulf %224, %227 : vector<5x64xf32>
    %cst_209 = arith.constant 0.000000e+00 : f32
    %229 = vector.broadcast %cst_209 : f32 to vector<5x64xf32>
    %230 = arith.cmpf oge, %228, %229 : vector<5x64xf32>
    %cst_210 = arith.constant 1.000000e+00 : f32
    %cst_211 = arith.constant -1.000000e+00 : f32
    %231 = vector.broadcast %cst_210 : f32 to vector<5x64xf32>
    %232 = vector.broadcast %cst_211 : f32 to vector<5x64xf32>
    %233 = arith.select %230, %231, %232 : vector<5x64xi1>, vector<5x64xf32>
    %234 = arith.mulf %228, %233 : vector<5x64xf32>
    %cst_212 = arith.constant 0.327591091 : f32
    %235 = vector.broadcast %cst_212 : f32 to vector<5x64xf32>
    %236 = arith.mulf %235, %234 : vector<5x64xf32>
    %cst_213 = arith.constant 1.000000e+00 : f32
    %237 = vector.broadcast %cst_213 : f32 to vector<5x64xf32>
    %238 = arith.addf %237, %236 : vector<5x64xf32>
    %239 = tpu.reciprocal %238 : vector<5x64xf32> -> vector<5x64xf32>
    %cst_214 = arith.constant 1.06140542 : f32
    %240 = vector.broadcast %cst_214 : f32 to vector<5x64xf32>
    %241 = arith.mulf %240, %239 : vector<5x64xf32>
    %cst_215 = arith.constant 1.45315206 : f32
    %242 = vector.broadcast %cst_215 : f32 to vector<5x64xf32>
    %243 = arith.subf %241, %242 : vector<5x64xf32>
    %244 = arith.mulf %243, %239 : vector<5x64xf32>
    %cst_216 = arith.constant 1.42141378 : f32
    %245 = vector.broadcast %cst_216 : f32 to vector<5x64xf32>
    %246 = arith.addf %244, %245 : vector<5x64xf32>
    %247 = arith.mulf %246, %239 : vector<5x64xf32>
    %cst_217 = arith.constant 0.284496725 : f32
    %248 = vector.broadcast %cst_217 : f32 to vector<5x64xf32>
    %249 = arith.subf %247, %248 : vector<5x64xf32>
    %250 = arith.mulf %249, %239 : vector<5x64xf32>
    %cst_218 = arith.constant 0.254829586 : f32
    %251 = vector.broadcast %cst_218 : f32 to vector<5x64xf32>
    %252 = arith.addf %250, %251 : vector<5x64xf32>
    %253 = arith.mulf %252, %239 : vector<5x64xf32>
    %cst_219 = arith.constant 0.000000e+00 : f32
    %254 = vector.broadcast %cst_219 : f32 to vector<5x64xf32>
    %255 = arith.subf %254, %234 : vector<5x64xf32>
    %256 = arith.mulf %255, %234 : vector<5x64xf32>
    %257 = math.exp %256 : vector<5x64xf32>
    %258 = arith.mulf %253, %257 : vector<5x64xf32>
    %cst_220 = arith.constant 1.000000e+00 : f32
    %259 = vector.broadcast %cst_220 : f32 to vector<5x64xf32>
    %260 = arith.subf %259, %258 : vector<5x64xf32>
    %261 = arith.mulf %233, %260 : vector<5x64xf32>
    %cst_221 = arith.constant 1.000000e+00 : f32
    %262 = vector.broadcast %cst_221 : f32 to vector<5x64xf32>
    %263 = arith.addf %262, %261 : vector<5x64xf32>
    %264 = arith.mulf %226, %263 : vector<5x64xf32>
    %c0_222 = arith.constant 0 : index
    %c0_223 = arith.constant 0 : index
    %c0_224 = arith.constant 0 : index
    %265 = vector.load %arg14[%c0_222, %c0_223, %c0_224] : memref<2x64x32xf32, #tpu.memory_space<vmem>>, vector<1x64x32xf32>
    %266 = vector.shape_cast %265 : vector<1x64x32xf32> to vector<64x32xf32>
    %cst_225 = arith.constant dense<0.000000e+00> : vector<5x32xf32>
    %267 = tpu.matmul %264, %266, %cst_225 {dimension_numbers = #tpu.dot_dimension_numbers<[1], [0], [0], [1], [0, 0, 1, 1], [], []>} : vector<5x64xf32>, vector<64x32xf32>, vector<5x32xf32> -> vector<5x32xf32>
    %c0_226 = arith.constant 0 : index
    %c0_227 = arith.constant 0 : index
    %c0_228 = arith.constant 0 : index
    %268 = vector.load %arg15[%c0_226, %c0_227, %c0_228] : memref<2x1x32xf32, #tpu.memory_space<vmem>>, vector<1x1x32xf32>
    %269 = vector.shape_cast %268 : vector<1x1x32xf32> to vector<1x32xf32>
    %270 = vector.broadcast %269 : vector<1x32xf32> to vector<5x32xf32>
    %271 = arith.addf %267, %270 : vector<5x32xf32>
    %272 = arith.addf %191, %271 : vector<5x32xf32>
    %c1_229 = arith.constant 1 : index
    %c0_230 = arith.constant 0 : index
    %c0_231 = arith.constant 0 : index
    %273 = vector.load %arg4[%c1_229, %c0_230, %c0_231] : memref<2x1x32xf32, #tpu.memory_space<vmem>>, vector<1x1x32xf32>
    %274 = vector.shape_cast %273 : vector<1x1x32xf32> to vector<1x32xf32>
    %c1_232 = arith.constant 1 : index
    %c0_233 = arith.constant 0 : index
    %c0_234 = arith.constant 0 : index
    %275 = vector.load %arg5[%c1_232, %c0_233, %c0_234] : memref<2x1x32xf32, #tpu.memory_space<vmem>>, vector<1x1x32xf32>
    %276 = vector.shape_cast %275 : vector<1x1x32xf32> to vector<1x32xf32>
    %cst_235 = arith.constant dense<0.000000e+00> : vector<5xf32>
    %277 = vector.multi_reduction <add>, %272, %cst_235 [1] : vector<5x32xf32> to vector<5xf32>
    %278 = vector.shape_cast %277 : vector<5xf32> to vector<5x1xf32>
    %cst_236 = arith.constant 3.200000e+01 : f32
    %279 = vector.broadcast %cst_236 : f32 to vector<5x1xf32>
    %280 = arith.divf %278, %279 : vector<5x1xf32>
    %281 = vector.broadcast %280 : vector<5x1xf32> to vector<5x32xf32>
    %282 = arith.subf %272, %281 : vector<5x32xf32>
    %283 = arith.mulf %282, %282 : vector<5x32xf32>
    %cst_237 = arith.constant dense<0.000000e+00> : vector<5xf32>
    %284 = vector.multi_reduction <add>, %283, %cst_237 [1] : vector<5x32xf32> to vector<5xf32>
    %285 = vector.shape_cast %284 : vector<5xf32> to vector<5x1xf32>
    %cst_238 = arith.constant 3.200000e+01 : f32
    %286 = vector.broadcast %cst_238 : f32 to vector<5x1xf32>
    %287 = arith.divf %285, %286 : vector<5x1xf32>
    %288 = vector.broadcast %280 : vector<5x1xf32> to vector<5x32xf32>
    %289 = arith.subf %272, %288 : vector<5x32xf32>
    %cst_239 = arith.constant 9.99999997E-7 : f32
    %290 = vector.broadcast %cst_239 : f32 to vector<5x1xf32>
    %291 = arith.addf %287, %290 : vector<5x1xf32>
    %292 = math.rsqrt %291 : vector<5x1xf32>
    %293 = vector.broadcast %292 : vector<5x1xf32> to vector<5x32xf32>
    %294 = arith.mulf %289, %293 : vector<5x32xf32>
    %295 = vector.broadcast %274 : vector<1x32xf32> to vector<5x32xf32>
    %296 = arith.mulf %294, %295 : vector<5x32xf32>
    %297 = vector.broadcast %276 : vector<1x32xf32> to vector<5x32xf32>
    %298 = arith.addf %296, %297 : vector<5x32xf32>
    %c1_240 = arith.constant 1 : index
    %c0_241 = arith.constant 0 : index
    %c0_242 = arith.constant 0 : index
    %299 = vector.load %arg9[%c1_240, %c0_241, %c0_242] : memref<2x1x32xf32, #tpu.memory_space<vmem>>, vector<1x1x32xf32>
    %300 = vector.shape_cast %299 : vector<1x1x32xf32> to vector<1x32xf32>
    %c1_243 = arith.constant 1 : index
    %c0_244 = arith.constant 0 : index
    %c0_245 = arith.constant 0 : index
    %c0_246 = arith.constant 0 : index
    %c0_247 = arith.constant 0 : index
    %301 = vector.load %arg6[%c1_243, %c0_244, %c0_245, %c0_246, %c0_247] : memref<2x3x4x32x8xf32, #tpu.memory_space<vmem>>, vector<1x1x1x32x8xf32>
    %302 = vector.shape_cast %301 : vector<1x1x1x32x8xf32> to vector<32x8xf32>
    %cst_248 = arith.constant dense<0.000000e+00> : vector<5x8xf32>
    %303 = tpu.matmul %298, %302, %cst_248 {dimension_numbers = #tpu.dot_dimension_numbers<[1], [0], [0], [1], [0, 0, 1, 1], [], []>} : vector<5x32xf32>, vector<32x8xf32>, vector<5x8xf32> -> vector<5x8xf32>
    %c1_249 = arith.constant 1 : index
    %c0_250 = arith.constant 0 : index
    %c0_251 = arith.constant 0 : index
    %c0_252 = arith.constant 0 : index
    %c0_253 = arith.constant 0 : index
    %304 = vector.load %arg7[%c1_249, %c0_250, %c0_251, %c0_252, %c0_253] : memref<2x3x4x1x8xf32, #tpu.memory_space<vmem>>, vector<1x1x1x1x8xf32>
    %305 = vector.shape_cast %304 : vector<1x1x1x1x8xf32> to vector<1x8xf32>
    %306 = vector.broadcast %305 : vector<1x8xf32> to vector<5x8xf32>
    %307 = arith.addf %303, %306 : vector<5x8xf32>
    %c1_254 = arith.constant 1 : index
    %c1_255 = arith.constant 1 : index
    %c0_256 = arith.constant 0 : index
    %c0_257 = arith.constant 0 : index
    %c0_258 = arith.constant 0 : index
    %308 = vector.load %arg6[%c1_254, %c1_255, %c0_256, %c0_257, %c0_258] : memref<2x3x4x32x8xf32, #tpu.memory_space<vmem>>, vector<1x1x1x32x8xf32>
    %309 = vector.shape_cast %308 : vector<1x1x1x32x8xf32> to vector<32x8xf32>
    %cst_259 = arith.constant dense<0.000000e+00> : vector<5x8xf32>
    %310 = tpu.matmul %298, %309, %cst_259 {dimension_numbers = #tpu.dot_dimension_numbers<[1], [0], [0], [1], [0, 0, 1, 1], [], []>} : vector<5x32xf32>, vector<32x8xf32>, vector<5x8xf32> -> vector<5x8xf32>
    %c1_260 = arith.constant 1 : index
    %c1_261 = arith.constant 1 : index
    %c0_262 = arith.constant 0 : index
    %c0_263 = arith.constant 0 : index
    %c0_264 = arith.constant 0 : index
    %311 = vector.load %arg7[%c1_260, %c1_261, %c0_262, %c0_263, %c0_264] : memref<2x3x4x1x8xf32, #tpu.memory_space<vmem>>, vector<1x1x1x1x8xf32>
    %312 = vector.shape_cast %311 : vector<1x1x1x1x8xf32> to vector<1x8xf32>
    %313 = vector.broadcast %312 : vector<1x8xf32> to vector<5x8xf32>
    %314 = arith.addf %310, %313 : vector<5x8xf32>
    %c1_265 = arith.constant 1 : index
    %c2_266 = arith.constant 2 : index
    %c0_267 = arith.constant 0 : index
    %c0_268 = arith.constant 0 : index
    %c0_269 = arith.constant 0 : index
    %315 = vector.load %arg6[%c1_265, %c2_266, %c0_267, %c0_268, %c0_269] : memref<2x3x4x32x8xf32, #tpu.memory_space<vmem>>, vector<1x1x1x32x8xf32>
    %316 = vector.shape_cast %315 : vector<1x1x1x32x8xf32> to vector<32x8xf32>
    %cst_270 = arith.constant dense<0.000000e+00> : vector<5x8xf32>
    %317 = tpu.matmul %298, %316, %cst_270 {dimension_numbers = #tpu.dot_dimension_numbers<[1], [0], [0], [1], [0, 0, 1, 1], [], []>} : vector<5x32xf32>, vector<32x8xf32>, vector<5x8xf32> -> vector<5x8xf32>
    %c1_271 = arith.constant 1 : index
    %c2_272 = arith.constant 2 : index
    %c0_273 = arith.constant 0 : index
    %c0_274 = arith.constant 0 : index
    %c0_275 = arith.constant 0 : index
    %318 = vector.load %arg7[%c1_271, %c2_272, %c0_273, %c0_274, %c0_275] : memref<2x3x4x1x8xf32, #tpu.memory_space<vmem>>, vector<1x1x1x1x8xf32>
    %319 = vector.shape_cast %318 : vector<1x1x1x1x8xf32> to vector<1x8xf32>
    %320 = vector.broadcast %319 : vector<1x8xf32> to vector<5x8xf32>
    %321 = arith.addf %317, %320 : vector<5x8xf32>
    %cst_276 = arith.constant dense<0.000000e+00> : vector<5x5xf32>
    %322 = tpu.matmul %307, %314, %cst_276 {dimension_numbers = #tpu.dot_dimension_numbers<[1], [1], [0], [0], [0, 0, 1, 0], [], []>} : vector<5x8xf32>, vector<5x8xf32>, vector<5x5xf32> -> vector<5x5xf32>
    %cst_277 = arith.constant 0.353553385 : f32
    %323 = vector.broadcast %cst_277 : f32 to vector<5x5xf32>
    %324 = arith.mulf %322, %323 : vector<5x5xf32>
    %cst_278 = arith.constant dense<0xFF800000> : vector<5xf32>
    %325 = vector.multi_reduction <maximumf>, %324, %cst_278 [1] : vector<5x5xf32> to vector<5xf32>
    %326 = vector.shape_cast %325 : vector<5xf32> to vector<5x1xf32>
    %327 = vector.broadcast %326 : vector<5x1xf32> to vector<5x5xf32>
    %328 = arith.subf %324, %327 : vector<5x5xf32>
    %329 = math.exp %328 : vector<5x5xf32>
    %cst_279 = arith.constant dense<0.000000e+00> : vector<5xf32>
    %330 = vector.multi_reduction <add>, %329, %cst_279 [1] : vector<5x5xf32> to vector<5xf32>
    %331 = vector.shape_cast %330 : vector<5xf32> to vector<5x1xf32>
    %332 = tpu.reciprocal %331 {approx = true} : vector<5x1xf32> -> vector<5x1xf32>
    %333 = vector.broadcast %332 : vector<5x1xf32> to vector<5x5xf32>
    %334 = arith.mulf %329, %333 : vector<5x5xf32>
    %cst_280 = arith.constant dense<0.000000e+00> : vector<5x8xf32>
    %335 = tpu.matmul %334, %321, %cst_280 {dimension_numbers = #tpu.dot_dimension_numbers<[1], [0], [0], [1], [0, 0, 1, 1], [], []>} : vector<5x5xf32>, vector<5x8xf32>, vector<5x8xf32> -> vector<5x8xf32>
    %c1_281 = arith.constant 1 : index
    %c0_282 = arith.constant 0 : index
    %c0_283 = arith.constant 0 : index
    %c0_284 = arith.constant 0 : index
    %336 = vector.load %arg8[%c1_281, %c0_282, %c0_283, %c0_284] : memref<2x4x8x32xf32, #tpu.memory_space<vmem>>, vector<1x1x8x32xf32>
    %337 = vector.shape_cast %336 : vector<1x1x8x32xf32> to vector<8x32xf32>
    %cst_285 = arith.constant dense<0.000000e+00> : vector<5x32xf32>
    %338 = tpu.matmul %335, %337, %cst_285 {dimension_numbers = #tpu.dot_dimension_numbers<[1], [0], [0], [1], [0, 0, 1, 1], [], []>} : vector<5x8xf32>, vector<8x32xf32>, vector<5x32xf32> -> vector<5x32xf32>
    %339 = vector.broadcast %300 : vector<1x32xf32> to vector<5x32xf32>
    %340 = arith.addf %339, %338 : vector<5x32xf32>
    %c1_286 = arith.constant 1 : index
    %c0_287 = arith.constant 0 : index
    %c1_288 = arith.constant 1 : index
    %c0_289 = arith.constant 0 : index
    %c0_290 = arith.constant 0 : index
    %341 = vector.load %arg6[%c1_286, %c0_287, %c1_288, %c0_289, %c0_290] : memref<2x3x4x32x8xf32, #tpu.memory_space<vmem>>, vector<1x1x1x32x8xf32>
    %342 = vector.shape_cast %341 : vector<1x1x1x32x8xf32> to vector<32x8xf32>
    %cst_291 = arith.constant dense<0.000000e+00> : vector<5x8xf32>
    %343 = tpu.matmul %298, %342, %cst_291 {dimension_numbers = #tpu.dot_dimension_numbers<[1], [0], [0], [1], [0, 0, 1, 1], [], []>} : vector<5x32xf32>, vector<32x8xf32>, vector<5x8xf32> -> vector<5x8xf32>
    %c1_292 = arith.constant 1 : index
    %c0_293 = arith.constant 0 : index
    %c1_294 = arith.constant 1 : index
    %c0_295 = arith.constant 0 : index
    %c0_296 = arith.constant 0 : index
    %344 = vector.load %arg7[%c1_292, %c0_293, %c1_294, %c0_295, %c0_296] : memref<2x3x4x1x8xf32, #tpu.memory_space<vmem>>, vector<1x1x1x1x8xf32>
    %345 = vector.shape_cast %344 : vector<1x1x1x1x8xf32> to vector<1x8xf32>
    %346 = vector.broadcast %345 : vector<1x8xf32> to vector<5x8xf32>
    %347 = arith.addf %343, %346 : vector<5x8xf32>
    %c1_297 = arith.constant 1 : index
    %c1_298 = arith.constant 1 : index
    %c1_299 = arith.constant 1 : index
    %c0_300 = arith.constant 0 : index
    %c0_301 = arith.constant 0 : index
    %348 = vector.load %arg6[%c1_297, %c1_298, %c1_299, %c0_300, %c0_301] : memref<2x3x4x32x8xf32, #tpu.memory_space<vmem>>, vector<1x1x1x32x8xf32>
    %349 = vector.shape_cast %348 : vector<1x1x1x32x8xf32> to vector<32x8xf32>
    %cst_302 = arith.constant dense<0.000000e+00> : vector<5x8xf32>
    %350 = tpu.matmul %298, %349, %cst_302 {dimension_numbers = #tpu.dot_dimension_numbers<[1], [0], [0], [1], [0, 0, 1, 1], [], []>} : vector<5x32xf32>, vector<32x8xf32>, vector<5x8xf32> -> vector<5x8xf32>
    %c1_303 = arith.constant 1 : index
    %c1_304 = arith.constant 1 : index
    %c1_305 = arith.constant 1 : index
    %c0_306 = arith.constant 0 : index
    %c0_307 = arith.constant 0 : index
    %351 = vector.load %arg7[%c1_303, %c1_304, %c1_305, %c0_306, %c0_307] : memref<2x3x4x1x8xf32, #tpu.memory_space<vmem>>, vector<1x1x1x1x8xf32>
    %352 = vector.shape_cast %351 : vector<1x1x1x1x8xf32> to vector<1x8xf32>
    %353 = vector.broadcast %352 : vector<1x8xf32> to vector<5x8xf32>
    %354 = arith.addf %350, %353 : vector<5x8xf32>
    %c1_308 = arith.constant 1 : index
    %c2_309 = arith.constant 2 : index
    %c1_310 = arith.constant 1 : index
    %c0_311 = arith.constant 0 : index
    %c0_312 = arith.constant 0 : index
    %355 = vector.load %arg6[%c1_308, %c2_309, %c1_310, %c0_311, %c0_312] : memref<2x3x4x32x8xf32, #tpu.memory_space<vmem>>, vector<1x1x1x32x8xf32>
    %356 = vector.shape_cast %355 : vector<1x1x1x32x8xf32> to vector<32x8xf32>
    %cst_313 = arith.constant dense<0.000000e+00> : vector<5x8xf32>
    %357 = tpu.matmul %298, %356, %cst_313 {dimension_numbers = #tpu.dot_dimension_numbers<[1], [0], [0], [1], [0, 0, 1, 1], [], []>} : vector<5x32xf32>, vector<32x8xf32>, vector<5x8xf32> -> vector<5x8xf32>
    %c1_314 = arith.constant 1 : index
    %c2_315 = arith.constant 2 : index
    %c1_316 = arith.constant 1 : index
    %c0_317 = arith.constant 0 : index
    %c0_318 = arith.constant 0 : index
    %358 = vector.load %arg7[%c1_314, %c2_315, %c1_316, %c0_317, %c0_318] : memref<2x3x4x1x8xf32, #tpu.memory_space<vmem>>, vector<1x1x1x1x8xf32>
    %359 = vector.shape_cast %358 : vector<1x1x1x1x8xf32> to vector<1x8xf32>
    %360 = vector.broadcast %359 : vector<1x8xf32> to vector<5x8xf32>
    %361 = arith.addf %357, %360 : vector<5x8xf32>
    %cst_319 = arith.constant dense<0.000000e+00> : vector<5x5xf32>
    %362 = tpu.matmul %347, %354, %cst_319 {dimension_numbers = #tpu.dot_dimension_numbers<[1], [1], [0], [0], [0, 0, 1, 0], [], []>} : vector<5x8xf32>, vector<5x8xf32>, vector<5x5xf32> -> vector<5x5xf32>
    %cst_320 = arith.constant 0.353553385 : f32
    %363 = vector.broadcast %cst_320 : f32 to vector<5x5xf32>
    %364 = arith.mulf %362, %363 : vector<5x5xf32>
    %cst_321 = arith.constant dense<0xFF800000> : vector<5xf32>
    %365 = vector.multi_reduction <maximumf>, %364, %cst_321 [1] : vector<5x5xf32> to vector<5xf32>
    %366 = vector.shape_cast %365 : vector<5xf32> to vector<5x1xf32>
    %367 = vector.broadcast %366 : vector<5x1xf32> to vector<5x5xf32>
    %368 = arith.subf %364, %367 : vector<5x5xf32>
    %369 = math.exp %368 : vector<5x5xf32>
    %cst_322 = arith.constant dense<0.000000e+00> : vector<5xf32>
    %370 = vector.multi_reduction <add>, %369, %cst_322 [1] : vector<5x5xf32> to vector<5xf32>
    %371 = vector.shape_cast %370 : vector<5xf32> to vector<5x1xf32>
    %372 = tpu.reciprocal %371 {approx = true} : vector<5x1xf32> -> vector<5x1xf32>
    %373 = vector.broadcast %372 : vector<5x1xf32> to vector<5x5xf32>
    %374 = arith.mulf %369, %373 : vector<5x5xf32>
    %cst_323 = arith.constant dense<0.000000e+00> : vector<5x8xf32>
    %375 = tpu.matmul %374, %361, %cst_323 {dimension_numbers = #tpu.dot_dimension_numbers<[1], [0], [0], [1], [0, 0, 1, 1], [], []>} : vector<5x5xf32>, vector<5x8xf32>, vector<5x8xf32> -> vector<5x8xf32>
    %c1_324 = arith.constant 1 : index
    %c1_325 = arith.constant 1 : index
    %c0_326 = arith.constant 0 : index
    %c0_327 = arith.constant 0 : index
    %376 = vector.load %arg8[%c1_324, %c1_325, %c0_326, %c0_327] : memref<2x4x8x32xf32, #tpu.memory_space<vmem>>, vector<1x1x8x32xf32>
    %377 = vector.shape_cast %376 : vector<1x1x8x32xf32> to vector<8x32xf32>
    %cst_328 = arith.constant dense<0.000000e+00> : vector<5x32xf32>
    %378 = tpu.matmul %375, %377, %cst_328 {dimension_numbers = #tpu.dot_dimension_numbers<[1], [0], [0], [1], [0, 0, 1, 1], [], []>} : vector<5x8xf32>, vector<8x32xf32>, vector<5x32xf32> -> vector<5x32xf32>
    %379 = arith.addf %340, %378 : vector<5x32xf32>
    %c1_329 = arith.constant 1 : index
    %c0_330 = arith.constant 0 : index
    %c2_331 = arith.constant 2 : index
    %c0_332 = arith.constant 0 : index
    %c0_333 = arith.constant 0 : index
    %380 = vector.load %arg6[%c1_329, %c0_330, %c2_331, %c0_332, %c0_333] : memref<2x3x4x32x8xf32, #tpu.memory_space<vmem>>, vector<1x1x1x32x8xf32>
    %381 = vector.shape_cast %380 : vector<1x1x1x32x8xf32> to vector<32x8xf32>
    %cst_334 = arith.constant dense<0.000000e+00> : vector<5x8xf32>
    %382 = tpu.matmul %298, %381, %cst_334 {dimension_numbers = #tpu.dot_dimension_numbers<[1], [0], [0], [1], [0, 0, 1, 1], [], []>} : vector<5x32xf32>, vector<32x8xf32>, vector<5x8xf32> -> vector<5x8xf32>
    %c1_335 = arith.constant 1 : index
    %c0_336 = arith.constant 0 : index
    %c2_337 = arith.constant 2 : index
    %c0_338 = arith.constant 0 : index
    %c0_339 = arith.constant 0 : index
    %383 = vector.load %arg7[%c1_335, %c0_336, %c2_337, %c0_338, %c0_339] : memref<2x3x4x1x8xf32, #tpu.memory_space<vmem>>, vector<1x1x1x1x8xf32>
    %384 = vector.shape_cast %383 : vector<1x1x1x1x8xf32> to vector<1x8xf32>
    %385 = vector.broadcast %384 : vector<1x8xf32> to vector<5x8xf32>
    %386 = arith.addf %382, %385 : vector<5x8xf32>
    %c1_340 = arith.constant 1 : index
    %c1_341 = arith.constant 1 : index
    %c2_342 = arith.constant 2 : index
    %c0_343 = arith.constant 0 : index
    %c0_344 = arith.constant 0 : index
    %387 = vector.load %arg6[%c1_340, %c1_341, %c2_342, %c0_343, %c0_344] : memref<2x3x4x32x8xf32, #tpu.memory_space<vmem>>, vector<1x1x1x32x8xf32>
    %388 = vector.shape_cast %387 : vector<1x1x1x32x8xf32> to vector<32x8xf32>
    %cst_345 = arith.constant dense<0.000000e+00> : vector<5x8xf32>
    %389 = tpu.matmul %298, %388, %cst_345 {dimension_numbers = #tpu.dot_dimension_numbers<[1], [0], [0], [1], [0, 0, 1, 1], [], []>} : vector<5x32xf32>, vector<32x8xf32>, vector<5x8xf32> -> vector<5x8xf32>
    %c1_346 = arith.constant 1 : index
    %c1_347 = arith.constant 1 : index
    %c2_348 = arith.constant 2 : index
    %c0_349 = arith.constant 0 : index
    %c0_350 = arith.constant 0 : index
    %390 = vector.load %arg7[%c1_346, %c1_347, %c2_348, %c0_349, %c0_350] : memref<2x3x4x1x8xf32, #tpu.memory_space<vmem>>, vector<1x1x1x1x8xf32>
    %391 = vector.shape_cast %390 : vector<1x1x1x1x8xf32> to vector<1x8xf32>
    %392 = vector.broadcast %391 : vector<1x8xf32> to vector<5x8xf32>
    %393 = arith.addf %389, %392 : vector<5x8xf32>
    %c1_351 = arith.constant 1 : index
    %c2_352 = arith.constant 2 : index
    %c2_353 = arith.constant 2 : index
    %c0_354 = arith.constant 0 : index
    %c0_355 = arith.constant 0 : index
    %394 = vector.load %arg6[%c1_351, %c2_352, %c2_353, %c0_354, %c0_355] : memref<2x3x4x32x8xf32, #tpu.memory_space<vmem>>, vector<1x1x1x32x8xf32>
    %395 = vector.shape_cast %394 : vector<1x1x1x32x8xf32> to vector<32x8xf32>
    %cst_356 = arith.constant dense<0.000000e+00> : vector<5x8xf32>
    %396 = tpu.matmul %298, %395, %cst_356 {dimension_numbers = #tpu.dot_dimension_numbers<[1], [0], [0], [1], [0, 0, 1, 1], [], []>} : vector<5x32xf32>, vector<32x8xf32>, vector<5x8xf32> -> vector<5x8xf32>
    %c1_357 = arith.constant 1 : index
    %c2_358 = arith.constant 2 : index
    %c2_359 = arith.constant 2 : index
    %c0_360 = arith.constant 0 : index
    %c0_361 = arith.constant 0 : index
    %397 = vector.load %arg7[%c1_357, %c2_358, %c2_359, %c0_360, %c0_361] : memref<2x3x4x1x8xf32, #tpu.memory_space<vmem>>, vector<1x1x1x1x8xf32>
    %398 = vector.shape_cast %397 : vector<1x1x1x1x8xf32> to vector<1x8xf32>
    %399 = vector.broadcast %398 : vector<1x8xf32> to vector<5x8xf32>
    %400 = arith.addf %396, %399 : vector<5x8xf32>
    %cst_362 = arith.constant dense<0.000000e+00> : vector<5x5xf32>
    %401 = tpu.matmul %386, %393, %cst_362 {dimension_numbers = #tpu.dot_dimension_numbers<[1], [1], [0], [0], [0, 0, 1, 0], [], []>} : vector<5x8xf32>, vector<5x8xf32>, vector<5x5xf32> -> vector<5x5xf32>
    %cst_363 = arith.constant 0.353553385 : f32
    %402 = vector.broadcast %cst_363 : f32 to vector<5x5xf32>
    %403 = arith.mulf %401, %402 : vector<5x5xf32>
    %cst_364 = arith.constant dense<0xFF800000> : vector<5xf32>
    %404 = vector.multi_reduction <maximumf>, %403, %cst_364 [1] : vector<5x5xf32> to vector<5xf32>
    %405 = vector.shape_cast %404 : vector<5xf32> to vector<5x1xf32>
    %406 = vector.broadcast %405 : vector<5x1xf32> to vector<5x5xf32>
    %407 = arith.subf %403, %406 : vector<5x5xf32>
    %408 = math.exp %407 : vector<5x5xf32>
    %cst_365 = arith.constant dense<0.000000e+00> : vector<5xf32>
    %409 = vector.multi_reduction <add>, %408, %cst_365 [1] : vector<5x5xf32> to vector<5xf32>
    %410 = vector.shape_cast %409 : vector<5xf32> to vector<5x1xf32>
    %411 = tpu.reciprocal %410 {approx = true} : vector<5x1xf32> -> vector<5x1xf32>
    %412 = vector.broadcast %411 : vector<5x1xf32> to vector<5x5xf32>
    %413 = arith.mulf %408, %412 : vector<5x5xf32>
    %cst_366 = arith.constant dense<0.000000e+00> : vector<5x8xf32>
    %414 = tpu.matmul %413, %400, %cst_366 {dimension_numbers = #tpu.dot_dimension_numbers<[1], [0], [0], [1], [0, 0, 1, 1], [], []>} : vector<5x5xf32>, vector<5x8xf32>, vector<5x8xf32> -> vector<5x8xf32>
    %c1_367 = arith.constant 1 : index
    %c2_368 = arith.constant 2 : index
    %c0_369 = arith.constant 0 : index
    %c0_370 = arith.constant 0 : index
    %415 = vector.load %arg8[%c1_367, %c2_368, %c0_369, %c0_370] : memref<2x4x8x32xf32, #tpu.memory_space<vmem>>, vector<1x1x8x32xf32>
    %416 = vector.shape_cast %415 : vector<1x1x8x32xf32> to vector<8x32xf32>
    %cst_371 = arith.constant dense<0.000000e+00> : vector<5x32xf32>
    %417 = tpu.matmul %414, %416, %cst_371 {dimension_numbers = #tpu.dot_dimension_numbers<[1], [0], [0], [1], [0, 0, 1, 1], [], []>} : vector<5x8xf32>, vector<8x32xf32>, vector<5x32xf32> -> vector<5x32xf32>
    %418 = arith.addf %379, %417 : vector<5x32xf32>
    %c1_372 = arith.constant 1 : index
    %c0_373 = arith.constant 0 : index
    %c3_374 = arith.constant 3 : index
    %c0_375 = arith.constant 0 : index
    %c0_376 = arith.constant 0 : index
    %419 = vector.load %arg6[%c1_372, %c0_373, %c3_374, %c0_375, %c0_376] : memref<2x3x4x32x8xf32, #tpu.memory_space<vmem>>, vector<1x1x1x32x8xf32>
    %420 = vector.shape_cast %419 : vector<1x1x1x32x8xf32> to vector<32x8xf32>
    %cst_377 = arith.constant dense<0.000000e+00> : vector<5x8xf32>
    %421 = tpu.matmul %298, %420, %cst_377 {dimension_numbers = #tpu.dot_dimension_numbers<[1], [0], [0], [1], [0, 0, 1, 1], [], []>} : vector<5x32xf32>, vector<32x8xf32>, vector<5x8xf32> -> vector<5x8xf32>
    %c1_378 = arith.constant 1 : index
    %c0_379 = arith.constant 0 : index
    %c3_380 = arith.constant 3 : index
    %c0_381 = arith.constant 0 : index
    %c0_382 = arith.constant 0 : index
    %422 = vector.load %arg7[%c1_378, %c0_379, %c3_380, %c0_381, %c0_382] : memref<2x3x4x1x8xf32, #tpu.memory_space<vmem>>, vector<1x1x1x1x8xf32>
    %423 = vector.shape_cast %422 : vector<1x1x1x1x8xf32> to vector<1x8xf32>
    %424 = vector.broadcast %423 : vector<1x8xf32> to vector<5x8xf32>
    %425 = arith.addf %421, %424 : vector<5x8xf32>
    %c1_383 = arith.constant 1 : index
    %c1_384 = arith.constant 1 : index
    %c3_385 = arith.constant 3 : index
    %c0_386 = arith.constant 0 : index
    %c0_387 = arith.constant 0 : index
    %426 = vector.load %arg6[%c1_383, %c1_384, %c3_385, %c0_386, %c0_387] : memref<2x3x4x32x8xf32, #tpu.memory_space<vmem>>, vector<1x1x1x32x8xf32>
    %427 = vector.shape_cast %426 : vector<1x1x1x32x8xf32> to vector<32x8xf32>
    %cst_388 = arith.constant dense<0.000000e+00> : vector<5x8xf32>
    %428 = tpu.matmul %298, %427, %cst_388 {dimension_numbers = #tpu.dot_dimension_numbers<[1], [0], [0], [1], [0, 0, 1, 1], [], []>} : vector<5x32xf32>, vector<32x8xf32>, vector<5x8xf32> -> vector<5x8xf32>
    %c1_389 = arith.constant 1 : index
    %c1_390 = arith.constant 1 : index
    %c3_391 = arith.constant 3 : index
    %c0_392 = arith.constant 0 : index
    %c0_393 = arith.constant 0 : index
    %429 = vector.load %arg7[%c1_389, %c1_390, %c3_391, %c0_392, %c0_393] : memref<2x3x4x1x8xf32, #tpu.memory_space<vmem>>, vector<1x1x1x1x8xf32>
    %430 = vector.shape_cast %429 : vector<1x1x1x1x8xf32> to vector<1x8xf32>
    %431 = vector.broadcast %430 : vector<1x8xf32> to vector<5x8xf32>
    %432 = arith.addf %428, %431 : vector<5x8xf32>
    %c1_394 = arith.constant 1 : index
    %c2_395 = arith.constant 2 : index
    %c3_396 = arith.constant 3 : index
    %c0_397 = arith.constant 0 : index
    %c0_398 = arith.constant 0 : index
    %433 = vector.load %arg6[%c1_394, %c2_395, %c3_396, %c0_397, %c0_398] : memref<2x3x4x32x8xf32, #tpu.memory_space<vmem>>, vector<1x1x1x32x8xf32>
    %434 = vector.shape_cast %433 : vector<1x1x1x32x8xf32> to vector<32x8xf32>
    %cst_399 = arith.constant dense<0.000000e+00> : vector<5x8xf32>
    %435 = tpu.matmul %298, %434, %cst_399 {dimension_numbers = #tpu.dot_dimension_numbers<[1], [0], [0], [1], [0, 0, 1, 1], [], []>} : vector<5x32xf32>, vector<32x8xf32>, vector<5x8xf32> -> vector<5x8xf32>
    %c1_400 = arith.constant 1 : index
    %c2_401 = arith.constant 2 : index
    %c3_402 = arith.constant 3 : index
    %c0_403 = arith.constant 0 : index
    %c0_404 = arith.constant 0 : index
    %436 = vector.load %arg7[%c1_400, %c2_401, %c3_402, %c0_403, %c0_404] : memref<2x3x4x1x8xf32, #tpu.memory_space<vmem>>, vector<1x1x1x1x8xf32>
    %437 = vector.shape_cast %436 : vector<1x1x1x1x8xf32> to vector<1x8xf32>
    %438 = vector.broadcast %437 : vector<1x8xf32> to vector<5x8xf32>
    %439 = arith.addf %435, %438 : vector<5x8xf32>
    %cst_405 = arith.constant dense<0.000000e+00> : vector<5x5xf32>
    %440 = tpu.matmul %425, %432, %cst_405 {dimension_numbers = #tpu.dot_dimension_numbers<[1], [1], [0], [0], [0, 0, 1, 0], [], []>} : vector<5x8xf32>, vector<5x8xf32>, vector<5x5xf32> -> vector<5x5xf32>
    %cst_406 = arith.constant 0.353553385 : f32
    %441 = vector.broadcast %cst_406 : f32 to vector<5x5xf32>
    %442 = arith.mulf %440, %441 : vector<5x5xf32>
    %cst_407 = arith.constant dense<0xFF800000> : vector<5xf32>
    %443 = vector.multi_reduction <maximumf>, %442, %cst_407 [1] : vector<5x5xf32> to vector<5xf32>
    %444 = vector.shape_cast %443 : vector<5xf32> to vector<5x1xf32>
    %445 = vector.broadcast %444 : vector<5x1xf32> to vector<5x5xf32>
    %446 = arith.subf %442, %445 : vector<5x5xf32>
    %447 = math.exp %446 : vector<5x5xf32>
    %cst_408 = arith.constant dense<0.000000e+00> : vector<5xf32>
    %448 = vector.multi_reduction <add>, %447, %cst_408 [1] : vector<5x5xf32> to vector<5xf32>
    %449 = vector.shape_cast %448 : vector<5xf32> to vector<5x1xf32>
    %450 = tpu.reciprocal %449 {approx = true} : vector<5x1xf32> -> vector<5x1xf32>
    %451 = vector.broadcast %450 : vector<5x1xf32> to vector<5x5xf32>
    %452 = arith.mulf %447, %451 : vector<5x5xf32>
    %cst_409 = arith.constant dense<0.000000e+00> : vector<5x8xf32>
    %453 = tpu.matmul %452, %439, %cst_409 {dimension_numbers = #tpu.dot_dimension_numbers<[1], [0], [0], [1], [0, 0, 1, 1], [], []>} : vector<5x5xf32>, vector<5x8xf32>, vector<5x8xf32> -> vector<5x8xf32>
    %c1_410 = arith.constant 1 : index
    %c3_411 = arith.constant 3 : index
    %c0_412 = arith.constant 0 : index
    %c0_413 = arith.constant 0 : index
    %454 = vector.load %arg8[%c1_410, %c3_411, %c0_412, %c0_413] : memref<2x4x8x32xf32, #tpu.memory_space<vmem>>, vector<1x1x8x32xf32>
    %455 = vector.shape_cast %454 : vector<1x1x8x32xf32> to vector<8x32xf32>
    %cst_414 = arith.constant dense<0.000000e+00> : vector<5x32xf32>
    %456 = tpu.matmul %453, %455, %cst_414 {dimension_numbers = #tpu.dot_dimension_numbers<[1], [0], [0], [1], [0, 0, 1, 1], [], []>} : vector<5x8xf32>, vector<8x32xf32>, vector<5x32xf32> -> vector<5x32xf32>
    %457 = arith.addf %418, %456 : vector<5x32xf32>
    %458 = arith.addf %272, %457 : vector<5x32xf32>
    %c1_415 = arith.constant 1 : index
    %c0_416 = arith.constant 0 : index
    %c0_417 = arith.constant 0 : index
    %459 = vector.load %arg10[%c1_415, %c0_416, %c0_417] : memref<2x1x32xf32, #tpu.memory_space<vmem>>, vector<1x1x32xf32>
    %460 = vector.shape_cast %459 : vector<1x1x32xf32> to vector<1x32xf32>
    %c1_418 = arith.constant 1 : index
    %c0_419 = arith.constant 0 : index
    %c0_420 = arith.constant 0 : index
    %461 = vector.load %arg11[%c1_418, %c0_419, %c0_420] : memref<2x1x32xf32, #tpu.memory_space<vmem>>, vector<1x1x32xf32>
    %462 = vector.shape_cast %461 : vector<1x1x32xf32> to vector<1x32xf32>
    %cst_421 = arith.constant dense<0.000000e+00> : vector<5xf32>
    %463 = vector.multi_reduction <add>, %458, %cst_421 [1] : vector<5x32xf32> to vector<5xf32>
    %464 = vector.shape_cast %463 : vector<5xf32> to vector<5x1xf32>
    %cst_422 = arith.constant 3.200000e+01 : f32
    %465 = vector.broadcast %cst_422 : f32 to vector<5x1xf32>
    %466 = arith.divf %464, %465 : vector<5x1xf32>
    %467 = vector.broadcast %466 : vector<5x1xf32> to vector<5x32xf32>
    %468 = arith.subf %458, %467 : vector<5x32xf32>
    %469 = arith.mulf %468, %468 : vector<5x32xf32>
    %cst_423 = arith.constant dense<0.000000e+00> : vector<5xf32>
    %470 = vector.multi_reduction <add>, %469, %cst_423 [1] : vector<5x32xf32> to vector<5xf32>
    %471 = vector.shape_cast %470 : vector<5xf32> to vector<5x1xf32>
    %cst_424 = arith.constant 3.200000e+01 : f32
    %472 = vector.broadcast %cst_424 : f32 to vector<5x1xf32>
    %473 = arith.divf %471, %472 : vector<5x1xf32>
    %474 = vector.broadcast %466 : vector<5x1xf32> to vector<5x32xf32>
    %475 = arith.subf %458, %474 : vector<5x32xf32>
    %cst_425 = arith.constant 9.99999997E-7 : f32
    %476 = vector.broadcast %cst_425 : f32 to vector<5x1xf32>
    %477 = arith.addf %473, %476 : vector<5x1xf32>
    %478 = math.rsqrt %477 : vector<5x1xf32>
    %479 = vector.broadcast %478 : vector<5x1xf32> to vector<5x32xf32>
    %480 = arith.mulf %475, %479 : vector<5x32xf32>
    %481 = vector.broadcast %460 : vector<1x32xf32> to vector<5x32xf32>
    %482 = arith.mulf %480, %481 : vector<5x32xf32>
    %483 = vector.broadcast %462 : vector<1x32xf32> to vector<5x32xf32>
    %484 = arith.addf %482, %483 : vector<5x32xf32>
    %c1_426 = arith.constant 1 : index
    %c0_427 = arith.constant 0 : index
    %c0_428 = arith.constant 0 : index
    %485 = vector.load %arg12[%c1_426, %c0_427, %c0_428] : memref<2x32x64xf32, #tpu.memory_space<vmem>>, vector<1x32x64xf32>
    %486 = vector.shape_cast %485 : vector<1x32x64xf32> to vector<32x64xf32>
    %cst_429 = arith.constant dense<0.000000e+00> : vector<5x64xf32>
    %487 = tpu.matmul %484, %486, %cst_429 {dimension_numbers = #tpu.dot_dimension_numbers<[1], [0], [0], [1], [0, 0, 1, 1], [], []>} : vector<5x32xf32>, vector<32x64xf32>, vector<5x64xf32> -> vector<5x64xf32>
    %c1_430 = arith.constant 1 : index
    %c0_431 = arith.constant 0 : index
    %c0_432 = arith.constant 0 : index
    %488 = vector.load %arg13[%c1_430, %c0_431, %c0_432] : memref<2x1x64xf32, #tpu.memory_space<vmem>>, vector<1x1x64xf32>
    %489 = vector.shape_cast %488 : vector<1x1x64xf32> to vector<1x64xf32>
    %490 = vector.broadcast %489 : vector<1x64xf32> to vector<5x64xf32>
    %491 = arith.addf %487, %490 : vector<5x64xf32>
    %cst_433 = arith.constant 5.000000e-01 : f32
    %492 = vector.broadcast %cst_433 : f32 to vector<5x64xf32>
    %493 = arith.mulf %492, %491 : vector<5x64xf32>
    %cst_434 = arith.constant 0.707106769 : f32
    %494 = vector.broadcast %cst_434 : f32 to vector<5x64xf32>
    %495 = arith.mulf %491, %494 : vector<5x64xf32>
    %cst_435 = arith.constant 0.000000e+00 : f32
    %496 = vector.broadcast %cst_435 : f32 to vector<5x64xf32>
    %497 = arith.cmpf oge, %495, %496 : vector<5x64xf32>
    %cst_436 = arith.constant 1.000000e+00 : f32
    %cst_437 = arith.constant -1.000000e+00 : f32
    %498 = vector.broadcast %cst_436 : f32 to vector<5x64xf32>
    %499 = vector.broadcast %cst_437 : f32 to vector<5x64xf32>
    %500 = arith.select %497, %498, %499 : vector<5x64xi1>, vector<5x64xf32>
    %501 = arith.mulf %495, %500 : vector<5x64xf32>
    %cst_438 = arith.constant 0.327591091 : f32
    %502 = vector.broadcast %cst_438 : f32 to vector<5x64xf32>
    %503 = arith.mulf %502, %501 : vector<5x64xf32>
    %cst_439 = arith.constant 1.000000e+00 : f32
    %504 = vector.broadcast %cst_439 : f32 to vector<5x64xf32>
    %505 = arith.addf %504, %503 : vector<5x64xf32>
    %506 = tpu.reciprocal %505 : vector<5x64xf32> -> vector<5x64xf32>
    %cst_440 = arith.constant 1.06140542 : f32
    %507 = vector.broadcast %cst_440 : f32 to vector<5x64xf32>
    %508 = arith.mulf %507, %506 : vector<5x64xf32>
    %cst_441 = arith.constant 1.45315206 : f32
    %509 = vector.broadcast %cst_441 : f32 to vector<5x64xf32>
    %510 = arith.subf %508, %509 : vector<5x64xf32>
    %511 = arith.mulf %510, %506 : vector<5x64xf32>
    %cst_442 = arith.constant 1.42141378 : f32
    %512 = vector.broadcast %cst_442 : f32 to vector<5x64xf32>
    %513 = arith.addf %511, %512 : vector<5x64xf32>
    %514 = arith.mulf %513, %506 : vector<5x64xf32>
    %cst_443 = arith.constant 0.284496725 : f32
    %515 = vector.broadcast %cst_443 : f32 to vector<5x64xf32>
    %516 = arith.subf %514, %515 : vector<5x64xf32>
    %517 = arith.mulf %516, %506 : vector<5x64xf32>
    %cst_444 = arith.constant 0.254829586 : f32
    %518 = vector.broadcast %cst_444 : f32 to vector<5x64xf32>
    %519 = arith.addf %517, %518 : vector<5x64xf32>
    %520 = arith.mulf %519, %506 : vector<5x64xf32>
    %cst_445 = arith.constant 0.000000e+00 : f32
    %521 = vector.broadcast %cst_445 : f32 to vector<5x64xf32>
    %522 = arith.subf %521, %501 : vector<5x64xf32>
    %523 = arith.mulf %522, %501 : vector<5x64xf32>
    %524 = math.exp %523 : vector<5x64xf32>
    %525 = arith.mulf %520, %524 : vector<5x64xf32>
    %cst_446 = arith.constant 1.000000e+00 : f32
    %526 = vector.broadcast %cst_446 : f32 to vector<5x64xf32>
    %527 = arith.subf %526, %525 : vector<5x64xf32>
    %528 = arith.mulf %500, %527 : vector<5x64xf32>
    %cst_447 = arith.constant 1.000000e+00 : f32
    %529 = vector.broadcast %cst_447 : f32 to vector<5x64xf32>
    %530 = arith.addf %529, %528 : vector<5x64xf32>
    %531 = arith.mulf %493, %530 : vector<5x64xf32>
    %c1_448 = arith.constant 1 : index
    %c0_449 = arith.constant 0 : index
    %c0_450 = arith.constant 0 : index
    %532 = vector.load %arg14[%c1_448, %c0_449, %c0_450] : memref<2x64x32xf32, #tpu.memory_space<vmem>>, vector<1x64x32xf32>
    %533 = vector.shape_cast %532 : vector<1x64x32xf32> to vector<64x32xf32>
    %cst_451 = arith.constant dense<0.000000e+00> : vector<5x32xf32>
    %534 = tpu.matmul %531, %533, %cst_451 {dimension_numbers = #tpu.dot_dimension_numbers<[1], [0], [0], [1], [0, 0, 1, 1], [], []>} : vector<5x64xf32>, vector<64x32xf32>, vector<5x32xf32> -> vector<5x32xf32>
    %c1_452 = arith.constant 1 : index
    %c0_453 = arith.constant 0 : index
    %c0_454 = arith.constant 0 : index
    %535 = vector.load %arg15[%c1_452, %c0_453, %c0_454] : memref<2x1x32xf32, #tpu.memory_space<vmem>>, vector<1x1x32xf32>
    %536 = vector.shape_cast %535 : vector<1x1x32xf32> to vector<1x32xf32>
    %537 = vector.broadcast %536 : vector<1x32xf32> to vector<5x32xf32>
    %538 = arith.addf %534, %537 : vector<5x32xf32>
    %539 = arith.addf %458, %538 : vector<5x32xf32>
    %540 = vector.extract_strided_slice %539 {offsets = [0, 0], sizes = [1, 32], strides = [1, 1]} : vector<5x32xf32> to vector<1x32xf32>
    %c0_455 = arith.constant 0 : index
    %c0_456 = arith.constant 0 : index
    %541 = vector.load %arg16[%c0_455, %c0_456] : memref<1x32xf32, #tpu.memory_space<vmem>>, vector<1x32xf32>
    %c0_457 = arith.constant 0 : index
    %c0_458 = arith.constant 0 : index
    %542 = vector.load %arg17[%c0_457, %c0_458] : memref<1x32xf32, #tpu.memory_space<vmem>>, vector<1x32xf32>
    %cst_459 = arith.constant dense<0.000000e+00> : vector<1xf32>
    %543 = vector.multi_reduction <add>, %540, %cst_459 [1] : vector<1x32xf32> to vector<1xf32>
    %544 = vector.shape_cast %543 : vector<1xf32> to vector<1x1xf32>
    %cst_460 = arith.constant 3.200000e+01 : f32
    %545 = vector.broadcast %cst_460 : f32 to vector<1x1xf32>
    %546 = arith.divf %544, %545 : vector<1x1xf32>
    %547 = vector.broadcast %546 : vector<1x1xf32> to vector<1x32xf32>
    %548 = arith.subf %540, %547 : vector<1x32xf32>
    %549 = arith.mulf %548, %548 : vector<1x32xf32>
    %cst_461 = arith.constant dense<0.000000e+00> : vector<1xf32>
    %550 = vector.multi_reduction <add>, %549, %cst_461 [1] : vector<1x32xf32> to vector<1xf32>
    %551 = vector.shape_cast %550 : vector<1xf32> to vector<1x1xf32>
    %cst_462 = arith.constant 3.200000e+01 : f32
    %552 = vector.broadcast %cst_462 : f32 to vector<1x1xf32>
    %553 = arith.divf %551, %552 : vector<1x1xf32>
    %554 = vector.broadcast %546 : vector<1x1xf32> to vector<1x32xf32>
    %555 = arith.subf %540, %554 : vector<1x32xf32>
    %cst_463 = arith.constant 9.99999997E-7 : f32
    %556 = vector.broadcast %cst_463 : f32 to vector<1x1xf32>
    %557 = arith.addf %553, %556 : vector<1x1xf32>
    %558 = math.rsqrt %557 : vector<1x1xf32>
    %559 = vector.broadcast %558 : vector<1x1xf32> to vector<1x32xf32>
    %560 = arith.mulf %555, %559 : vector<1x32xf32>
    %561 = arith.mulf %560, %541 : vector<1x32xf32>
    %562 = arith.addf %561, %542 : vector<1x32xf32>
    %c0_464 = arith.constant 0 : index
    %c0_465 = arith.constant 0 : index
    %563 = vector.load %arg18[%c0_464, %c0_465] : memref<32x16xf32, #tpu.memory_space<vmem>>, vector<32x16xf32>
    %cst_466 = arith.constant dense<0.000000e+00> : vector<1x16xf32>
    %564 = tpu.matmul %562, %563, %cst_466 {dimension_numbers = #tpu.dot_dimension_numbers<[1], [0], [0], [1], [0, 0, 1, 1], [], []>} : vector<1x32xf32>, vector<32x16xf32>, vector<1x16xf32> -> vector<1x16xf32>
    %c0_467 = arith.constant 0 : index
    %c0_468 = arith.constant 0 : index
    %565 = vector.load %arg19[%c0_467, %c0_468] : memref<1x16xf32, #tpu.memory_space<vmem>>, vector<1x16xf32>
    %566 = arith.addf %564, %565 : vector<1x16xf32>
    %c0_469 = arith.constant 0 : index
    %c0_470 = arith.constant 0 : index
    %567 = vector.load %arg20[%c0_469, %c0_470] : memref<16x3xf32, #tpu.memory_space<vmem>>, vector<16x3xf32>
    %cst_471 = arith.constant dense<0.000000e+00> : vector<1x3xf32>
    %568 = tpu.matmul %566, %567, %cst_471 {dimension_numbers = #tpu.dot_dimension_numbers<[1], [0], [0], [1], [0, 0, 1, 1], [], []>} : vector<1x16xf32>, vector<16x3xf32>, vector<1x3xf32> -> vector<1x3xf32>
    %c0_472 = arith.constant 0 : index
    %c0_473 = arith.constant 0 : index
    %569 = vector.load %arg21[%c0_472, %c0_473] : memref<1x3xf32, #tpu.memory_space<vmem>>, vector<1x3xf32>
    %570 = arith.addf %568, %569 : vector<1x3xf32>
    %c0_474 = arith.constant 0 : index
    %c0_475 = arith.constant 0 : index
    %c0_476 = arith.constant 0 : index
    %571 = vector.load %arg22[%c0_474, %c0_475, %c0_476] : memref<1x1x3xf32, #tpu.memory_space<vmem>>, vector<1x1x3xf32>
    %572 = vector.shape_cast %571 : vector<1x1x3xf32> to vector<1x3xf32>
    %573 = vector.shape_cast %570 : vector<1x3xf32> to vector<1x1x3xf32>
    tpu.vector_store %arg22[%c0_474, %c0_475, %c0_476], %573 {strides = array<i32>} : memref<1x1x3xf32, #tpu.memory_space<vmem>>, vector<1x1x3xf32>,
    return
  }
  func.func @transform_0(%arg0: i32) -> (i32, i32, i32) {
    %c0_i32 = arith.constant 0 : i32
    %c0_i32_0 = arith.constant 0 : i32
    %c0_i32_1 = arith.constant 0 : i32
    return %arg0, %c0_i32, %c0_i32_0 : i32, i32, i32
  }
  func.func @transform_1(%arg0: i32) -> (i32, i32) {
    %c0_i32 = arith.constant 0 : i32
    %c0_i32_0 = arith.constant 0 : i32
    %c0_i32_1 = arith.constant 0 : i32
    return %c0_i32, %c0_i32_0 : i32, i32
  }
  func.func @transform_2(%arg0: i32) -> (i32, i32) {
    %c0_i32 = arith.constant 0 : i32
    %c0_i32_0 = arith.constant 0 : i32
    %c0_i32_1 = arith.constant 0 : i32
    return %c0_i32, %c0_i32_0 : i32, i32
  }
  func.func @transform_3(%arg0: i32) -> (i32, i32, i32) {
    %c0_i32 = arith.constant 0 : i32
    %c0_i32_0 = arith.constant 0 : i32
    %c0_i32_1 = arith.constant 0 : i32
    %c0_i32_2 = arith.constant 0 : i32
    return %c0_i32, %c0_i32_0, %c0_i32_1 : i32, i32, i32
  }
  func.func @transform_4(%arg0: i32) -> (i32, i32, i32) {
    %c0_i32 = arith.constant 0 : i32
    %c0_i32_0 = arith.constant 0 : i32
    %c0_i32_1 = arith.constant 0 : i32
    %c0_i32_2 = arith.constant 0 : i32
    return %c0_i32, %c0_i32_0, %c0_i32_1 : i32, i32, i32
  }
  func.func @transform_5(%arg0: i32) -> (i32, i32, i32, i32, i32) {
    %c0_i32 = arith.constant 0 : i32
    %c0_i32_0 = arith.constant 0 : i32
    %c0_i32_1 = arith.constant 0 : i32
    %c0_i32_2 = arith.constant 0 : i32
    %c0_i32_3 = arith.constant 0 : i32
    %c0_i32_4 = arith.constant 0 : i32
    return %c0_i32, %c0_i32_0, %c0_i32_1, %c0_i32_2, %c0_i32_3 : i32, i32, i32, i32, i32
  }
  func.func @transform_6(%arg0: i32) -> (i32, i32, i32, i32, i32) {
    %c0_i32 = arith.constant 0 : i32
    %c0_i32_0 = arith.constant 0 : i32
    %c0_i32_1 = arith.constant 0 : i32
    %c0_i32_2 = arith.constant 0 : i32
    %c0_i32_3 = arith.constant 0 : i32
    %c0_i32_4 = arith.constant 0 : i32
    return %c0_i32, %c0_i32_0, %c0_i32_1, %c0_i32_2, %c0_i32_3 : i32, i32, i32, i32, i32
  }
  func.func @transform_7(%arg0: i32) -> (i32, i32, i32, i32) {
    %c0_i32 = arith.constant 0 : i32
    %c0_i32_0 = arith.constant 0 : i32
    %c0_i32_1 = arith.constant 0 : i32
    %c0_i32_2 = arith.constant 0 : i32
    %c0_i32_3 = arith.constant 0 : i32
    return %c0_i32, %c0_i32_0, %c0_i32_1, %c0_i32_2 : i32, i32, i32, i32
  }
  func.func @transform_8(%arg0: i32) -> (i32, i32, i32) {
    %c0_i32 = arith.constant 0 : i32
    %c0_i32_0 = arith.constant 0 : i32
    %c0_i32_1 = arith.constant 0 : i32
    %c0_i32_2 = arith.constant 0 : i32
    return %c0_i32, %c0_i32_0, %c0_i32_1 : i32, i32, i32
  }
  func.func @transform_9(%arg0: i32) -> (i32, i32, i32) {
    %c0_i32 = arith.constant 0 : i32
    %c0_i32_0 = arith.constant 0 : i32
    %c0_i32_1 = arith.constant 0 : i32
    %c0_i32_2 = arith.constant 0 : i32
    return %c0_i32, %c0_i32_0, %c0_i32_1 : i32, i32, i32
  }
  func.func @transform_10(%arg0: i32) -> (i32, i32, i32) {
    %c0_i32 = arith.constant 0 : i32
    %c0_i32_0 = arith.constant 0 : i32
    %c0_i32_1 = arith.constant 0 : i32
    %c0_i32_2 = arith.constant 0 : i32
    return %c0_i32, %c0_i32_0, %c0_i32_1 : i32, i32, i32
  }
  func.func @transform_11(%arg0: i32) -> (i32, i32, i32) {
    %c0_i32 = arith.constant 0 : i32
    %c0_i32_0 = arith.constant 0 : i32
    %c0_i32_1 = arith.constant 0 : i32
    %c0_i32_2 = arith.constant 0 : i32
    return %c0_i32, %c0_i32_0, %c0_i32_1 : i32, i32, i32
  }
  func.func @transform_12(%arg0: i32) -> (i32, i32, i32) {
    %c0_i32 = arith.constant 0 : i32
    %c0_i32_0 = arith.constant 0 : i32
    %c0_i32_1 = arith.constant 0 : i32
    %c0_i32_2 = arith.constant 0 : i32
    return %c0_i32, %c0_i32_0, %c0_i32_1 : i32, i32, i32
  }
  func.func @transform_13(%arg0: i32) -> (i32, i32, i32) {
    %c0_i32 = arith.constant 0 : i32
    %c0_i32_0 = arith.constant 0 : i32
    %c0_i32_1 = arith.constant 0 : i32
    %c0_i32_2 = arith.constant 0 : i32
    return %c0_i32, %c0_i32_0, %c0_i32_1 : i32, i32, i32
  }
  func.func @transform_14(%arg0: i32) -> (i32, i32, i32) {
    %c0_i32 = arith.constant 0 : i32
    %c0_i32_0 = arith.constant 0 : i32
    %c0_i32_1 = arith.constant 0 : i32
    %c0_i32_2 = arith.constant 0 : i32
    return %c0_i32, %c0_i32_0, %c0_i32_1 : i32, i32, i32
  }
  func.func @transform_15(%arg0: i32) -> (i32, i32) {
    %c0_i32 = arith.constant 0 : i32
    %c0_i32_0 = arith.constant 0 : i32
    %c0_i32_1 = arith.constant 0 : i32
    return %c0_i32, %c0_i32_0 : i32, i32
  }
  func.func @transform_16(%arg0: i32) -> (i32, i32) {
    %c0_i32 = arith.constant 0 : i32
    %c0_i32_0 = arith.constant 0 : i32
    %c0_i32_1 = arith.constant 0 : i32
    return %c0_i32, %c0_i32_0 : i32, i32
  }
  func.func @transform_17(%arg0: i32) -> (i32, i32) {
    %c0_i32 = arith.constant 0 : i32
    %c0_i32_0 = arith.constant 0 : i32
    %c0_i32_1 = arith.constant 0 : i32
    return %c0_i32, %c0_i32_0 : i32, i32
  }
  func.func @transform_18(%arg0: i32) -> (i32, i32) {
    %c0_i32 = arith.constant 0 : i32
    %c0_i32_0 = arith.constant 0 : i32
    %c0_i32_1 = arith.constant 0 : i32
    return %c0_i32, %c0_i32_0 : i32, i32
  }
  func.func @transform_19(%arg0: i32) -> (i32, i32) {
    %c0_i32 = arith.constant 0 : i32
    %c0_i32_0 = arith.constant 0 : i32
    %c0_i32_1 = arith.constant 0 : i32
    return %c0_i32, %c0_i32_0 : i32, i32
  }
  func.func @transform_20(%arg0: i32) -> (i32, i32) {
    %c0_i32 = arith.constant 0 : i32
    %c0_i32_0 = arith.constant 0 : i32
    %c0_i32_1 = arith.constant 0 : i32
    return %c0_i32, %c0_i32_0 : i32, i32
  }
  func.func @transform_21(%arg0: i32) -> (i32, i32, i32) {
    %c0_i32 = arith.constant 0 : i32
    %c0_i32_0 = arith.constant 0 : i32
    %c0_i32_1 = arith.constant 0 : i32
    return %arg0, %c0_i32, %c0_i32_0 : i32, i32, i32
  }
}

</mosaic_0001>

<bundles_post_ra>
// kernel: vit_classifier_forward.1
= control target key start
LH: loop header
LB: loop body
LE: loop exit
PB: predicated region body
PF: predicated region fallthrough
CT: control target
= control target key end

     0   :  { %s8311_s0 = inlined_call_operand.vmem [shape: f32[2,5,768], index: 0, kind: input, shape index: {}]   ;;  %s8312_s1 = inlined_call_operand.vmem [shape: f32[5,32], index: 1, kind: input, shape index: {}]   ;;  %s8313_s2 = inlined_call_operand.vmem [shape: f32[768,32], index: 2, kind: input, shape index: {}]   ;;  %s8314_s3 = inlined_call_operand.vmem [shape: f32[2,1,32], index: 3, kind: input, shape index: {}]   ;;  %s8315_s4 = inlined_call_operand.vmem [shape: f32[2,1,32], index: 4, kind: input, shape index: {}]   ;;  %s8316_s5 = inlined_call_operand.vmem [shape: f32[2,3,4,32,8], index: 5, kind: input, shape index: {}]   ;;  %s8317_s6 = inlined_call_operand.vmem [shape: f32[2,3,4,1,8], index: 6, kind: input, shape index: {}]   ;;  %s8318_s7 = inlined_call_operand.vmem [shape: f32[2,4,8,32], index: 7, kind: input, shape index: {}]   ;;  %s8319_s8 = inlined_call_operand.vmem [shape: f32[2,1,32], index: 8, kind: input, shape index: {}]   ;;  %s8320_s9 = inlined_call_operand.vmem [shape: f32[2,1,32], index: 9, kind: input, shape index: {}]   ;;  %s8321_s10 = inlined_call_operand.vmem [shape: f32[2,1,32], index: 10, kind: input, shape index: {}]   ;;  %s8322_s11 = inlined_call_operand.vmem [shape: f32[2,32,64], index: 11, kind: input, shape index: {}]   ;;  %s8323_s12 = inlined_call_operand.vmem [shape: f32[2,1,64], index: 12, kind: input, shape index: {}]   ;;  %s8324_s13 = inlined_call_operand.vmem [shape: f32[2,64,32], index: 13, kind: input, shape index: {}]   ;;  %s8325_s14 = inlined_call_operand.vmem [shape: f32[2,1,32], index: 14, kind: input, shape index: {}]   ;;  %s8326_s15 = inlined_call_operand.vmem [shape: f32[1,32], index: 15, kind: input, shape index: {}]   ;;  %s8327_s16 = inlined_call_operand.vmem [shape: f32[1,32], index: 16, kind: input, shape index: {}]   ;;  %s8328_s17 = inlined_call_operand.vmem [shape: f32[32,16], index: 17, kind: input, shape index: {}]   ;;  %s8329_s18 = inlined_call_operand.vmem [shape: f32[1,16], index: 18, kind: input, shape index: {}]   ;;  %s8330_s19 = inlined_call_operand.vmem [shape: f32[16,3], index: 19, kind: input, shape index: {}]   ;;  %s8331_s20 = inlined_call_operand.vmem [shape: f32[1,3], index: 20, kind: input, shape index: {}]   ;;  %s8332_s21 = inlined_call_operand.hbm [shape: f32[2,1,3], index: 21, kind: output, shape index: {}]  }
   0x1   :  { %8346 = sst [smem:[#allocation11_spill]] %s8311_s0 }
   0x2   :  { %8347 = sst [smem:[#allocation12_spill]] %s8312_s1 }
   0x3   :  { %8348 = sst [smem:[#allocation13_spill]] %s8313_s2 }
   0x4   :  { %8349 = sst [smem:[#allocation14_spill]] %s8314_s3 }
   0x5   :  { %8350 = sst [smem:[#allocation15_spill]] %s8315_s4 }
   0x6   :  { %8351 = sst [smem:[#allocation16_spill]] %s8316_s5 }
   0x7   :  { %8352 = sst [smem:[#allocation17_spill]] %s8317_s6 }
   0x8   :  { %8353 = sst [smem:[#allocation18_spill]] %s8331_s20 }
   0x9   :  { %8354 = sst [smem:[#allocation19_spill]] %s8332_s21 }
   0xa   :  { %26 = vsyncpa [#allocation3], 0 }
   0xb   :  { %28 = vsyncpa [#allocation3 + $0x1], 0  ;;  %s6973_s2 = smov 0   ;;  %s6975_s25 = smov 0  }
   0xc   :  { %s6977_s26 = smov 0   ;;  %s6979_s27 = smov 0  }
   0xd LB: > { %8355 = sst [smem:[#allocation5_spill]] %s6845_s2  ;;  %s6994_s3 = sadd.s32 4294967295, %s6857_s27   ;;  %s6857_s27 = sphi %s6979_s27, %s8377_s27   ;;  %s6853_s26 = sphi %s6977_s26, %s8379_s26   ;;  %s6849_s25 = sphi %s6975_s25, %s8381_s25   ;;  %s6845_s2 = sphi %s6973_s2, %s8380_s2  }
   0xe   : > { %8356 = sst [smem:[#allocation6_spill]] %s6853_s26  ;;  %s5672_s28 = sadd.s32 4294967294, %s6857_s27  }
   0xf   : > { %8357 = sst [smem:[#allocation7_spill]] %s6857_s27  ;;  %s6998_s29 = sadd.s32 1, %s6857_s27  }
  0x10   : > { %8358 = sst [smem:[#allocation8_spill]] %s6998_s29  ;;  %s487_s0 = sadd.s32 1, %s6853_s26 }
  0x11   : > { %s484_s4 = ssub.s32 %s6857_s27, %s6998_s29  ;;  %p497_p0 = scmp.ne.s32.totalorder %s6853_s26, %s6849_s25 }
  0x12   : > { %p485_p1 = scmp.eq.s32.totalorder %s484_s4, 0  ;;  %p498_p2 = scmp.eq.s32.totalorder %s6994_s3, 1 }
  0x13   : > { %p503_p3 = scmp.ne.s32.totalorder %s6849_s25, %s6845_s2  ;;  %p504_p4 = scmp.eq.s32.totalorder %s5672_s28, 1 }
  0x14   : > { %s7009_s30 = scalar_select %p485_p1, %s6853_s26, %s487_s0  }
  0x15   : > { %p7011_p5 = por %p498_p2, %p497_p0  ;;  %p7015_p6 = por %p504_p4, %p503_p3 }
  0x16   : > { %8359 = sst [smem:[#allocation9_spill]] %s7009_s30  ;;  %p5675_p7 = scmp.ge.s32.totalorder %s6857_s27, 1 }
  0x17   : > { %s8361_s22 = scalar_select %p7015_p6, 1, 0 }
  0x18   : > { %p590_p8 = scmp.lt.s32.totalorder %s6857_s27, 3 }
  0x19   : > { %8362 = sst [smem:[#allocation10_spill]] %s8361_s22 }
  0x1a   : > { %p591_p9 = pnand %p5675_p7, %p590_p8 }
  0x1b   : > { %s8363_s24 = sld [smem:[#allocation13_spill]] (!%p591_p9)  ;;  %p649_p10 = scmp.lt.s32.totalorder (!%p591_p9), %s6994_s3, 1 }
  0x1c   : > { %594 = sbr.rel (%p591_p9) target bundleno = 10772 (0x2a14), region = 104  ;;  %s8364_s21 = sld [smem:[#allocation11_spill]] (!%p591_p9) }
  0x1d   : > { %s8366_s27 = sld [smem:[#allocation16_spill]] (!%p591_p9)  ;;  %s647_s2 = sand.u32 (!%p591_p9), 1, %s6849_s25  }
  0x1e   : > { %s8371_s6 = sld [smem:[#allocation17_spill]] (!%p591_p9)  ;;  %s648_s30 = scalar_lea.vmem (!%p591_p9), [#allocation2], %s647_s2 }
  0x1f   : > { %s5617_s28 = sshll.u32 (!%p591_p9), %s648_s30, 4  ;;  %s5618_s28 = int_to_ptr.vmem [resolvable:$true] %s5617_s28 }
  0x21   : > { %v691_v0 = vld [vmem:[%s8363_s24 + $0xf8] sm:$0xff]  ;;  %v690_v2 = vld [vmem:[%s8363_s24 + $0xf0] sm:$0xff]  ;;  %v689_v6 = vld [vmem:[%s8363_s24 + $0xe8] sm:$0xff]  ;;  %s7142_s1 = scalar_select %p649_p10, %s6994_s3, 1  ;;  %vm969_vm0 = vcmask 258048   ;;  %vm6860_vm1 = vmmov 0  }
  0x22   : > { %v675_v1 = vld [vmem:[%s8363_s24 + $0x78] sm:$0xff]  ;;  %5933 = vmatprep.subr.mxu0 %v691_v0  ;;  %v674_v4 = vld [vmem:[%s8363_s24 + $0x70] sm:$0xff]  ;;  %v673_v8 = vld [vmem:[%s8363_s24 + $0x68] sm:$0xff]  ;;  %vm1010_vm2 = vcmask 261120   ;;  %vm1250_vm3 = vcmask 64512   ;;  %vm1344_vm4 = vcmask 1044480  }
  0x23   : > { %v723_v3 = vld [vmem:[%s8363_s24 + $0x1f8] sm:$0xff]  ;;  %5934 = vmatpush3.msra.mxu0 %v675_v1  ;;  %v722_v7 = vld [vmem:[%s8363_s24 + $0x1f0] sm:$0xff]  ;;  %v721_v10 = vld [vmem:[%s8363_s24 + $0x1e8] sm:$0xff]  ;;  %s6704_s22 = smul.u32 48, %s7142_s1  ;;  %s8365_s1 = sld [smem:[#allocation12_spill]]  ;;  %vm1328_vm5 = vcmask 36864  }
  0x24   : > { %v707_v5 = vld [vmem:[%s8363_s24 + $0x178] sm:$0xff]  ;;  %5968 = vmatprep.subr.mxu1 %v723_v3  ;;  %5935 = vmatprep.subr.mxu0 %v690_v2  ;;  %v706_v9 = vld [vmem:[%s8363_s24 + $0x170] sm:$0xff]  ;;  %v688_v11 = vld [vmem:[%s8363_s24 + $0xe0] sm:$0xff]  ;;  %s8367_s0 = smov %s8366_s27  ;;  %vm1340_vm6 = vcmask 39936   ;;  %vm3121_vm8 = vcmask 523264   ;;  %vm5431_vm10 = vcmask 253952  }
  0x25   : > { %5969 = vmatpush3.msra.mxu1 %v707_v5  ;;  %5936 = vmatpush3.msra.mxu0 %v674_v4  ;;  %v705_v12 = vld [vmem:[%s8363_s24 + $0x168] sm:$0xff]  ;;  %v672_v13 = vld [vmem:[%s8363_s24 + $0x60] sm:$0xff]  ;;  %v687_v15 = vld [vmem:[%s8363_s24 + $0xd8] sm:$0xff]  ;;  %s7196_s20 = scalar_lea.vmem %s8364_s21, %s6704_s22  ;;  %vm5528_vm11 = vcmask 130048   ;;  %s8372_s21 = sld [smem:[#allocation18_spill]]  ;;  %vm5602_vm12 = vcmask 16384  }
  0x26   : > { %5970 = vmatprep.subr.mxu1 %v722_v7  ;;  %5937 = vmatprep.subr.mxu0 %v689_v6  ;;  %v720_v14 = vld [vmem:[%s8363_s24 + $0x1e0] sm:$0xff]  ;;  %v671_v17 = vld [vmem:[%s8363_s24 + $0x58] sm:$0xff]  ;;  %v686_v19 = vld [vmem:[%s8363_s24 + $0xd0] sm:$0xff]  ;;  %s5930_s22 = sshll.u32 %s6994_s3, 4  ;;  %s6862_s3 = smov [#allocation2]  }
  0x27   : > { %5971 = vmatpush3.msra.mxu1 %v706_v9  ;;  %5938 = vmatpush3.msra.mxu0 %v673_v8  ;;  %v704_v16 = vld [vmem:[%s8363_s24 + $0x160] sm:$0xff]  ;;  %v719_v18 = vld [vmem:[%s8363_s24 + $0x1d8] sm:$0xff]  ;;  %v670_v21 = vld [vmem:[%s8363_s24 + $0x50] sm:$0xff] }
  0x28   : > { %5972 = vmatprep.subr.mxu1 %v721_v10  ;;  %5939 = vmatprep.subr.mxu0 %v688_v11  ;;  %v703_v20 = vld [vmem:[%s8363_s24 + $0x158] sm:$0xff]  ;;  %v718_v22 = vld [vmem:[%s8363_s24 + $0x1d0] sm:$0xff]  ;;  %v685_v23 = vld [vmem:[%s8363_s24 + $0xc8] sm:$0xff] }
  0x29   : > { %5973 = vmatpush3.msra.mxu1 %v705_v12  ;;  %5940 = vmatpush3.msra.mxu0 %v672_v13  ;;  %v702_v24 = vld [vmem:[%s8363_s24 + $0x150] sm:$0xff]  ;;  %v669_v25 = vld [vmem:[%s8363_s24 + $0x48] sm:$0xff]  ;;  %v684_v27 = vld [vmem:[%s8363_s24 + $0xc0] sm:$0xff] }
  0x2a   : > { %5974 = vmatprep.subr.mxu1 %v720_v14  ;;  %5941 = vmatprep.subr.mxu0 %v687_v15  ;;  %v717_v26 = vld [vmem:[%s8363_s24 + $0x1c8] sm:$0xff]  ;;  %v668_v29 = vld [vmem:[%s8363_s24 + $0x40] sm:$0xff]  ;;  %v683_v31 = vld [vmem:[%s8363_s24 + $0xb8] sm:$0xff] }
  0x2b   : > { %5975 = vmatpush3.msra.mxu1 %v704_v16  ;;  %5942 = vmatpush3.msra.mxu0 %v671_v17  ;;  %v701_v28 = vld [vmem:[%s8363_s24 + $0x148] sm:$0xff]  ;;  %v716_v30 = vld [vmem:[%s8363_s24 + $0x1c0] sm:$0xff]  ;;  %v667_v33 = vld [vmem:[%s8363_s24 + $0x38] sm:$0xff] }
  0x2c   : > { %5976 = vmatprep.subr.mxu1 %v719_v18  ;;  %5943 = vmatprep.subr.mxu0 %v686_v19  ;;  %v700_v32 = vld [vmem:[%s8363_s24 + $0x140] sm:$0xff]  ;;  %v715_v34 = vld [vmem:[%s8363_s24 + $0x1b8] sm:$0xff]  ;;  %v682_v35 = vld [vmem:[%s8363_s24 + $0xb0] sm:$0xff] }
  0x2d   : > { %5977 = vmatpush3.msra.mxu1 %v703_v20  ;;  %5944 = vmatpush3.msra.mxu0 %v670_v21  ;;  %v699_v36 = vld [vmem:[%s8363_s24 + $0x138] sm:$0xff]  ;;  %v666_v37 = vld [vmem:[%s8363_s24 + $0x30] sm:$0xff]  ;;  %v681_v39 = vld [vmem:[%s8363_s24 + $0xa8] sm:$0xff] }
  0x2e   : > { %5978 = vmatprep.subr.mxu1 %v718_v22  ;;  %5945 = vmatprep.subr.mxu0 %v685_v23  ;;  %v714_v38 = vld [vmem:[%s8363_s24 + $0x1b0] sm:$0xff]  ;;  %v665_v41 = vld [vmem:[%s8363_s24 + $0x28] sm:$0xff]  ;;  %v680_v43 = vld [vmem:[%s8363_s24 + $0xa0] sm:$0xff] }
  0x2f   : > { %5979 = vmatpush3.msra.mxu1 %v702_v24  ;;  %5946 = vmatpush3.msra.mxu0 %v669_v25  ;;  %v698_v40 = vld [vmem:[%s8363_s24 + $0x130] sm:$0xff]  ;;  %v713_v42 = vld [vmem:[%s8363_s24 + $0x1a8] sm:$0xff]  ;;  %v664_v45 = vld [vmem:[%s8363_s24 + $0x20] sm:$0xff] }
  0x30   : > { %5980 = vmatprep.subr.mxu1 %v717_v26  ;;  %5947 = vmatprep.subr.mxu0 %v684_v27  ;;  %v697_v44 = vld [vmem:[%s8363_s24 + $0x128] sm:$0xff]  ;;  %v712_v46 = vld [vmem:[%s8363_s24 + $0x1a0] sm:$0xff]  ;;  %v679_v47 = vld [vmem:[%s8363_s24 + $0x98] sm:$0xff] }
  0x31   : > { %5981 = vmatpush3.msra.mxu1 %v701_v28  ;;  %5948 = vmatpush3.msra.mxu0 %v668_v29  ;;  %v696_v48 = vld [vmem:[%s8363_s24 + $0x120] sm:$0xff]  ;;  %v663_v49 = vld [vmem:[%s8363_s24 + $0x18] sm:$0xff]  ;;  %v678_v51 = vld [vmem:[%s8363_s24 + $0x90] sm:$0xff] }
  0x32   : > { %5982 = vmatprep.subr.mxu1 %v716_v30  ;;  %5949 = vmatprep.subr.mxu0 %v683_v31  ;;  %v711_v50 = vld [vmem:[%s8363_s24 + $0x198] sm:$0xff]  ;;  %v662_v53 = vld [vmem:[%s8363_s24 + $0x10] sm:$0xff]  ;;  %v677_v55 = vld [vmem:[%s8363_s24 + $0x88] sm:$0xff] }
  0x33   : > { %5983 = vmatpush3.msra.mxu1 %v700_v32  ;;  %5950 = vmatpush3.msra.mxu0 %v667_v33  ;;  %v695_v52 = vld [vmem:[%s8363_s24 + $0x118] sm:$0xff]  ;;  %v710_v54 = vld [vmem:[%s8363_s24 + $0x190] sm:$0xff]  ;;  %v661_v57 = vld [vmem:[%s8363_s24 + $0x8] sm:$0xff] }
  0x34   : > { %5984 = vmatprep.subr.mxu1 %v715_v34  ;;  %5951 = vmatprep.subr.mxu0 %v682_v35  ;;  %v694_v56 = vld [vmem:[%s8363_s24 + $0x110] sm:$0xff]  ;;  %v709_v58 = vld [vmem:[%s8363_s24 + $0x188] sm:$0xff]  ;;  %v676_v59 = vld [vmem:[%s8363_s24 + $0x80] sm:$0xff] }
  0x35   : > { %5985 = vmatpush3.msra.mxu1 %v699_v36  ;;  %5952 = vmatpush3.msra.mxu0 %v666_v37  ;;  %v655_v60 = vld [vmem:[%s7196_s20 + $0x8] sm:$0x1f]  ;;  %v660_v61 = vld [vmem:[%s8363_s24] sm:$0xff]  ;;  %v755_v1 = vld [vmem:[%s8363_s24 + $0x2f8] sm:$0xff] }
  0x36   : > { %5986 = vmatprep.subr.mxu1 %v714_v38  ;;  %5953 = vmatprep.subr.mxu0 %v681_v39  ;;  %v693_v62 = vld [vmem:[%s8363_s24 + $0x108] sm:$0xff]  ;;  %v654_v63 = vld [vmem:[%s7196_s20] sm:$0x1f]  ;;  %v657_v3 = vld [vmem:[%s7196_s20 + $0x18] sm:$0x1f] }
  0x37   : > { %5987 = vmatpush3.msra.mxu1 %v698_v40  ;;  %5954 = vmatpush3.msra.mxu0 %v665_v41  ;;  %v708_v0 = vld [vmem:[%s8363_s24 + $0x180] sm:$0xff]  ;;  %v739_v4 = vld [vmem:[%s8363_s24 + $0x278] sm:$0xff]  ;;  %v656_v5 = vld [vmem:[%s7196_s20 + $0x10] sm:$0x1f] }
  0x38   : > { %5988 = vmatprep.subr.mxu1 %v713_v42  ;;  %5955 = vmatprep.subr.mxu0 %v680_v43  ;;  %v692_v2 = vld [vmem:[%s8363_s24 + $0x100] sm:$0xff]  ;;  %v754_v6 = vld [vmem:[%s8363_s24 + $0x2f0] sm:$0xff]  ;;  %v659_v8 = vld [vmem:[%s7196_s20 + $0x28] sm:$0x1f] }
  0x39   : > { %5989 = vmatpush3.msra.mxu1 %v697_v44  ;;  %5956 = vmatpush3.msra.mxu0 %v664_v45  ;;  %v738_v7 = vld [vmem:[%s8363_s24 + $0x270] sm:$0xff]  ;;  %v753_v9 = vld [vmem:[%s8363_s24 + $0x2e8] sm:$0xff]  ;;  %v752_v11 = vld [vmem:[%s8363_s24 + $0x2e0] sm:$0xff] }
  0x3a   : > { %5990 = vmatprep.subr.mxu1 %v712_v46  ;;  %5957 = vmatprep.subr.mxu0 %v679_v47  ;;  %v737_v10 = vld [vmem:[%s8363_s24 + $0x268] sm:$0xff]  ;;  %v736_v12 = vld [vmem:[%s8363_s24 + $0x260] sm:$0xff]  ;;  %v751_v13 = vld [vmem:[%s8363_s24 + $0x2d8] sm:$0xff] }
  0x3b   : > { %5991 = vmatpush3.msra.mxu1 %v696_v48  ;;  %5958 = vmatpush3.msra.mxu0 %v663_v49  ;;  %v735_v14 = vld [vmem:[%s8363_s24 + $0x258] sm:$0xff]  ;;  %v750_v15 = vld [vmem:[%s8363_s24 + $0x2d0] sm:$0xff]  ;;  %v749_v17 = vld [vmem:[%s8363_s24 + $0x2c8] sm:$0xff] }
  0x3c   : > { %5992 = vmatprep.subr.mxu1 %v711_v50  ;;  %5959 = vmatprep.subr.mxu0 %v678_v51  ;;  %v734_v16 = vld [vmem:[%s8363_s24 + $0x250] sm:$0xff]  ;;  %v733_v18 = vld [vmem:[%s8363_s24 + $0x248] sm:$0xff]  ;;  %v748_v19 = vld [vmem:[%s8363_s24 + $0x2c0] sm:$0xff] }
  0x3d   : > { %5993 = vmatpush3.msra.mxu1 %v695_v52  ;;  %5960 = vmatpush3.msra.mxu0 %v662_v53  ;;  %v732_v20 = vld [vmem:[%s8363_s24 + $0x240] sm:$0xff]  ;;  %v747_v21 = vld [vmem:[%s8363_s24 + $0x2b8] sm:$0xff]  ;;  %v746_v23 = vld [vmem:[%s8363_s24 + $0x2b0] sm:$0xff] }
  0x3e   : > { %5994 = vmatprep.subr.mxu1 %v710_v54  ;;  %5961 = vmatprep.subr.mxu0 %v677_v55  ;;  %v731_v22 = vld [vmem:[%s8363_s24 + $0x238] sm:$0xff]  ;;  %v730_v24 = vld [vmem:[%s8363_s24 + $0x230] sm:$0xff]  ;;  %v745_v25 = vld [vmem:[%s8363_s24 + $0x2a8] sm:$0xff] }
  0x3f   : > { %5995 = vmatpush3.msra.mxu1 %v694_v56  ;;  %5962 = vmatpush3.msra.mxu0 %v661_v57  ;;  %v729_v26 = vld [vmem:[%s8363_s24 + $0x228] sm:$0xff]  ;;  %v744_v27 = vld [vmem:[%s8363_s24 + $0x2a0] sm:$0xff]  ;;  %v743_v29 = vld [vmem:[%s8363_s24 + $0x298] sm:$0xff]  ;;  %v6859_v57 = vmov 0.0  }
  0x40   : > { %5996 = vmatprep.subr.mxu1 %v709_v58  ;;  %5963 = vmatprep.subr.mxu0 %v676_v59  ;;  %v728_v28 = vld [vmem:[%s8363_s24 + $0x220] sm:$0xff]  ;;  %v727_v30 = vld [vmem:[%s8363_s24 + $0x218] sm:$0xff]  ;;  %v742_v31 = vld [vmem:[%s8363_s24 + $0x290] sm:$0xff] }
  0x41   : > { %821 = vmatprep.mubr.f32.mxu0 %v655_v60  ;;  %5964 = vmatpush3.msra.mxu0 %v660_v61  ;;  %v726_v32 = vld [vmem:[%s8363_s24 + $0x210] sm:$0xff]  ;;  %v741_v33 = vld [vmem:[%s8363_s24 + $0x288] sm:$0xff]  ;;  %v740_v35 = vld [vmem:[%s8363_s24 + $0x280] sm:$0xff] }
  0x42   : > { %5997 = vmatpush3.msra.mxu1 %v693_v62  ;;  %822 = vmatmul.mubr.f32.vlgmr.msra.gmra.mxu0 %v654_v63  ;;  %v725_v34 = vld [vmem:[%s8363_s24 + $0x208] sm:$0xff]  ;;  %v724_v36 = vld [vmem:[%s8363_s24 + $0x200] sm:$0xff]  ;;  %v1002_v58 = vld [vmem:[%s8366_s27 + $0x18] sm:$0xff]  ;;  %s8369_s27 = sld [smem:[#allocation15_spill]] }
  0x43   : > { %5998 = vmatprep.subr.mxu1 %v708_v0  ;;  %6003 = vmatprep.subr.mxu0 %v755_v1  ;;  %v658_v37 = vld [vmem:[%s7196_s20 + $0x20] sm:$0x1f]  ;;  %v1001_v59 = vld [vmem:[%s8367_s0 + $0x10] sm:$0xff]  ;;  %v1000_v60 = vld [vmem:[%s8367_s0 + $0x8] sm:$0xff]  ;;  %s8373_s20 = sld [smem:[#allocation19_spill]] }
  0x44   : > { %5999 = vmatpush3.msra.mxu1 %v692_v2  ;;  %891 = vmatprep.mubr.f32.mxu1 %v657_v3  ;;  %v756_v42 = vld [vmem:[%s8365_s1] sm:$0x1f]  ;;  %s8368_s1 = sld [smem:[#allocation14_spill]] }
  0x45   : > { %6004 = vmatpush3.msra.mxu0 %v739_v4  ;;  %892 = vmatmul.mubr.f32.vlgmr.msra.gmra.mxu1 %v656_v5  ;;  %v999_v61 = vld [vmem:[%s8367_s0] sm:$0xff] }
  0x46   : > { %6005 = vmatprep.subr.mxu0 %v754_v6  ;;  %961 = vmatprep.mubr.f32.mxu0 %v659_v8  ;;  %v5683_v8 = vld [vmem:[%s8367_s0 + $0x90] sm:$0xff] }
  0x47   : > { %6006 = vmatpush3.msra.mxu0 %v738_v7  ;;  %6242 = vmatprep.subr.mxu1 %v6859_v57  ;;  %v5684_v7 = vld [vmem:[%s8367_s0 + $0x98] sm:$0xff] }
  0x48   : > { %6007 = vmatprep.subr.mxu0 %v753_v9  ;;  %6243 = vmatpush3.msra.mxu1 %v1002_v58  ;;  %s8370_s23 = smov %s8369_s27  ;;  %v5678_v4 = vld [vmem:[%s8369_s27] ss:$0 sm:$0xff]  ;;  %v5682_v9 = vld [vmem:[%s8367_s0 + $0x88] sm:$0xff]  ;;  %s6801_s27 = sshll.u32 %s6862_s3, 4  ;;  %s6802_s27 = int_to_ptr.vmem [resolvable:$false] %s6801_s27 }
  0x49   : > { %6008 = vmatpush3.msra.mxu0 %v737_v10  ;;  %6244 = vmatprep.subr.mxu1 %v6859_v57  ;;  %v5681_v10 = vld [vmem:[%s8367_s0 + $0x80] sm:$0xff]  ;;  %s6803_s4 = scalar_lea.vmem %s6802_s27, 32  ;;  %p6804_p0 = scmp.lt.s32.totalorder %s5618_s28, %s6802_s27 }
  0x4a   : > { %6009 = vmatprep.subr.mxu0 %v752_v11  ;;  %6245 = vmatpush3.msra.mxu1 %v1001_v59  ;;  %v5677_v2 = vld [vmem:[%s8368_s1] ss:$0 sm:$0xff]  ;;  %v5691_v11 = vld [vmem:[%s8367_s0 + $0x118] sm:$0xff] }
  0x4b   : > { %6010 = vmatpush3.msra.mxu0 %v736_v12  ;;  %6246 = vmatprep.subr.mxu1 %v6859_v57  ;;  %v5690_v12 = vld [vmem:[%s8367_s0 + $0x110] sm:$0xff] }
  0x4c   : > { %6011 = vmatprep.subr.mxu0 %v751_v13  ;;  %6247 = vmatpush3.msra.mxu1 %v1000_v60  ;;  %v5689_v13 = vld [vmem:[%s8367_s0 + $0x108] sm:$0xff] }
  0x4d   : > { %6012 = vmatpush3.msra.mxu0 %v735_v14  ;;  %6248 = vmatprep.subr.mxu1 %v6859_v57  ;;  %v5688_v14 = vld [vmem:[%s8367_s0 + $0x100] sm:$0xff] }
  0x4e   : > { %6013 = vmatprep.subr.mxu0 %v750_v15  ;;  %6249 = vmatpush3.msra.mxu1 %v999_v61 }
  0x4f   : > { %6014 = vmatpush3.msra.mxu0 %v734_v16  ;;  %6250 = vmatprep.mubr.msk.f32.mxu1 %vm6860_vm1, %v6859_v57 }
  0x50   : > { %6015 = vmatprep.subr.mxu0 %v749_v17  ;;  %6253 = vmatprep.subr.mxu1 %v6859_v57  ;;  %v5686_v17 = vld [vmem:[%s8371_s6 + $0x4] ss:$0 sm:$0xff] }
  0x51   : > { %6016 = vmatpush3.msra.mxu0 %v733_v18 }
  0x52   : > { %6017 = vmatprep.subr.mxu0 %v748_v19  ;;  %v5679_v19 = vld [vmem:[%s8371_s6] ss:$0 sm:$0xff] }
  0x53   : > { %6018 = vmatpush3.msra.mxu0 %v732_v20 }
  0x54   : > { %6019 = vmatprep.subr.mxu0 %v747_v21 }
  0x55   : > { %6020 = vmatpush3.msra.mxu0 %v731_v22 }
  0x56   : > { %6021 = vmatprep.subr.mxu0 %v746_v23  ;;  %v5693_v23 = vld [vmem:[%s8371_s6 + $0x8] ss:$0 sm:$0xff] }
  0x57   : > { %6022 = vmatpush3.msra.mxu0 %v730_v24 }
  0x58   : > { %6023 = vmatprep.subr.mxu0 %v745_v25 }
  0x59   : > { %6024 = vmatpush3.msra.mxu0 %v729_v26 }
  0x5a   : > { %6025 = vmatprep.subr.mxu0 %v744_v27 }
  0x5b   : > { %6026 = vmatpush3.msra.mxu0 %v728_v28 }
  0x5c   : > { %6027 = vmatprep.subr.mxu0 %v743_v29 }
  0x5d   : > { %6028 = vmatpush3.msra.mxu0 %v727_v30 }
  0x5e   : > { %6029 = vmatprep.subr.mxu0 %v742_v31 }
  0x5f   : > { %6030 = vmatpush3.msra.mxu0 %v726_v32 }
  0x60   : > { %6031 = vmatprep.subr.mxu0 %v741_v33 }
  0x61   : > { %6032 = vmatpush3.msra.mxu0 %v725_v34 }
  0x62   : > { %6033 = vmatprep.subr.mxu0 %v740_v35 }
  0x63   : > { %6034 = vmatpush3.msra.mxu0 %v724_v36  ;;  %v1418_v36 = vld [vmem:[%s8318_s7] sm:$0xff] }
  0x64   : > { %962 = vmatmul.mubr.f32.vlgmr.msra.gmra.mxu0 %v658_v37  ;;  %6285 = vmatprep.subr.mxu0 %v6859_v57 }
  0x65   : > { %6287 = vmatprep.mubr.msk.f32.mxu0 %vm6860_vm1, %v6859_v57  ;;  %6286 = vmatpush3.msra.mxu0 %v1418_v36 }
  0x66   : > { %6301 = vmatprep.subr.mxu0 %v6859_v57 }
 0x102   : > { %v5965_v38 = vpop.f32.mrf.mxu0 }
 0x104   : > { %v5966_v39 = vpop.f32.mrf.mxu0 }
 0x105   : > { %v6000_v40 = vpop.f32.mrf.mxu1  ;;  %v5967_v41 = vadd.f32 %v5966_v39, %v5965_v38 }
 0x107   : > { %v6001_v43 = vpop.f32.mrf.mxu1  ;;  %v824_v44 = vadd.f32 %v5967_v41, %v756_v42  ;;  %v5703_v41 = vld [vmem:[%s8367_s0 + $0x30] sm:$0xff]  ;;  %v5702_v42 = vld [vmem:[%s8367_s0 + $0x28] sm:$0xff] }
 0x108   : > { %v6002_v45 = vadd.f32 %v6001_v43, %v6000_v40  ;;  %v5704_v40 = vld [vmem:[%s8367_s0 + $0x38] sm:$0xff]  ;;  %v5701_v43 = vld [vmem:[%s8367_s0 + $0x20] sm:$0xff] }
 0x10a   : > { %v894_v48 = vadd.f32 %v6002_v45, %v824_v44  ;;  %v5718_v44 = vld [vmem:[%s8367_s0 + $0x138] sm:$0xff]  ;;  %v5717_v45 = vld [vmem:[%s8367_s0 + $0x130] sm:$0xff] }
 0x124   : > { %v6035_v46 = vpop.f32.mrf.mxu0 }
 0x126   : > { %v6036_v47 = vpop.f32.mrf.mxu0 }
 0x127   : > { %v6037_v49 = vadd.f32 %v6036_v47, %v6035_v46  ;;  %v5716_v46 = vld [vmem:[%s8367_s0 + $0x128] sm:$0xff]  ;;  %v5715_v47 = vld [vmem:[%s8367_s0 + $0x120] sm:$0xff] }
 0x129   : > { %v7330_v50 = vadd.f32 %v6037_v49, %v894_v48  ;;  %v5711_v48 = vld [vmem:[%s8367_s0 + $0xb8] sm:$0xff] }
 0x12b   : > { %v970_v51 = vsel %vm969_vm0, %v7330_v50, 0.0 }
 0x12c   : > { %971 = vadd.xlane.f32.xlu0 %v970_v51  ;;  %v5710_v51 = vld [vmem:[%s8367_s0 + $0xb0] sm:$0xff] }
 0x1b5   : > { %v972_v52 = vpop.xlane.xlu0 %971 }
 0x1b6   : > { %v974_v53 = vmul.f32 0.03125, %v972_v52 }
 0x1b8   : > { %v975_v54 = vsub.f32 %v7330_v50, %v974_v53  ;;  %v5709_v53 = vld [vmem:[%s8367_s0 + $0xa8] sm:$0xff] }
 0x1ba   : > { %v976_v55 = vmul.f32 %v975_v54, %v975_v54 }
 0x1bc   : > { %v977_v56 = vsel %vm969_vm0, %v976_v55, 0.0 }
 0x1bd   : > { %978 = vadd.xlane.f32.xlu0 %v977_v56 }
 0x246   : > { %v979_v62 = vpop.xlane.xlu0 %978 }
 0x247   : > { %v980_v63 = vmul.f32 0.03125, %v979_v62  ;;  %v5713_v62 = vld [vmem:[%s8371_s6 + $0x5] ss:$0 sm:$0xff] }
 0x249   : > { %v981_v0 = vadd.f32 1e-06, %v980_v63 }
 0x24b   : > { %6747 = vrsqrt.f32 %v981_v0  ;;  %v5706_v0 = vld [vmem:[%s8371_s6 + $0x1] ss:$0 sm:$0xff] }
 0x258   : > { %v6748_v1 = vpop.eup %6747 }
 0x259   : > { %v983_v3 = vmul.f32 %v6748_v1, %v975_v54  ;;  %v5708_v54 = vld [vmem:[%s8367_s0 + $0xa0] sm:$0xff] }
 0x25b   : > { %v990_v5 = vmul.f32 %v5677_v2, %v983_v3  ;;  %v5720_v2 = vld [vmem:[%s8371_s6 + $0x9] ss:$0 sm:$0xff] }
 0x25d   : > { %v7364_v6 = vadd.f32 %v5678_v4, %v990_v5 }
 0x25f   : > { %6251 = vmatmul.mubr.msk.f32.vlgmr.msra.gmra.mxu1 %vm1010_vm2, %v7364_v6 }
 0x260   : > { %6254 = vmatpush3.msra.mxu1 %v5684_v7  ;;  %6261 = vmatprep.mubr.msk.f32.mxu1 %vm6860_vm1, %v6859_v57 }
 0x261   : > { %6255 = vmatprep.subr.mxu1 %v6859_v57 }
 0x262   : > { %6256 = vmatpush3.msra.mxu1 %v5683_v8 }
 0x263   : > { %6257 = vmatprep.subr.mxu1 %v6859_v57 }
 0x264   : > { %6258 = vmatpush3.msra.mxu1 %v5682_v9 }
 0x265   : > { %6259 = vmatprep.subr.mxu1 %v6859_v57 }
 0x266   : > { %6260 = vmatpush3.msra.mxu1 %v5681_v10 }
 0x267   : > { %6262 = vmatmul.mubr.msk.f32.vlgmr.msra.gmra.mxu1 %vm1010_vm2, %v7364_v6  ;;  %6264 = vmatprep.subr.mxu1 %v6859_v57 }
 0x268   : > { %6265 = vmatpush3.msra.mxu1 %v5691_v11  ;;  %6272 = vmatprep.mubr.msk.f32.mxu1 %vm6860_vm1, %v6859_v57 }
 0x269   : > { %6266 = vmatprep.subr.mxu1 %v6859_v57 }
 0x26a   : > { %6267 = vmatpush3.msra.mxu1 %v5690_v12 }
 0x26b   : > { %6268 = vmatprep.subr.mxu1 %v6859_v57 }
 0x26c   : > { %6269 = vmatpush3.msra.mxu1 %v5689_v13 }
 0x26d   : > { %6270 = vmatprep.subr.mxu1 %v6859_v57 }
 0x26e   : > { %6271 = vmatpush3.msra.mxu1 %v5688_v14 }
 0x26f   : > { %6273 = vmatmul.mubr.msk.f32.vlgmr.msra.gmra.mxu1 %vm1010_vm2, %v7364_v6  ;;  %6275 = vmatprep.subr.mxu1 %v6859_v57 }
 0x270   : > { %6277 = vmatprep.mubr.msk.f32.mxu1 %vm6860_vm1, %v6859_v57 }
 0x31f   : > { %v1080_v15 = vpop.f32.mrf.mxu1 }
 0x320   : > { %v1081_v22 = vadd.f32 %v5679_v19, %v1080_v15 }
 0x321   : > { %v6252_v16 = vpop.f32.mrf.mxu1 }
 0x322   : > { %v5726_v16 = vld [vmem:[%s8318_s7 + $0x8] sm:$0xff] }
 0x327   : > { %v1163_v18 = vpop.f32.mrf.mxu1 }
 0x328   : > { %v1164_v20 = vadd.f32 %v5686_v17, %v1163_v18 }
 0x329   : > { %v6263_v21 = vpop.f32.mrf.mxu1 }
 0x32a   : > { %6276 = vmatpush3.xpose.msk.msra.mxu1 %vm1250_vm3, %v1164_v20  ;;  %v5731_v20 = vld [vmem:[%s8367_s0 + $0x58] sm:$0xff]  ;;  %v5730_v21 = vld [vmem:[%s8367_s0 + $0x50] sm:$0xff] }
 0x32b   : > { %6280 = vmatprep.subr.mxu1 %v6859_v57 }
 0x32d   : > { %6278 = vmatmul.mubr.msk.f32.vlgmr.msra.gmra.mxu1 %vm1250_vm3, %v1081_v22  ;;  %v5729_v22 = vld [vmem:[%s8367_s0 + $0x48] sm:$0xff] }
 0x32e   : > { %6282 = vmatprep.mubr.msk.f32.mxu1 %vm6860_vm1, %v6859_v57 }
 0x32f   : > { %v1246_v24 = vpop.f32.mrf.mxu1 }
 0x330   : > { %v1247_v25 = vadd.f32 %v5693_v23, %v1246_v24  ;;  %v5728_v23 = vld [vmem:[%s8367_s0 + $0x40] sm:$0xff]  ;;  %v5745_v24 = vld [vmem:[%s8367_s0 + $0x158] sm:$0xff] }
 0x331   : > { %v6274_v26 = vpop.f32.mrf.mxu1 }
 0x332   : > { %6281 = vmatpush3.msk.msra.mxu1 %vm1344_vm4, %v1247_v25  ;;  %v5744_v25 = vld [vmem:[%s8367_s0 + $0x150] sm:$0xff]  ;;  %v5743_v26 = vld [vmem:[%s8367_s0 + $0x148] sm:$0xff] }
 0x333   : > { %6290 = vmatprep.subr.mxu1 %v6859_v57 }
 0x3ed   : > { %v1323_v27 = vpop.f32.mrf.mxu1 }
 0x3ee   : > { %v1327_v28 = vmul.f32 0.35355338, %v1323_v27  ;;  %v5742_v27 = vld [vmem:[%s8367_s0 + $0x140] sm:$0xff] }
 0x3ef   : > { %v6279_v29 = vpop.f32.mrf.mxu1 }
 0x3f0   : > { %v1329_v30 = vsel %vm1328_vm5, %v1327_v28, -inf }
 0x3f1   : > { %1330 = vmax.xlane.f32.xlu1 %v1329_v30  ;;  %v5737_v30 = vld [vmem:[%s8367_s0 + $0xd0] sm:$0xff] }
 0x47a   : > { %v1331_v31 = vpop.xlane.xlu1 %1330 }
 0x47b   : > { %v1332_v32 = vsub.f32 %v1327_v28, %v1331_v31  ;;  %v5738_v28 = vld [vmem:[%s8367_s0 + $0xd8] sm:$0xff] }
 0x47d   : > { %v1333_v33 = vmul.f32 1.442695, %v1332_v32  ;;  %v5736_v32 = vld [vmem:[%s8367_s0 + $0xc8] sm:$0xff] }
 0x47f   : > { %6749 = vpow2.f32 %v1333_v33  ;;  %v5735_v33 = vld [vmem:[%s8367_s0 + $0xc0] sm:$0xff] }
 0x48c   : > { %v6750_v34 = vpop.eup %6749 }
 0x48d   : > { %v1335_v35 = vsel %vm1328_vm5, %v6750_v34, 0.0 }
 0x48e   : > { %1336 = vadd.xlane.f32.xlu1 %v1335_v35 }
 0x517   : > { %v1337_v37 = vpop.xlane.xlu1 %1336 }
 0x518   : > { %6751 = vrcp.f32 %v1337_v37 }
 0x525   : > { %v6752_v38 = vpop.eup %6751 }
 0x526   : > { %v1339_v39 = vmul.f32 %v6752_v38, %v6750_v34  ;;  %v5700_v38 = vld [vmem:[%s8319_s8] ss:$0 sm:$0xff] }
 0x528   : > { %6283 = vmatmul.mubr.msk.f32.vlgmr.msra.gmra.mxu1 %vm1340_vm6, %v1339_v39 }
 0x529   : > { %6291 = vmatpush3.msra.mxu1 %v5704_v40  ;;  %6298 = vmatprep.mubr.msk.f32.mxu1 %vm6860_vm1, %v6859_v57 }
 0x52a   : > { %6292 = vmatprep.subr.mxu1 %v6859_v57 }
 0x52b   : > { %6293 = vmatpush3.msra.mxu1 %v5703_v41 }
 0x52c   : > { %6294 = vmatprep.subr.mxu1 %v6859_v57 }
 0x52d   : > { %6295 = vmatpush3.msra.mxu1 %v5702_v42 }
 0x52e   : > { %6296 = vmatprep.subr.mxu1 %v6859_v57 }
 0x52f   : > { %6297 = vmatpush3.msra.mxu1 %v5701_v43  ;;  %v5740_v43 = vld [vmem:[%s8371_s6 + $0x6] ss:$0 sm:$0xff] }
 0x530   : > { %6299 = vmatmul.mubr.msk.f32.vlgmr.msra.gmra.mxu1 %vm1010_vm2, %v7364_v6  ;;  %6312 = vmatprep.subr.mxu1 %v6859_v57 }
 0x531   : > { %6313 = vmatpush3.msra.mxu1 %v5718_v44  ;;  %6320 = vmatprep.mubr.msk.f32.mxu1 %vm6860_vm1, %v6859_v57 }
 0x532   : > { %6314 = vmatprep.subr.mxu1 %v6859_v57 }
 0x533   : > { %6315 = vmatpush3.msra.mxu1 %v5717_v45  ;;  %v5733_v45 = vld [vmem:[%s8371_s6 + $0x2] ss:$0 sm:$0xff] }
 0x534   : > { %6316 = vmatprep.subr.mxu1 %v6859_v57 }
 0x535   : > { %6317 = vmatpush3.msra.mxu1 %v5716_v46 }
 0x536   : > { %6318 = vmatprep.subr.mxu1 %v6859_v57 }
 0x537   : > { %6319 = vmatpush3.msra.mxu1 %v5715_v47  ;;  %v5747_v47 = vld [vmem:[%s8371_s6 + $0xa] ss:$0 sm:$0xff] }
 0x538   : > { %6321 = vmatmul.mubr.msk.f32.vlgmr.msra.gmra.mxu1 %vm1010_vm2, %v7364_v6  ;;  %6333 = vmatprep.subr.mxu1 %v6859_v57 }
 0x539   : > { %6335 = vmatprep.mubr.msk.f32.mxu1 %vm6860_vm1, %v6859_v57  ;;  %6334 = vmatpush3.msra.mxu1 %v5726_v16  ;;  %v5762_v16 = vld [vmem:[%s8367_s0 + $0xe0] sm:$0xff] }
 0x53a   : > { %6349 = vmatprep.subr.mxu1 %v6859_v57 }
 0x5e8   : > { %v1414_v49 = vpop.f32.mrf.mxu1 }
 0x5e9   : > { %6288 = vmatmul.mubr.msk.f32.vlgmr.msra.gmra.mxu0 %vm1250_vm3, %v1414_v49 }
 0x5ea   : > { %6302 = vmatpush3.msra.mxu0 %v5711_v48  ;;  %v6284_v52 = vpop.f32.mrf.mxu1  ;;  %6309 = vmatprep.mubr.msk.f32.mxu0 %vm6860_vm1, %v6859_v57 }
 0x5eb   : > { %6303 = vmatprep.subr.mxu0 %v6859_v57 }
 0x5ec   : > { %6304 = vmatpush3.msra.mxu0 %v5710_v51 }
 0x5ed   : > { %6305 = vmatprep.subr.mxu0 %v6859_v57 }
 0x5ee   : > { %6306 = vmatpush3.msra.mxu0 %v5709_v53 }
 0x5ef   : > { %6307 = vmatprep.subr.mxu0 %v6859_v57 }
 0x5f0   : > { %v1578_v55 = vpop.f32.mrf.mxu1  ;;  %6308 = vmatpush3.msra.mxu0 %v5708_v54 }
 0x5f1   : > { %6310 = vmatmul.mubr.msk.f32.vlgmr.msra.gmra.mxu0 %vm1010_vm2, %v7364_v6  ;;  %6323 = vmatprep.subr.mxu0 %v6859_v57  ;;  %v1579_v4 = vadd.f32 %v5706_v0, %v1578_v55 }
 0x5f2   : > { %v6300_v56 = vpop.f32.mrf.mxu1  ;;  %6325 = vmatprep.mubr.msk.f32.mxu0 %vm6860_vm1, %v6859_v57 }
 0x5f8   : > { %v1744_v58 = vpop.f32.mrf.mxu1 }
 0x5f9   : > { %v1745_v5 = vadd.f32 %v5720_v2, %v1744_v58  ;;  %v5758_v2 = vld [vmem:[%s8367_s0 + $0x78] sm:$0xff] }
 0x5fa   : > { %v6322_v59 = vpop.f32.mrf.mxu1 }
 0x6a9   : > { %v7498_v60 = vpop.f32.mrf.mxu0 }
 0x6aa   : > { %v1498_v39 = vadd.f32 %v5700_v38, %v7498_v60 }
 0x6ab   : > { %v6289_v61 = vpop.f32.mrf.mxu0 }
 0x6b1   : > { %v1661_v63 = vpop.f32.mrf.mxu0 }
 0x6b2   : > { %v1662_v1 = vadd.f32 %v5713_v62, %v1661_v63  ;;  %v5753_v62 = vld [vmem:[%s8318_s7 + $0x10] sm:$0xff] }
 0x6b3   : > { %v6311_v3 = vpop.f32.mrf.mxu0 }
 0x6b4   : > { %6324 = vmatpush3.xpose.msk.msra.mxu0 %vm1250_vm3, %v1662_v1  ;;  %v5757_v3 = vld [vmem:[%s8367_s0 + $0x70] sm:$0xff] }
 0x6b5   : > { %6328 = vmatprep.subr.mxu0 %v6859_v57 }
 0x6b7   : > { %6326 = vmatmul.mubr.msk.f32.vlgmr.msra.gmra.mxu0 %vm1250_vm3, %v1579_v4  ;;  %v5756_v4 = vld [vmem:[%s8367_s0 + $0x68] sm:$0xff] }
 0x6b8   : > { %6329 = vmatpush3.msk.msra.mxu0 %vm1344_vm4, %v1745_v5  ;;  %6330 = vmatprep.mubr.msk.f32.mxu0 %vm6860_vm1, %v6859_v57  ;;  %v5755_v5 = vld [vmem:[%s8367_s0 + $0x60] sm:$0xff] }
 0x6b9   : > { %6338 = vmatprep.subr.mxu0 %v6859_v57 }
 0x777   : > { %v1820_v7 = vpop.f32.mrf.mxu0 }
 0x778   : > { %v1824_v8 = vmul.f32 0.35355338, %v1820_v7  ;;  %v5772_v7 = vld [vmem:[%s8367_s0 + $0x178] sm:$0xff] }
 0x779   : > { %v6327_v9 = vpop.f32.mrf.mxu0 }
 0x77a   : > { %v1825_v10 = vsel %vm1328_vm5, %v1824_v8, -inf  ;;  %v5770_v9 = vld [vmem:[%s8367_s0 + $0x168] sm:$0xff] }
 0x77b   : > { %1826 = vmax.xlane.f32.xlu0 %v1825_v10  ;;  %v5769_v10 = vld [vmem:[%s8367_s0 + $0x160] sm:$0xff] }
 0x804   : > { %v1827_v11 = vpop.xlane.xlu0 %1826 }
 0x805   : > { %v1828_v12 = vsub.f32 %v1824_v8, %v1827_v11  ;;  %v5771_v8 = vld [vmem:[%s8367_s0 + $0x170] sm:$0xff]  ;;  %v5765_v11 = vld [vmem:[%s8367_s0 + $0xf8] sm:$0xff] }
 0x807   : > { %v1829_v13 = vmul.f32 1.442695, %v1828_v12 }
 0x809   : > { %6753 = vpow2.f32 %v1829_v13  ;;  %v5764_v13 = vld [vmem:[%s8367_s0 + $0xf0] sm:$0xff] }
 0x816   : > { %v6754_v14 = vpop.eup %6753 }
 0x817   : > { %v1831_v15 = vsel %vm1328_vm5, %v6754_v14, 0.0 }
 0x818   : > { %1832 = vadd.xlane.f32.xlu1 %v1831_v15  ;;  %v5763_v15 = vld [vmem:[%s8367_s0 + $0xe8] sm:$0xff] }
 0x8a1   : > { %v1833_v17 = vpop.xlane.xlu1 %1832 }
 0x8a2   : > { %6755 = vrcp.f32 %v1833_v17 }
 0x8af   : > { %v6756_v18 = vpop.eup %6755 }
 0x8b0   : > { %v1835_v19 = vmul.f32 %v6756_v18, %v6754_v14 }
 0x8b2   : > { %6331 = vmatmul.mubr.msk.f32.vlgmr.msra.gmra.mxu0 %vm1340_vm6, %v1835_v19 }
 0x8b3   : > { %6339 = vmatpush3.msra.mxu0 %v5731_v20  ;;  %6346 = vmatprep.mubr.msk.f32.mxu0 %vm6860_vm1, %v6859_v57 }
 0x8b4   : > { %6340 = vmatprep.subr.mxu0 %v6859_v57 }
 0x8b5   : > { %6341 = vmatpush3.msra.mxu0 %v5730_v21 }
 0x8b6   : > { %6342 = vmatprep.subr.mxu0 %v6859_v57 }
 0x8b7   : > { %6343 = vmatpush3.msra.mxu0 %v5729_v22 }
 0x8b8   : > { %6344 = vmatprep.subr.mxu0 %v6859_v57 }
 0x8b9   : > { %6345 = vmatpush3.msra.mxu0 %v5728_v23 }
 0x8ba   : > { %6347 = vmatmul.mubr.msk.f32.vlgmr.msra.gmra.mxu0 %vm1010_vm2, %v7364_v6  ;;  %6360 = vmatprep.subr.mxu0 %v6859_v57 }
 0x8bb   : > { %6361 = vmatpush3.msra.mxu0 %v5745_v24  ;;  %6368 = vmatprep.mubr.msk.f32.mxu0 %vm6860_vm1, %v6859_v57  ;;  %v5767_v24 = vld [vmem:[%s8371_s6 + $0x7] ss:$0 sm:$0xff] }
 0x8bc   : > { %6362 = vmatprep.subr.mxu0 %v6859_v57 }
 0x8bd   : > { %6363 = vmatpush3.msra.mxu0 %v5744_v25 }
 0x8be   : > { %6364 = vmatprep.subr.mxu0 %v6859_v57 }
 0x8bf   : > { %6365 = vmatpush3.msra.mxu0 %v5743_v26 }
 0x8c0   : > { %6366 = vmatprep.subr.mxu0 %v6859_v57 }
 0x8c1   : > { %6367 = vmatpush3.msra.mxu0 %v5742_v27  ;;  %v5774_v27 = vld [vmem:[%s8371_s6 + $0xb] ss:$0 sm:$0xff] }
 0x8c2   : > { %6369 = vmatmul.mubr.msk.f32.vlgmr.msra.gmra.mxu0 %vm1010_vm2, %v7364_v6  ;;  %6381 = vmatprep.subr.mxu0 %v6859_v57 }
 0x8c3   : > { %6383 = vmatprep.mubr.msk.f32.mxu0 %vm6860_vm1, %v6859_v57  ;;  %6382 = vmatpush3.msra.mxu0 %v5753_v62 }
 0x8c4   : > { %6397 = vmatprep.subr.mxu0 %v6859_v57 }
 0x972   : > { %v1908_v29 = vpop.f32.mrf.mxu0 }
 0x973   : > { %6336 = vmatmul.mubr.msk.f32.vlgmr.msra.gmra.mxu1 %vm1250_vm3, %v1908_v29 }
 0x974   : > { %6350 = vmatpush3.msra.mxu1 %v5738_v28  ;;  %v6332_v31 = vpop.f32.mrf.mxu0  ;;  %6357 = vmatprep.mubr.msk.f32.mxu1 %vm6860_vm1, %v6859_v57 }
 0x975   : > { %6351 = vmatprep.subr.mxu1 %v6859_v57 }
 0x976   : > { %6352 = vmatpush3.msra.mxu1 %v5737_v30 }
 0x977   : > { %6353 = vmatprep.subr.mxu1 %v6859_v57 }
 0x978   : > { %6354 = vmatpush3.msra.mxu1 %v5736_v32 }
 0x979   : > { %6355 = vmatprep.subr.mxu1 %v6859_v57 }
 0x97a   : > { %v2067_v34 = vpop.f32.mrf.mxu0  ;;  %6356 = vmatpush3.msra.mxu1 %v5735_v33 }
 0x97b   : > { %6358 = vmatmul.mubr.msk.f32.vlgmr.msra.gmra.mxu1 %vm1010_vm2, %v7364_v6  ;;  %6371 = vmatprep.subr.mxu1 %v6859_v57  ;;  %v2068_v49 = vadd.f32 %v5733_v45, %v2067_v34 }
 0x97c   : > { %v6348_v35 = vpop.f32.mrf.mxu0  ;;  %6373 = vmatprep.mubr.msk.f32.mxu1 %vm6860_vm1, %v6859_v57 }
 0x982   : > { %v2233_v36 = vpop.f32.mrf.mxu0 }
 0x983   : > { %v2234_v51 = vadd.f32 %v5747_v47, %v2233_v36 }
 0x984   : > { %v6370_v37 = vpop.f32.mrf.mxu0 }
 0xa33   : > { %v1983_v40 = vpop.f32.mrf.mxu1 }
 0xa34   : > { %v7592_v41 = vadd.f32 %v1983_v40, %v1498_v39  ;;  %v5780_v40 = vld [vmem:[%s8318_s7 + $0x18] sm:$0xff] }
 0xa35   : > { %v6337_v42 = vpop.f32.mrf.mxu1 }
 0xa3b   : > { %v2150_v44 = vpop.f32.mrf.mxu1 }
 0xa3c   : > { %v2151_v46 = vadd.f32 %v5740_v43, %v2150_v44 }
 0xa3d   : > { %v6359_v48 = vpop.f32.mrf.mxu1 }
 0xa3e   : > { %6372 = vmatpush3.xpose.msk.msra.mxu1 %vm1250_vm3, %v2151_v46 }
 0xa3f   : > { %6376 = vmatprep.subr.mxu1 %v6859_v57 }
 0xa41   : > { %6374 = vmatmul.mubr.msk.f32.vlgmr.msra.gmra.mxu1 %vm1250_vm3, %v2068_v49 }
 0xa42   : > { %6377 = vmatpush3.msk.msra.mxu1 %vm1344_vm4, %v2234_v51  ;;  %6378 = vmatprep.mubr.msk.f32.mxu1 %vm6860_vm1, %v6859_v57 }
 0xa43   : > { %6386 = vmatprep.subr.mxu1 %v6859_v57 }
 0xb01   : > { %v2309_v52 = vpop.f32.mrf.mxu1 }
 0xb02   : > { %v2313_v53 = vmul.f32 0.35355338, %v2309_v52 }
 0xb03   : > { %v6375_v54 = vpop.f32.mrf.mxu1 }
 0xb04   : > { %v2314_v55 = vsel %vm1328_vm5, %v2313_v53, -inf }
 0xb05   : > { %2315 = vmax.xlane.f32.xlu0 %v2314_v55 }
 0xb8e   : > { %v2316_v56 = vpop.xlane.xlu0 %2315 }
 0xb8f   : > { %v2317_v58 = vsub.f32 %v2313_v53, %v2316_v56 }
 0xb91   : > { %v2318_v59 = vmul.f32 1.442695, %v2317_v58  ;;  %v2999_v58 = vld [vmem:[%s8322_s11 + $0x18] sm:$0xff] }
 0xb93   : > { %6757 = vpow2.f32 %v2318_v59  ;;  %v2997_v59 = vld [vmem:[%s8322_s11 + $0x8] sm:$0xff] }
 0xba0   : > { %v6758_v60 = vpop.eup %6757 }
 0xba1   : > { %v2320_v61 = vsel %vm1328_vm5, %v6758_v60, 0.0 }
 0xba2   : > { %2321 = vadd.xlane.f32.xlu1 %v2320_v61 }
 0xc2b   : > { %v2322_v63 = vpop.xlane.xlu1 %2321 }
 0xc2c   : > { %6759 = vrcp.f32 %v2322_v63 }
 0xc39   : > { %v6760_v0 = vpop.eup %6759 }
 0xc3a   : > { %v2324_v1 = vmul.f32 %v6760_v0, %v6758_v60  ;;  %v2996_v60 = vld [vmem:[%s8322_s11] sm:$0xff] }
 0xc3c   : > { %6379 = vmatmul.mubr.msk.f32.vlgmr.msra.gmra.mxu1 %vm1340_vm6, %v2324_v1  ;;  %v5782_v1 = vld [vmem:[%s8320_s9] ss:$0 sm:$0xff] }
 0xc3d   : > { %6387 = vmatpush3.msra.mxu1 %v5758_v2  ;;  %6394 = vmatprep.mubr.msk.f32.mxu1 %vm6860_vm1, %v6859_v57 }
 0xc3e   : > { %6388 = vmatprep.subr.mxu1 %v6859_v57 }
 0xc3f   : > { %6389 = vmatpush3.msra.mxu1 %v5757_v3  ;;  %v5783_v3 = vld [vmem:[%s8321_s10] ss:$0 sm:$0xff] }
 0xc40   : > { %6390 = vmatprep.subr.mxu1 %v6859_v57 }
 0xc41   : > { %6391 = vmatpush3.msra.mxu1 %v5756_v4 }
 0xc42   : > { %6392 = vmatprep.subr.mxu1 %v6859_v57 }
 0xc43   : > { %6393 = vmatpush3.msra.mxu1 %v5755_v5 }
 0xc44   : > { %6395 = vmatmul.mubr.msk.f32.vlgmr.msra.gmra.mxu1 %vm1010_vm2, %v7364_v6  ;;  %6408 = vmatprep.subr.mxu1 %v6859_v57 }
 0xc45   : > { %6409 = vmatpush3.msra.mxu1 %v5772_v7  ;;  %6416 = vmatprep.mubr.msk.f32.mxu1 %vm6860_vm1, %v6859_v57  ;;  %v3113_v7 = vld [vmem:[%s8324_s13 + $0x38] sm:$0xff] }
 0xc46   : > { %6410 = vmatprep.subr.mxu1 %v6859_v57 }
 0xc47   : > { %6411 = vmatpush3.msra.mxu1 %v5771_v8  ;;  %v3112_v8 = vld [vmem:[%s8324_s13 + $0x30] sm:$0xff] }
 0xc48   : > { %6412 = vmatprep.subr.mxu1 %v6859_v57 }
 0xc49   : > { %6413 = vmatpush3.msra.mxu1 %v5770_v9  ;;  %v3111_v9 = vld [vmem:[%s8324_s13 + $0x28] sm:$0xff] }
 0xc4a   : > { %6414 = vmatprep.subr.mxu1 %v6859_v57 }
 0xc4b   : > { %6415 = vmatpush3.msra.mxu1 %v5769_v10  ;;  %v3110_v10 = vld [vmem:[%s8324_s13 + $0x20] sm:$0xff] }
 0xc4c   : > { %6417 = vmatmul.mubr.msk.f32.vlgmr.msra.gmra.mxu1 %vm1010_vm2, %v7364_v6  ;;  %6429 = vmatprep.subr.mxu1 %v6859_v57 }
 0xc4d   : > { %6431 = vmatprep.mubr.msk.f32.mxu1 %vm6860_vm1, %v6859_v57  ;;  %6430 = vmatpush3.msra.mxu1 %v5780_v40 }
 0xc4e   : > { %6445 = vmatprep.subr.mxu1 %v6859_v57 }
 0xcfc   : > { %v2397_v12 = vpop.f32.mrf.mxu1 }
 0xcfd   : > { %6384 = vmatmul.mubr.msk.f32.vlgmr.msra.gmra.mxu0 %vm1250_vm3, %v2397_v12  ;;  %v3108_v12 = vld [vmem:[%s8324_s13 + $0x10] sm:$0xff] }
 0xcfe   : > { %6398 = vmatpush3.msra.mxu0 %v5765_v11  ;;  %v6380_v14 = vpop.f32.mrf.mxu1  ;;  %6405 = vmatprep.mubr.msk.f32.mxu0 %vm6860_vm1, %v6859_v57  ;;  %v3109_v11 = vld [vmem:[%s8324_s13 + $0x18] sm:$0xff] }
 0xcff   : > { %6399 = vmatprep.subr.mxu0 %v6859_v57  ;;  %v3106_v14 = vld [vmem:[%s8324_s13] sm:$0xff] }
 0xd00   : > { %6400 = vmatpush3.msra.mxu0 %v5764_v13  ;;  %v3107_v13 = vld [vmem:[%s8324_s13 + $0x8] sm:$0xff] }
 0xd01   : > { %6401 = vmatprep.subr.mxu0 %v6859_v57 }
 0xd02   : > { %6402 = vmatpush3.msra.mxu0 %v5763_v15  ;;  %v5784_v15 = vld [vmem:[%s8323_s12] ss:$0 sm:$0xff] }
 0xd03   : > { %6403 = vmatprep.subr.mxu0 %v6859_v57 }
 0xd04   : > { %v2556_v17 = vpop.f32.mrf.mxu1  ;;  %6404 = vmatpush3.msra.mxu0 %v5762_v16 }
 0xd05   : > { %6406 = vmatmul.mubr.msk.f32.vlgmr.msra.gmra.mxu0 %vm1010_vm2, %v7364_v6  ;;  %6419 = vmatprep.subr.mxu0 %v6859_v57  ;;  %v5760_v6 = vld [vmem:[%s8371_s6 + $0x3] ss:$0 sm:$0xff] }
 0xd06   : > { %v6396_v18 = vpop.f32.mrf.mxu1  ;;  %6421 = vmatprep.mubr.msk.f32.mxu0 %vm6860_vm1, %v6859_v57  ;;  %v2557_v29 = vadd.f32 %v5760_v6, %v2556_v17 }
 0xd0c   : > { %v2722_v19 = vpop.f32.mrf.mxu1 }
 0xd0d   : > { %v2723_v30 = vadd.f32 %v5774_v27, %v2722_v19 }
 0xd0e   : > { %v6418_v20 = vpop.f32.mrf.mxu1 }
 0xd0f   : > { %v6861_v20 = vmov -1.0  }
 0xdbd   : > { %v2472_v21 = vpop.f32.mrf.mxu0 }
 0xdbe   : > { %v2476_v22 = vadd.f32 %v2472_v21, %v7592_v41 }
 0xdbf   : > { %v6385_v23 = vpop.f32.mrf.mxu0 }
 0xdc5   : > { %v2639_v25 = vpop.f32.mrf.mxu0 }
 0xdc6   : > { %v2640_v26 = vadd.f32 %v5767_v24, %v2639_v25 }
 0xdc7   : > { %v6407_v28 = vpop.f32.mrf.mxu0 }
 0xdc8   : > { %6420 = vmatpush3.xpose.msk.msra.mxu0 %vm1250_vm3, %v2640_v26 }
 0xdc9   : > { %6424 = vmatprep.subr.mxu0 %v6859_v57 }
 0xdcb   : > { %6422 = vmatmul.mubr.msk.f32.vlgmr.msra.gmra.mxu0 %vm1250_vm3, %v2557_v29 }
 0xdcc   : > { %6425 = vmatpush3.msk.msra.mxu0 %vm1344_vm4, %v2723_v30  ;;  %6426 = vmatprep.mubr.msk.f32.mxu0 %vm6860_vm1, %v6859_v57 }
 0xdcd   : > { %6434 = vmatprep.subr.mxu0 %v6859_v57 }
 0xe8b   : > { %v2798_v31 = vpop.f32.mrf.mxu0 }
 0xe8c   : > { %v2802_v32 = vmul.f32 0.35355338, %v2798_v31 }
 0xe8d   : > { %v6423_v33 = vpop.f32.mrf.mxu0 }
 0xe8e   : > { %v2803_v34 = vsel %vm1328_vm5, %v2802_v32, -inf }
 0xe8f   : > { %2804 = vmax.xlane.f32.xlu0 %v2803_v34 }
 0xf18   : > { %v2805_v35 = vpop.xlane.xlu0 %2804 }
 0xf19   : > { %v2806_v36 = vsub.f32 %v2802_v32, %v2805_v35 }
 0xf1b   : > { %v2807_v37 = vmul.f32 1.442695, %v2806_v36 }
 0xf1d   : > { %6761 = vpow2.f32 %v2807_v37 }
 0xf2a   : > { %v6762_v38 = vpop.eup %6761 }
 0xf2b   : > { %v2809_v39 = vsel %vm1328_vm5, %v6762_v38, 0.0 }
 0xf2c   : > { %2810 = vadd.xlane.f32.xlu1 %v2809_v39 }
 0xfb5   : > { %v2811_v41 = vpop.xlane.xlu1 %2810 }
 0xfb6   : > { %6763 = vrcp.f32 %v2811_v41 }
 0xfc3   : > { %v6764_v42 = vpop.eup %6763 }
 0xfc4   : > { %v2813_v43 = vmul.f32 %v6764_v42, %v6762_v38 }
 0xfc6   : > { %6427 = vmatmul.mubr.msk.f32.vlgmr.msra.gmra.mxu0 %vm1340_vm6, %v2813_v43 }
 0xfc7   : > { %6442 = vmatprep.mubr.msk.f32.mxu0 %vm6860_vm1, %v6859_v57  ;;  %6435 = vmatpush3.msra.mxu0 %v2999_v58  ;;  %v5798_v58 = vld [vmem:[%s8367_s0 + $0x198] sm:$0xff] }
 0xfc8   : > { %6436 = vmatprep.subr.mxu0 %v6859_v57 }
0x1086   : > { %v2886_v44 = vpop.f32.mrf.mxu0 }
0x1087   : > { %6432 = vmatmul.mubr.msk.f32.vlgmr.msra.gmra.mxu1 %vm1250_vm3, %v2886_v44  ;;  %v5788_v44 = vld [vmem:[%s8325_s14] ss:$0 sm:$0xff] }
0x1088   : > { %v6428_v45 = vpop.f32.mrf.mxu0  ;;  %6461 = vmatprep.mubr.msk.f32.mxu1 %vm6860_vm1, %v6859_v57  ;;  %6446 = vmatpush3.msra.mxu1 %v3113_v7  ;;  %v5793_v7 = vld [vmem:[%s8370_s23 + $0x1] ss:$0 sm:$0xff] }
0x1089   : > { %6447 = vmatprep.subr.mxu1 %v6859_v57 }
0x108a   : > { %6448 = vmatpush3.msra.mxu1 %v3112_v8 }
0x108b   : > { %6449 = vmatprep.subr.mxu1 %v6859_v57 }
0x108c   : > { %6450 = vmatpush3.msra.mxu1 %v3111_v9 }
0x108d   : > { %6451 = vmatprep.subr.mxu1 %v6859_v57 }
0x108e   : > { %6452 = vmatpush3.msra.mxu1 %v3110_v10  ;;  %v5805_v10 = vld [vmem:[%s8367_s0 + $0x218] sm:$0xff] }
0x108f   : > { %6453 = vmatprep.subr.mxu1 %v6859_v57 }
0x1090   : > { %6454 = vmatpush3.msra.mxu1 %v3109_v11  ;;  %v5804_v11 = vld [vmem:[%s8367_s0 + $0x210] sm:$0xff] }
0x1091   : > { %6455 = vmatprep.subr.mxu1 %v6859_v57 }
0x1092   : > { %6456 = vmatpush3.msra.mxu1 %v3108_v12  ;;  %v5803_v12 = vld [vmem:[%s8367_s0 + $0x208] sm:$0xff] }
0x1093   : > { %6457 = vmatprep.subr.mxu1 %v6859_v57 }
0x1094   : > { %6458 = vmatpush3.msra.mxu1 %v3107_v13  ;;  %v5802_v13 = vld [vmem:[%s8367_s0 + $0x200] sm:$0xff] }
0x1095   : > { %6459 = vmatprep.subr.mxu1 %v6859_v57 }
0x1096   : > { %6460 = vmatpush3.msra.mxu1 %v3106_v14  ;;  %v5814_v14 = vld [vmem:[%s8371_s6 + $0x14] ss:$0 sm:$0xff] }
0x1097   : > { %6486 = vmatprep.subr.mxu1 %v6859_v57 }
0x1147   : > { %v2961_v46 = vpop.f32.mrf.mxu1 }
0x1148   : > { %v2965_v47 = vadd.f32 %v2961_v46, %v2476_v22 }
0x1149   : > { %v6433_v48 = vpop.f32.mrf.mxu1 }
0x114a   : > { %v7712_v49 = vadd.f32 %v2965_v47, %v7330_v50  ;;  %v2998_v50 = vld [vmem:[%s8322_s11 + $0x10] sm:$0xff] }
0x114b   : > { %6437 = vmatpush3.msra.mxu0 %v2998_v50  ;;  %v5797_v50 = vld [vmem:[%s8367_s0 + $0x190] sm:$0xff] }
0x114c   : > { %v2969_v51 = vsel %vm969_vm0, %v7712_v49, 0.0  ;;  %6438 = vmatprep.subr.mxu0 %v6859_v57 }
0x114d   : > { %2970 = vadd.xlane.f32.xlu0 %v2969_v51  ;;  %6439 = vmatpush3.msra.mxu0 %v2997_v59  ;;  %v5811_v59 = vld [vmem:[%s8367_s0 + $0x290] sm:$0xff] }
0x114e   : > { %6440 = vmatprep.subr.mxu0 %v6859_v57 }
0x114f   : > { %6441 = vmatpush3.msra.mxu0 %v2996_v60  ;;  %v5796_v60 = vld [vmem:[%s8367_s0 + $0x188] sm:$0xff] }
0x1150   : > { %6464 = vmatprep.subr.mxu0 %v6859_v57 }
0x11d6   : > { %v2971_v52 = vpop.xlane.xlu0 %2970 }
0x11d7   : > { %v2972_v53 = vmul.f32 0.03125, %v2971_v52 }
0x11d9   : > { %v2973_v54 = vsub.f32 %v7712_v49, %v2972_v53 }
0x11db   : > { %v2974_v55 = vmul.f32 %v2973_v54, %v2973_v54 }
0x11dd   : > { %v2975_v56 = vsel %vm969_vm0, %v2974_v55, 0.0 }
0x11de   : > { %2976 = vadd.xlane.f32.xlu1 %v2975_v56 }
0x1267   : > { %v2977_v61 = vpop.xlane.xlu1 %2976 }
0x1268   : > { %v2978_v62 = vmul.f32 0.03125, %v2977_v61  ;;  %v5810_v61 = vld [vmem:[%s8367_s0 + $0x288] sm:$0xff] }
0x126a   : > { %v2979_v63 = vadd.f32 1e-06, %v2978_v62  ;;  %v5795_v62 = vld [vmem:[%s8367_s0 + $0x180] sm:$0xff] }
0x126c   : > { %6765 = vrsqrt.f32 %v2979_v63  ;;  %v5809_v63 = vld [vmem:[%s8367_s0 + $0x280] sm:$0xff] }
0x1279   : > { %v6766_v0 = vpop.eup %6765 }
0x127a   : > { %v2981_v2 = vmul.f32 %v6766_v0, %v2973_v54 }
0x127c   : > { %v2988_v4 = vmul.f32 %v5782_v1, %v2981_v2 }
0x127e   : > { %v2995_v5 = vadd.f32 %v5783_v3, %v2988_v4  ;;  %v5792_v4 = vld [vmem:[%s8368_s1 + $0x1] ss:$0 sm:$0xff]  ;;  %s5605_s1 = scalar_lea.sflag [#allocation3], %s647_s2 }
0x1280   : > { %6443 = vmatmul.mubr.msk.f32.vlgmr.msra.gmra.mxu0 %vm1010_vm2, %v2995_v5 }
0x1281   : > { %6472 = vmatprep.mubr.msk.f32.mxu0 %vm6860_vm1, %v6859_v57  ;;  %6465 = vmatpush3.msra.mxu0 %v5798_v58 }
0x1282   : > { %6466 = vmatprep.subr.mxu0 %v6859_v57 }
0x1283   : > { %6467 = vmatpush3.msra.mxu0 %v5797_v50 }
0x1284   : > { %6468 = vmatprep.subr.mxu0 %v6859_v57 }
0x1285   : > { %6469 = vmatpush3.msra.mxu0 %v5796_v60 }
0x1286   : > { %6470 = vmatprep.subr.mxu0 %v6859_v57 }
0x1287   : > { %6471 = vmatpush3.msra.mxu0 %v5795_v62 }
0x1288   : > { %6475 = vmatprep.subr.mxu0 %v6859_v57 }
0x1340   : > { %v3076_v16 = vpop.f32.mrf.mxu0 }
0x1341   : > { %v3077_v17 = vadd.f32 %v5784_v15, %v3076_v16 }
0x1342   : > { %v6444_v18 = vpop.f32.mrf.mxu0 }
0x1343   : > { %v3081_v19 = vmul.f32 0.70710677, %v3077_v17  ;;  %v3080_v41 = vmul.f32 0.5, %v3077_v17 }
0x1345   : > { %vm3082_vm7 = vcmp.ge.f32.partialorder %v3081_v19, 0.0 }
0x1346   : > { %v3083_v21 = vsel %vm3082_vm7, 1.0, %v6861_v20 }
0x1347   : > { %v3084_v22 = vmul.f32 %v3083_v21, %v3081_v19 }
0x1349   : > { %v3085_v23 = vmul.f32 0.3275911, %v3084_v22  ;;  %v3097_v25 = vsub.f32 0.0, %v3084_v22 }
0x134b   : > { %v3086_v24 = vadd.f32 1.0, %v3085_v23  ;;  %v3098_v6 = vmul.f32 %v3097_v25, %v3084_v22  ;;  %v5800_v23 = vld [vmem:[%s8371_s6 + $0xc] ss:$0 sm:$0xff] }
0x134d   : > { %6767 = vrcp.f32 %v3086_v24  ;;  %v3099_v28 = vmul.f32 1.442695, %v3098_v6 }
0x134f   : > { %6769 = vpow2.f32 %v3099_v28 }
0x135a   : > { %v6768_v26 = vpop.eup %6767 }
0x135b   : > { %v3088_v27 = vmul.f32 1.0614054, %v6768_v26 }
0x135c   : > { %v6770_v37 = vpop.eup %6769 }
0x135d   : > { %v5786_v29 = vadd.f32 -1.4531521, %v3088_v27 }
0x135f   : > { %v3090_v30 = vmul.f32 %v6768_v26, %v5786_v29 }
0x1361   : > { %v3091_v31 = vadd.f32 1.4214138, %v3090_v30 }
0x1363   : > { %v3092_v32 = vmul.f32 %v6768_v26, %v3091_v31 }
0x1365   : > { %v5787_v33 = vadd.f32 -0.28449672, %v3092_v32 }
0x1367   : > { %v3094_v34 = vmul.f32 %v6768_v26, %v5787_v33 }
0x1369   : > { %v3095_v35 = vadd.f32 0.2548296, %v3094_v34 }
0x136b   : > { %v3096_v36 = vmul.f32 %v6768_v26, %v3095_v35  ;;  %v5820_v35 = vld [vmem:[%s8318_s7 + $0x20] sm:$0xff] }
0x136d   : > { %v3101_v38 = vmul.f32 %v6770_v37, %v3096_v36 }
0x136f   : > { %v3102_v39 = vsub.f32 1.0, %v3101_v38 }
0x1371   : > { %v3103_v40 = vmul.f32 %v3102_v39, %v3083_v21  ;;  %v5807_v21 = vld [vmem:[%s8371_s6 + $0x10] ss:$0 sm:$0xff]  ;;  %v5826_v39 = vld [vmem:[%s8367_s0 + $0x1b8] sm:$0xff] }
0x1373   : > { %v3104_v42 = vadd.f32 1.0, %v3103_v40  ;;  %v5825_v40 = vld [vmem:[%s8367_s0 + $0x1b0] sm:$0xff] }
0x1375   : > { %v3105_v43 = vmul.f32 %v3104_v42, %v3080_v41  ;;  %v5824_v41 = vld [vmem:[%s8367_s0 + $0x1a8] sm:$0xff]  ;;  %v5823_v42 = vld [vmem:[%s8367_s0 + $0x1a0] sm:$0xff] }
0x1377   : > { %6462 = vmatmul.mubr.msk.f32.vlgmr.msra.gmra.mxu1 %vm3121_vm8, %v3105_v43  ;;  %v5840_v43 = vld [vmem:[%s8367_s0 + $0x2b8] sm:$0xff] }
0x1378   : > { %6494 = vmatprep.mubr.msk.f32.mxu1 %vm6860_vm1, %v6859_v57 }
0x1437   : > { %v3191_v45 = vpop.f32.mrf.mxu1 }
0x1438   : > { %v3192_v46 = vadd.f32 %v5788_v44, %v3191_v45  ;;  %v5839_v44 = vld [vmem:[%s8367_s0 + $0x2b0] sm:$0xff]  ;;  %v5838_v45 = vld [vmem:[%s8367_s0 + $0x2a8] sm:$0xff] }
0x1439   : > { %v6463_v47 = vpop.f32.mrf.mxu1 }
0x143a   : > { %v7786_v48 = vadd.f32 %v3192_v46, %v7712_v49  ;;  %v5812_v49 = vld [vmem:[%s8367_s0 + $0x298] sm:$0xff]  ;;  %v5837_v46 = vld [vmem:[%s8367_s0 + $0x2a0] sm:$0xff] }
0x143b   : > { %6487 = vmatpush3.msra.mxu1 %v5812_v49  ;;  %v5833_v47 = vld [vmem:[%s8367_s0 + $0x238] sm:$0xff] }
0x143c   : > { %v3200_v51 = vsel %vm969_vm0, %v7786_v48, 0.0  ;;  %6488 = vmatprep.subr.mxu1 %v6859_v57 }
0x143d   : > { %3201 = vadd.xlane.f32.xlu0 %v3200_v51  ;;  %6489 = vmatpush3.msra.mxu1 %v5811_v59 }
0x143e   : > { %6490 = vmatprep.subr.mxu1 %v6859_v57 }
0x143f   : > { %6491 = vmatpush3.msra.mxu1 %v5810_v61  ;;  %v5835_v61 = vld [vmem:[%s8371_s6 + $0x11] ss:$0 sm:$0xff] }
0x1440   : > { %6492 = vmatprep.subr.mxu1 %v6859_v57 }
0x1441   : > { %6493 = vmatpush3.msra.mxu1 %v5809_v63  ;;  %v5828_v63 = vld [vmem:[%s8371_s6 + $0xd] ss:$0 sm:$0xff] }
0x1442   : > { %6502 = vmatprep.subr.mxu1 %v6859_v57 }
0x14c6   : > { %v3202_v52 = vpop.xlane.xlu0 %3201 }
0x14c7   : > { %v3203_v53 = vmul.f32 0.03125, %v3202_v52  ;;  %v5832_v52 = vld [vmem:[%s8367_s0 + $0x230] sm:$0xff] }
0x14c9   : > { %v3204_v54 = vsub.f32 %v7786_v48, %v3203_v53 }
0x14cb   : > { %v3205_v55 = vmul.f32 %v3204_v54, %v3204_v54 }
0x14cd   : > { %v3206_v56 = vsel %vm969_vm0, %v3205_v55, 0.0  ;;  %v5830_v55 = vld [vmem:[%s8367_s0 + $0x220] sm:$0xff] }
0x14ce   : > { %3207 = vadd.xlane.f32.xlu1 %v3206_v56 }
0x1557   : > { %v3208_v0 = vpop.xlane.xlu1 %3207 }
0x1558   : > { %v3209_v1 = vmul.f32 0.03125, %v3208_v0 }
0x155a   : > { %v3210_v2 = vadd.f32 1e-06, %v3209_v1  ;;  %v5842_v1 = vld [vmem:[%s8371_s6 + $0x15] ss:$0 sm:$0xff] }
0x155c   : > { %6771 = vrsqrt.f32 %v3210_v2 }
0x1569   : > { %v6772_v3 = vpop.eup %6771 }
0x156a   : > { %v3212_v5 = vmul.f32 %v6772_v3, %v3204_v54  ;;  %v5831_v54 = vld [vmem:[%s8367_s0 + $0x228] sm:$0xff] }
0x156c   : > { %v3219_v8 = vmul.f32 %v5792_v4, %v3212_v5 }
0x156e   : > { %v7830_v9 = vadd.f32 %v5793_v7, %v3219_v8 }
0x1570   : > { %6473 = vmatmul.mubr.msk.f32.vlgmr.msra.gmra.mxu0 %vm1010_vm2, %v7830_v9  ;;  %6495 = vmatmul.mubr.msk.f32.vlgmr.msra.gmra.mxu1 %vm1010_vm2, %v7830_v9 }
0x1571   : > { %6476 = vmatpush3.msra.mxu0 %v5805_v10  ;;  %6483 = vmatprep.mubr.msk.f32.mxu0 %vm6860_vm1, %v6859_v57 }
0x1572   : > { %6477 = vmatprep.subr.mxu0 %v6859_v57  ;;  %6504 = vmatprep.mubr.msk.f32.mxu1 %vm6860_vm1, %v6859_v57 }
0x1573   : > { %6478 = vmatpush3.msra.mxu0 %v5804_v11 }
0x1574   : > { %6479 = vmatprep.subr.mxu0 %v6859_v57 }
0x1575   : > { %6480 = vmatpush3.msra.mxu0 %v5803_v12 }
0x1576   : > { %6481 = vmatprep.subr.mxu0 %v6859_v57 }
0x1577   : > { %6482 = vmatpush3.msra.mxu0 %v5802_v13 }
0x1578   : > { %6484 = vmatmul.mubr.msk.f32.vlgmr.msra.gmra.mxu0 %vm1010_vm2, %v7830_v9  ;;  %6497 = vmatprep.subr.mxu0 %v6859_v57 }
0x1579   : > { %6499 = vmatprep.mubr.msk.f32.mxu0 %vm6860_vm1, %v6859_v57 }
0x1630   : > { %v3311_v15 = vpop.f32.mrf.mxu0  ;;  %v3477_v16 = vpop.f32.mrf.mxu1 }
0x1631   : > { %v3478_v17 = vadd.f32 %v5814_v14, %v3477_v16  ;;  %v3312_v6 = vadd.f32 %v5800_v23, %v3311_v15  ;;  %v5848_v16 = vld [vmem:[%s8318_s7 + $0x28] sm:$0xff] }
0x1632   : > { %v6474_v18 = vpop.f32.mrf.mxu0  ;;  %v6496_v19 = vpop.f32.mrf.mxu1  ;;  %v5851_v23 = vld [vmem:[%s8367_s0 + $0x1c8] sm:$0xff] }
0x1633   : > { %6503 = vmatpush3.msk.msra.mxu1 %vm1344_vm4, %v3478_v17 }
0x1634   : > { %6512 = vmatprep.subr.mxu1 %v6859_v57 }
0x1638   : > { %v3394_v22 = vpop.f32.mrf.mxu0 }
0x1639   : > { %v3395_v24 = vadd.f32 %v5807_v21, %v3394_v22  ;;  %v5853_v21 = vld [vmem:[%s8367_s0 + $0x1d8] sm:$0xff]  ;;  %v5852_v22 = vld [vmem:[%s8367_s0 + $0x1d0] sm:$0xff] }
0x163a   : > { %v6485_v25 = vpop.f32.mrf.mxu0 }
0x163b   : > { %6498 = vmatpush3.xpose.msk.msra.mxu0 %vm1250_vm3, %v3395_v24  ;;  %v5850_v24 = vld [vmem:[%s8367_s0 + $0x1c0] sm:$0xff]  ;;  %v5867_v25 = vld [vmem:[%s8367_s0 + $0x2d8] sm:$0xff] }
0x163c   : > { %6507 = vmatprep.subr.mxu0 %v6859_v57 }
0x163e   : > { %6500 = vmatmul.mubr.msk.f32.vlgmr.msra.gmra.mxu0 %vm1250_vm3, %v3312_v6  ;;  %v5866_v6 = vld [vmem:[%s8367_s0 + $0x2d0] sm:$0xff] }
0x163f   : > { %6509 = vmatprep.mubr.msk.f32.mxu0 %vm6860_vm1, %v6859_v57  ;;  %6508 = vmatpush3.msra.mxu0 %v5820_v35 }
0x1640   : > { %6523 = vmatprep.subr.mxu0 %v6859_v57 }
0x16fe   : > { %v3553_v26 = vpop.f32.mrf.mxu0 }
0x16ff   : > { %v3557_v27 = vmul.f32 0.35355338, %v3553_v26  ;;  %v5865_v26 = vld [vmem:[%s8367_s0 + $0x2c8] sm:$0xff] }
0x1700   : > { %v6501_v28 = vpop.f32.mrf.mxu0 }
0x1701   : > { %v3558_v29 = vsel %vm1328_vm5, %v3557_v27, -inf  ;;  %v5860_v28 = vld [vmem:[%s8367_s0 + $0x258] sm:$0xff] }
0x1702   : > { %3559 = vmax.xlane.f32.xlu0 %v3558_v29 }
0x178b   : > { %v3560_v30 = vpop.xlane.xlu0 %3559 }
0x178c   : > { %v3561_v31 = vsub.f32 %v3557_v27, %v3560_v30  ;;  %v5864_v27 = vld [vmem:[%s8367_s0 + $0x2c0] sm:$0xff]  ;;  %v5859_v30 = vld [vmem:[%s8367_s0 + $0x250] sm:$0xff] }
0x178e   : > { %v3562_v32 = vmul.f32 1.442695, %v3561_v31 }
0x1790   : > { %6773 = vpow2.f32 %v3562_v32  ;;  %v5858_v32 = vld [vmem:[%s8367_s0 + $0x248] sm:$0xff] }
0x179d   : > { %v6774_v33 = vpop.eup %6773 }
0x179e   : > { %v3564_v34 = vsel %vm1328_vm5, %v6774_v33, 0.0 }
0x179f   : > { %3565 = vadd.xlane.f32.xlu1 %v3564_v34 }
0x1828   : > { %v3566_v36 = vpop.xlane.xlu1 %3565 }
0x1829   : > { %6775 = vrcp.f32 %v3566_v36 }
0x1836   : > { %v6776_v37 = vpop.eup %6775 }
0x1837   : > { %v3568_v38 = vmul.f32 %v6776_v37, %v6774_v33  ;;  %v5857_v33 = vld [vmem:[%s8367_s0 + $0x240] sm:$0xff] }
0x1839   : > { %6505 = vmatmul.mubr.msk.f32.vlgmr.msra.gmra.mxu1 %vm1340_vm6, %v3568_v38  ;;  %v5822_v38 = vld [vmem:[%s8319_s8 + $0x1] ss:$0 sm:$0xff] }
0x183a   : > { %6513 = vmatpush3.msra.mxu1 %v5826_v39  ;;  %6520 = vmatprep.mubr.msk.f32.mxu1 %vm6860_vm1, %v6859_v57 }
0x183b   : > { %6514 = vmatprep.subr.mxu1 %v6859_v57 }
0x183c   : > { %6515 = vmatpush3.msra.mxu1 %v5825_v40 }
0x183d   : > { %6516 = vmatprep.subr.mxu1 %v6859_v57 }
0x183e   : > { %6517 = vmatpush3.msra.mxu1 %v5824_v41 }
0x183f   : > { %6518 = vmatprep.subr.mxu1 %v6859_v57 }
0x1840   : > { %6519 = vmatpush3.msra.mxu1 %v5823_v42 }
0x1841   : > { %6521 = vmatmul.mubr.msk.f32.vlgmr.msra.gmra.mxu1 %vm1010_vm2, %v7830_v9  ;;  %6534 = vmatprep.subr.mxu1 %v6859_v57 }
0x1842   : > { %6535 = vmatpush3.msra.mxu1 %v5840_v43  ;;  %6542 = vmatprep.mubr.msk.f32.mxu1 %vm6860_vm1, %v6859_v57  ;;  %v5862_v43 = vld [vmem:[%s8371_s6 + $0x12] ss:$0 sm:$0xff] }
0x1843   : > { %6536 = vmatprep.subr.mxu1 %v6859_v57 }
0x1844   : > { %6537 = vmatpush3.msra.mxu1 %v5839_v44 }
0x1845   : > { %6538 = vmatprep.subr.mxu1 %v6859_v57 }
0x1846   : > { %6539 = vmatpush3.msra.mxu1 %v5838_v45  ;;  %v5855_v45 = vld [vmem:[%s8371_s6 + $0xe] ss:$0 sm:$0xff] }
0x1847   : > { %6540 = vmatprep.subr.mxu1 %v6859_v57 }
0x1848   : > { %6541 = vmatpush3.msra.mxu1 %v5837_v46 }
0x1849   : > { %6543 = vmatmul.mubr.msk.f32.vlgmr.msra.gmra.mxu1 %vm1010_vm2, %v7830_v9  ;;  %6555 = vmatprep.subr.mxu1 %v6859_v57 }
0x184a   : > { %6557 = vmatprep.mubr.msk.f32.mxu1 %vm6860_vm1, %v6859_v57  ;;  %6556 = vmatpush3.msra.mxu1 %v5848_v16  ;;  %v5885_v16 = vld [vmem:[%s8367_s0 + $0x268] sm:$0xff] }
0x184b   : > { %6571 = vmatprep.subr.mxu1 %v6859_v57 }
0x18f9   : > { %v3641_v51 = vpop.f32.mrf.mxu1 }
0x18fa   : > { %6510 = vmatmul.mubr.msk.f32.vlgmr.msra.gmra.mxu0 %vm1250_vm3, %v3641_v51 }
0x18fb   : > { %6524 = vmatpush3.msra.mxu0 %v5833_v47  ;;  %v6506_v53 = vpop.f32.mrf.mxu1  ;;  %6531 = vmatprep.mubr.msk.f32.mxu0 %vm6860_vm1, %v6859_v57  ;;  %v5869_v47 = vld [vmem:[%s8371_s6 + $0x16] ss:$0 sm:$0xff] }
0x18fc   : > { %6525 = vmatprep.subr.mxu0 %v6859_v57 }
0x18fd   : > { %6526 = vmatpush3.msra.mxu0 %v5832_v52 }
0x18fe   : > { %6527 = vmatprep.subr.mxu0 %v6859_v57 }
0x18ff   : > { %6528 = vmatpush3.msra.mxu0 %v5831_v54 }
0x1900   : > { %6529 = vmatprep.subr.mxu0 %v6859_v57 }
0x1901   : > { %v3806_v56 = vpop.f32.mrf.mxu1  ;;  %6530 = vmatpush3.msra.mxu0 %v5830_v55 }
0x1902   : > { %6532 = vmatmul.mubr.msk.f32.vlgmr.msra.gmra.mxu0 %vm1010_vm2, %v7830_v9  ;;  %6545 = vmatprep.subr.mxu0 %v6859_v57  ;;  %v3807_v3 = vadd.f32 %v5828_v63, %v3806_v56 }
0x1903   : > { %v6522_v58 = vpop.f32.mrf.mxu1  ;;  %6547 = vmatprep.mubr.msk.f32.mxu0 %vm6860_vm1, %v6859_v57 }
0x1909   : > { %v3972_v49 = vpop.f32.mrf.mxu1 }
0x190a   : > { %v3973_v4 = vadd.f32 %v5842_v1, %v3972_v49 }
0x190b   : > { %v6544_v50 = vpop.f32.mrf.mxu1 }
0x19ba   : > { %v7948_v59 = vpop.f32.mrf.mxu0 }
0x19bb   : > { %v3726_v39 = vadd.f32 %v5822_v38, %v7948_v59 }
0x19bc   : > { %v6511_v60 = vpop.f32.mrf.mxu0 }
0x19c2   : > { %v3889_v62 = vpop.f32.mrf.mxu0 }
0x19c3   : > { %v3890_v0 = vadd.f32 %v5835_v61, %v3889_v62  ;;  %v5875_v62 = vld [vmem:[%s8318_s7 + $0x30] sm:$0xff] }
0x19c4   : > { %v6533_v2 = vpop.f32.mrf.mxu0 }
0x19c5   : > { %6546 = vmatpush3.xpose.msk.msra.mxu0 %vm1250_vm3, %v3890_v0  ;;  %v5880_v2 = vld [vmem:[%s8367_s0 + $0x1f8] sm:$0xff] }
0x19c6   : > { %6550 = vmatprep.subr.mxu0 %v6859_v57 }
0x19c8   : > { %6548 = vmatmul.mubr.msk.f32.vlgmr.msra.gmra.mxu0 %vm1250_vm3, %v3807_v3  ;;  %v5879_v3 = vld [vmem:[%s8367_s0 + $0x1f0] sm:$0xff] }
0x19c9   : > { %6551 = vmatpush3.msk.msra.mxu0 %vm1344_vm4, %v3973_v4  ;;  %6552 = vmatprep.mubr.msk.f32.mxu0 %vm6860_vm1, %v6859_v57  ;;  %v5878_v4 = vld [vmem:[%s8367_s0 + $0x1e8] sm:$0xff] }
0x19ca   : > { %6560 = vmatprep.subr.mxu0 %v6859_v57 }
0x1a88   : > { %v4048_v5 = vpop.f32.mrf.mxu0 }
0x1a89   : > { %v4052_v7 = vmul.f32 0.35355338, %v4048_v5  ;;  %v5877_v5 = vld [vmem:[%s8367_s0 + $0x1e0] sm:$0xff] }
0x1a8a   : > { %v6549_v8 = vpop.f32.mrf.mxu0 }
0x1a8b   : > { %v4053_v10 = vsel %vm1328_vm5, %v4052_v7, -inf  ;;  %v5893_v8 = vld [vmem:[%s8367_s0 + $0x2f0] sm:$0xff] }
0x1a8c   : > { %4054 = vmax.xlane.f32.xlu0 %v4053_v10  ;;  %v5892_v10 = vld [vmem:[%s8367_s0 + $0x2e8] sm:$0xff] }
0x1b15   : > { %v4055_v11 = vpop.xlane.xlu0 %4054 }
0x1b16   : > { %v4056_v12 = vsub.f32 %v4052_v7, %v4055_v11  ;;  %v5894_v7 = vld [vmem:[%s8367_s0 + $0x2f8] sm:$0xff]  ;;  %v5891_v11 = vld [vmem:[%s8367_s0 + $0x2e0] sm:$0xff] }
0x1b18   : > { %v4057_v13 = vmul.f32 1.442695, %v4056_v12  ;;  %v5887_v12 = vld [vmem:[%s8367_s0 + $0x278] sm:$0xff] }
0x1b1a   : > { %6777 = vpow2.f32 %v4057_v13 }
0x1b27   : > { %v6778_v14 = vpop.eup %6777 }
0x1b28   : > { %v4059_v15 = vsel %vm1328_vm5, %v6778_v14, 0.0 }
0x1b29   : > { %4060 = vadd.xlane.f32.xlu1 %v4059_v15 }
0x1bb2   : > { %v4061_v17 = vpop.xlane.xlu1 %4060 }
0x1bb3   : > { %6779 = vrcp.f32 %v4061_v17  ;;  %v5884_v17 = vld [vmem:[%s8367_s0 + $0x260] sm:$0xff] }
0x1bc0   : > { %v6780_v18 = vpop.eup %6779 }
0x1bc1   : > { %v4063_v19 = vmul.f32 %v6780_v18, %v6778_v14  ;;  %v5886_v14 = vld [vmem:[%s8367_s0 + $0x270] sm:$0xff]  ;;  %s8276_s0 = scalar_lea.hbm %s8373_s20, %s5930_s22 }
0x1bc3   : > { %6553 = vmatmul.mubr.msk.f32.vlgmr.msra.gmra.mxu0 %vm1340_vm6, %v4063_v19 }
0x1bc4   : > { %6561 = vmatpush3.msra.mxu0 %v5853_v21  ;;  %6568 = vmatprep.mubr.msk.f32.mxu0 %vm6860_vm1, %v6859_v57 }
0x1bc5   : > { %6562 = vmatprep.subr.mxu0 %v6859_v57 }
0x1bc6   : > { %6563 = vmatpush3.msra.mxu0 %v5852_v22 }
0x1bc7   : > { %6564 = vmatprep.subr.mxu0 %v6859_v57 }
0x1bc8   : > { %6565 = vmatpush3.msra.mxu0 %v5851_v23 }
0x1bc9   : > { %6566 = vmatprep.subr.mxu0 %v6859_v57 }
0x1bca   : > { %6567 = vmatpush3.msra.mxu0 %v5850_v24 }
0x1bcb   : > { %6569 = vmatmul.mubr.msk.f32.vlgmr.msra.gmra.mxu0 %vm1010_vm2, %v7830_v9  ;;  %6582 = vmatprep.subr.mxu0 %v6859_v57 }
0x1bcc   : > { %6583 = vmatpush3.msra.mxu0 %v5867_v25  ;;  %6590 = vmatprep.mubr.msk.f32.mxu0 %vm6860_vm1, %v6859_v57 }
0x1bcd   : > { %6584 = vmatprep.subr.mxu0 %v6859_v57 }
0x1bce   : > { %6585 = vmatpush3.msra.mxu0 %v5866_v6  ;;  %v5889_v6 = vld [vmem:[%s8371_s6 + $0x13] ss:$0 sm:$0xff] }
0x1bcf   : > { %6586 = vmatprep.subr.mxu0 %v6859_v57 }
0x1bd0   : > { %6587 = vmatpush3.msra.mxu0 %v5865_v26 }
0x1bd1   : > { %6588 = vmatprep.subr.mxu0 %v6859_v57 }
0x1bd2   : > { %6589 = vmatpush3.msra.mxu0 %v5864_v27 }
0x1bd3   : > { %6591 = vmatmul.mubr.msk.f32.vlgmr.msra.gmra.mxu0 %vm1010_vm2, %v7830_v9  ;;  %6603 = vmatprep.subr.mxu0 %v6859_v57 }
0x1bd4   : > { %6605 = vmatprep.mubr.msk.f32.mxu0 %vm6860_vm1, %v6859_v57  ;;  %6604 = vmatpush3.msra.mxu0 %v5875_v62 }
0x1bd5   : > { %6619 = vmatprep.subr.mxu0 %v6859_v57 }
0x1c83   : > { %v4136_v29 = vpop.f32.mrf.mxu0 }
0x1c84   : > { %6558 = vmatmul.mubr.msk.f32.vlgmr.msra.gmra.mxu1 %vm1250_vm3, %v4136_v29 }
0x1c85   : > { %6572 = vmatpush3.msra.mxu1 %v5860_v28  ;;  %v6554_v31 = vpop.f32.mrf.mxu0  ;;  %6579 = vmatprep.mubr.msk.f32.mxu1 %vm6860_vm1, %v6859_v57  ;;  %v5896_v28 = vld [vmem:[%s8371_s6 + $0x17] ss:$0 sm:$0xff] }
0x1c86   : > { %6573 = vmatprep.subr.mxu1 %v6859_v57 }
0x1c87   : > { %6574 = vmatpush3.msra.mxu1 %v5859_v30 }
0x1c88   : > { %6575 = vmatprep.subr.mxu1 %v6859_v57 }
0x1c89   : > { %6576 = vmatpush3.msra.mxu1 %v5858_v32 }
0x1c8a   : > { %6577 = vmatprep.subr.mxu1 %v6859_v57 }
0x1c8b   : > { %v4295_v34 = vpop.f32.mrf.mxu0  ;;  %6578 = vmatpush3.msra.mxu1 %v5857_v33 }
0x1c8c   : > { %6580 = vmatmul.mubr.msk.f32.vlgmr.msra.gmra.mxu1 %vm1010_vm2, %v7830_v9  ;;  %6593 = vmatprep.subr.mxu1 %v6859_v57  ;;  %v4296_v52 = vadd.f32 %v5855_v45, %v4295_v34 }
0x1c8d   : > { %v6570_v35 = vpop.f32.mrf.mxu0  ;;  %6595 = vmatprep.mubr.msk.f32.mxu1 %vm6860_vm1, %v6859_v57 }
0x1c93   : > { %v4461_v36 = vpop.f32.mrf.mxu0 }
0x1c94   : > { %v4462_v53 = vadd.f32 %v5869_v47, %v4461_v36 }
0x1c95   : > { %v6592_v37 = vpop.f32.mrf.mxu0 }
0x1d44   : > { %v4211_v40 = vpop.f32.mrf.mxu1 }
0x1d45   : > { %v8042_v41 = vadd.f32 %v4211_v40, %v3726_v39 }
0x1d46   : > { %v6559_v42 = vpop.f32.mrf.mxu1 }
0x1d4c   : > { %v4378_v44 = vpop.f32.mrf.mxu1 }
0x1d4d   : > { %v4379_v46 = vadd.f32 %v5862_v43, %v4378_v44 }
0x1d4e   : > { %v6581_v51 = vpop.f32.mrf.mxu1 }
0x1d4f   : > { %6594 = vmatpush3.xpose.msk.msra.mxu1 %vm1250_vm3, %v4379_v46 }
0x1d50   : > { %6598 = vmatprep.subr.mxu1 %v6859_v57 }
0x1d52   : > { %6596 = vmatmul.mubr.msk.f32.vlgmr.msra.gmra.mxu1 %vm1250_vm3, %v4296_v52 }
0x1d53   : > { %6599 = vmatpush3.msk.msra.mxu1 %vm1344_vm4, %v4462_v53  ;;  %6600 = vmatprep.mubr.msk.f32.mxu1 %vm6860_vm1, %v6859_v57 }
0x1d54   : > { %6608 = vmatprep.subr.mxu1 %v6859_v57 }
0x1e12   : > { %v4537_v54 = vpop.f32.mrf.mxu1 }
0x1e13   : > { %v4541_v55 = vmul.f32 0.35355338, %v4537_v54 }
0x1e14   : > { %v6597_v56 = vpop.f32.mrf.mxu1 }
0x1e15   : > { %v4542_v58 = vsel %vm1328_vm5, %v4541_v55, -inf }
0x1e16   : > { %4543 = vmax.xlane.f32.xlu0 %v4542_v58 }
0x1e9f   : > { %v4544_v49 = vpop.xlane.xlu0 %4543 }
0x1ea0   : > { %v4545_v50 = vsub.f32 %v4541_v55, %v4544_v49 }
0x1ea2   : > { %v4546_v59 = vmul.f32 1.442695, %v4545_v50 }
0x1ea4   : > { %6781 = vpow2.f32 %v4546_v59  ;;  %v5911_v59 = vld [vmem:[%s8322_s11 + $0x38] sm:$0xff] }
0x1eb1   : > { %v6782_v60 = vpop.eup %6781 }
0x1eb2   : > { %v4548_v61 = vsel %vm1328_vm5, %v6782_v60, 0.0 }
0x1eb3   : > { %4549 = vadd.xlane.f32.xlu1 %v4548_v61  ;;  %v5908_v61 = vld [vmem:[%s8322_s11 + $0x20] sm:$0xff] }
0x1f3c   : > { %v4550_v63 = vpop.xlane.xlu1 %4549 }
0x1f3d   : > { %6783 = vrcp.f32 %v4550_v63 }
0x1f4a   : > { %v6784_v0 = vpop.eup %6783 }
0x1f4b   : > { %v4552_v1 = vmul.f32 %v6784_v0, %v6782_v60  ;;  %v5909_v60 = vld [vmem:[%s8322_s11 + $0x28] sm:$0xff] }
0x1f4d   : > { %6601 = vmatmul.mubr.msk.f32.vlgmr.msra.gmra.mxu1 %vm1340_vm6, %v4552_v1 }
0x1f4e   : > { %6609 = vmatpush3.msra.mxu1 %v5880_v2  ;;  %6616 = vmatprep.mubr.msk.f32.mxu1 %vm6860_vm1, %v6859_v57  ;;  %v5906_v2 = vld [vmem:[%s8320_s9 + $0x1] ss:$0 sm:$0xff] }
0x1f4f   : > { %6610 = vmatprep.subr.mxu1 %v6859_v57 }
0x1f50   : > { %6611 = vmatpush3.msra.mxu1 %v5879_v3 }
0x1f51   : > { %6612 = vmatprep.subr.mxu1 %v6859_v57 }
0x1f52   : > { %6613 = vmatpush3.msra.mxu1 %v5878_v4  ;;  %v5907_v4 = vld [vmem:[%s8321_s10 + $0x1] ss:$0 sm:$0xff] }
0x1f53   : > { %6614 = vmatprep.subr.mxu1 %v6859_v57 }
0x1f54   : > { %6615 = vmatpush3.msra.mxu1 %v5877_v5 }
0x1f55   : > { %6617 = vmatmul.mubr.msk.f32.vlgmr.msra.gmra.mxu1 %vm1010_vm2, %v7830_v9  ;;  %6630 = vmatprep.subr.mxu1 %v6859_v57 }
0x1f56   : > { %6631 = vmatpush3.msra.mxu1 %v5894_v7  ;;  %6638 = vmatprep.mubr.msk.f32.mxu1 %vm6860_vm1, %v6859_v57 }
0x1f57   : > { %6632 = vmatprep.subr.mxu1 %v6859_v57 }
0x1f58   : > { %6633 = vmatpush3.msra.mxu1 %v5893_v8  ;;  %v5924_v8 = vld [vmem:[%s8324_s13 + $0x78] sm:$0xff] }
0x1f59   : > { %6634 = vmatprep.subr.mxu1 %v6859_v57 }
0x1f5a   : > { %6635 = vmatpush3.msra.mxu1 %v5892_v10  ;;  %v5923_v10 = vld [vmem:[%s8324_s13 + $0x70] sm:$0xff] }
0x1f5b   : > { %6636 = vmatprep.subr.mxu1 %v6859_v57 }
0x1f5c   : > { %6637 = vmatpush3.msra.mxu1 %v5891_v11  ;;  %v5922_v11 = vld [vmem:[%s8324_s13 + $0x68] sm:$0xff] }
0x1f5d   : > { %6639 = vmatmul.mubr.msk.f32.vlgmr.msra.gmra.mxu1 %vm1010_vm2, %v7830_v9  ;;  %6651 = vmatprep.subr.mxu1 %v6859_v57 }
0x1f5e   : > { %6653 = vmatprep.mubr.msk.f32.mxu1 %vm6860_vm1, %v6859_v57 }
0x200d   : > { %v4625_v13 = vpop.f32.mrf.mxu1 }
0x200e   : > { %6606 = vmatmul.mubr.msk.f32.vlgmr.msra.gmra.mxu0 %vm1250_vm3, %v4625_v13  ;;  %v5920_v13 = vld [vmem:[%s8324_s13 + $0x58] sm:$0xff] }
0x200f   : > { %6620 = vmatpush3.msra.mxu0 %v5887_v12  ;;  %v6602_v15 = vpop.f32.mrf.mxu1  ;;  %6627 = vmatprep.mubr.msk.f32.mxu0 %vm6860_vm1, %v6859_v57  ;;  %v5921_v12 = vld [vmem:[%s8324_s13 + $0x60] sm:$0xff] }
0x2010   : > { %6621 = vmatprep.subr.mxu0 %v6859_v57  ;;  %v5918_v15 = vld [vmem:[%s8324_s13 + $0x48] sm:$0xff] }
0x2011   : > { %6622 = vmatpush3.msra.mxu0 %v5886_v14  ;;  %v5919_v14 = vld [vmem:[%s8324_s13 + $0x50] sm:$0xff] }
0x2012   : > { %6623 = vmatprep.subr.mxu0 %v6859_v57 }
0x2013   : > { %6624 = vmatpush3.msra.mxu0 %v5885_v16  ;;  %v5917_v16 = vld [vmem:[%s8324_s13 + $0x40] sm:$0xff] }
0x2014   : > { %6625 = vmatprep.subr.mxu0 %v6859_v57 }
0x2015   : > { %v4784_v18 = vpop.f32.mrf.mxu1  ;;  %6626 = vmatpush3.msra.mxu0 %v5884_v17  ;;  %v5913_v17 = vld [vmem:[%s8323_s12 + $0x1] ss:$0 sm:$0xff] }
0x2016   : > { %6628 = vmatmul.mubr.msk.f32.vlgmr.msra.gmra.mxu0 %vm1010_vm2, %v7830_v9  ;;  %6641 = vmatprep.subr.mxu0 %v6859_v57  ;;  %v5882_v9 = vld [vmem:[%s8371_s6 + $0xf] ss:$0 sm:$0xff]  ;;  %s6797_s6 = scalar_lea.vmem %s5618_s28, 16 }
0x2017   : > { %v6618_v19 = vpop.f32.mrf.mxu1  ;;  %6643 = vmatprep.mubr.msk.f32.mxu0 %vm6860_vm1, %v6859_v57  ;;  %v4785_v30 = vadd.f32 %v5882_v9, %v4784_v18  ;;  %p6798_p11 = scmp.ne.s32.totalorder %s5618_s28, %s6797_s6  ;;  %p6805_p1 = scmp.lt.s32.totalorder %s6803_s4, %s6797_s6 }
0x2019   : > { %p6799_p12 = pnand %p6798_p11, %p7011_p5  ;;  %p6806_p2 = por %p6805_p1, %p6804_p0 }
0x201b   : > { %p6800_p13 = pneg %p6799_p12 }
0x201d   : > { %v4950_v21 = vpop.f32.mrf.mxu1  ;;  %p6807_p3 = pnand %p6806_p2, %p6800_p13 }
0x201e   : > { %v4951_v31 = vadd.f32 %v5896_v28, %v4950_v21 }
0x201f   : > { %v6640_v22 = vpop.f32.mrf.mxu1 }
0x20ce   : > { %v4700_v23 = vpop.f32.mrf.mxu0 }
0x20cf   : > { %v4704_v24 = vadd.f32 %v4700_v23, %v8042_v41  ;;  %v5902_v41 = vld [vmem:[%s8318_s7 + $0x38] sm:$0xff] }
0x20d0   : > { %v6607_v25 = vpop.f32.mrf.mxu0  ;;  %6652 = vmatpush3.msra.mxu1 %v5902_v41 }
0x20d1   : > { %6667 = vmatprep.subr.mxu1 %v6859_v57 }
0x20d6   : > { %v4867_v26 = vpop.f32.mrf.mxu0 }
0x20d7   : > { %v4868_v27 = vadd.f32 %v5889_v6, %v4867_v26 }
0x20d8   : > { %v6629_v29 = vpop.f32.mrf.mxu0 }
0x20d9   : > { %6642 = vmatpush3.xpose.msk.msra.mxu0 %vm1250_vm3, %v4868_v27 }
0x20da   : > { %6646 = vmatprep.subr.mxu0 %v6859_v57 }
0x20dc   : > { %6644 = vmatmul.mubr.msk.f32.vlgmr.msra.gmra.mxu0 %vm1250_vm3, %v4785_v30 }
0x20dd   : > { %6647 = vmatpush3.msk.msra.mxu0 %vm1344_vm4, %v4951_v31  ;;  %6648 = vmatprep.mubr.msk.f32.mxu0 %vm6860_vm1, %v6859_v57 }
0x20de   : > { %6656 = vmatprep.subr.mxu0 %v6859_v57 }
0x219c   : > { %v5026_v32 = vpop.f32.mrf.mxu0 }
0x219d   : > { %v5030_v33 = vmul.f32 0.35355338, %v5026_v32 }
0x219e   : > { %v6645_v34 = vpop.f32.mrf.mxu0 }
0x219f   : > { %v5031_v35 = vsel %vm1328_vm5, %v5030_v33, -inf }
0x21a0   : > { %5032 = vmax.xlane.f32.xlu0 %v5031_v35 }
0x2229   : > { %v5033_v36 = vpop.xlane.xlu0 %5032 }
0x222a   : > { %v5034_v37 = vsub.f32 %v5030_v33, %v5033_v36 }
0x222c   : > { %v5035_v38 = vmul.f32 1.442695, %v5034_v37 }
0x222e   : > { %6785 = vpow2.f32 %v5035_v38 }
0x223b   : > { %v6786_v39 = vpop.eup %6785 }
0x223c   : > { %v5037_v40 = vsel %vm1328_vm5, %v6786_v39, 0.0 }
0x223d   : > { %5038 = vadd.xlane.f32.xlu1 %v5037_v40 }
0x22c6   : > { %v5039_v42 = vpop.xlane.xlu1 %5038 }
0x22c7   : > { %6787 = vrcp.f32 %v5039_v42 }
0x22d4   : > { %v6788_v43 = vpop.eup %6787 }
0x22d5   : > { %v5041_v44 = vmul.f32 %v6788_v43, %v6786_v39 }
0x22d7   : > { %6649 = vmatmul.mubr.msk.f32.vlgmr.msra.gmra.mxu0 %vm1340_vm6, %v5041_v44  ;;  %v5926_v44 = vld [vmem:[%s8325_s14 + $0x1] ss:$0 sm:$0xff] }
0x22d8   : > { %6664 = vmatprep.mubr.msk.f32.mxu0 %vm6860_vm1, %v6859_v57  ;;  %6657 = vmatpush3.msra.mxu0 %v5911_v59  ;;  %v5449_v59 = vld [vmem:[%s8328_s17 + $0x10] sm:$0xff] }
0x22d9   : > { %6658 = vmatprep.subr.mxu0 %v6859_v57 }
0x2397   : > { %v5114_v45 = vpop.f32.mrf.mxu0 }
0x2398   : > { %6654 = vmatmul.mubr.msk.f32.vlgmr.msra.gmra.mxu1 %vm1250_vm3, %v5114_v45 }
0x2399   : > { %v6650_v46 = vpop.f32.mrf.mxu0  ;;  %6683 = vmatprep.mubr.msk.f32.mxu1 %vm6860_vm1, %v6859_v57  ;;  %6668 = vmatpush3.msra.mxu1 %v5924_v8  ;;  %v5451_v8 = vld [vmem:[%s8329_s18] sm:$0x1] }
0x239a   : > { %6669 = vmatprep.subr.mxu1 %v6859_v57 }
0x239b   : > { %6670 = vmatpush3.msra.mxu1 %v5923_v10 }
0x239c   : > { %6671 = vmatprep.subr.mxu1 %v6859_v57 }
0x239d   : > { %6672 = vmatpush3.msra.mxu1 %v5922_v11 }
0x239e   : > { %6673 = vmatprep.subr.mxu1 %v6859_v57 }
0x239f   : > { %6674 = vmatpush3.msra.mxu1 %v5921_v12 }
0x23a0   : > { %6675 = vmatprep.subr.mxu1 %v6859_v57 }
0x23a1   : > { %6676 = vmatpush3.msra.mxu1 %v5920_v13 }
0x23a2   : > { %6677 = vmatprep.subr.mxu1 %v6859_v57 }
0x23a3   : > { %6678 = vmatpush3.msra.mxu1 %v5919_v14 }
0x23a4   : > { %6679 = vmatprep.subr.mxu1 %v6859_v57 }
0x23a5   : > { %6680 = vmatpush3.msra.mxu1 %v5918_v15 }
0x23a6   : > { %6681 = vmatprep.subr.mxu1 %v6859_v57 }
0x23a7   : > { %6682 = vmatpush3.msra.mxu1 %v5917_v16 }
0x2458   : > { %v5189_v47 = vpop.f32.mrf.mxu1 }
0x2459   : > { %v5193_v51 = vadd.f32 %v5189_v47, %v4704_v24 }
0x245a   : > { %v6655_v52 = vpop.f32.mrf.mxu1 }
0x245b   : > { %v8162_v53 = vadd.f32 %v5193_v51, %v7786_v48  ;;  %v5910_v48 = vld [vmem:[%s8322_s11 + $0x30] sm:$0xff] }
0x245c   : > { %6659 = vmatpush3.msra.mxu0 %v5910_v48  ;;  %v5447_v48 = vld [vmem:[%s8328_s17] sm:$0xff] }
0x245d   : > { %v5199_v54 = vsel %vm969_vm0, %v8162_v53, 0.0  ;;  %6660 = vmatprep.subr.mxu0 %v6859_v57 }
0x245e   : > { %5200 = vadd.xlane.f32.xlu0 %v5199_v54  ;;  %6661 = vmatpush3.msra.mxu0 %v5909_v60 }
0x245f   : > { %6662 = vmatprep.subr.mxu0 %v6859_v57 }
0x2460   : > { %6663 = vmatpush3.msra.mxu0 %v5908_v61 }
0x2461   : > { %6686 = vmatprep.subr.mxu0 %v6859_v57 }
0x24e7   : > { %v5201_v55 = vpop.xlane.xlu0 %5200 }
0x24e8   : > { %v5202_v56 = vmul.f32 0.03125, %v5201_v55 }
0x24ea   : > { %v5203_v58 = vsub.f32 %v8162_v53, %v5202_v56 }
0x24ec   : > { %v5204_v49 = vmul.f32 %v5203_v58, %v5203_v58 }
0x24ee   : > { %v5205_v50 = vsel %vm969_vm0, %v5204_v49, 0.0 }
0x24ef   : > { %5206 = vadd.xlane.f32.xlu1 %v5205_v50  ;;  %v5450_v50 = vld [vmem:[%s8328_s17 + $0x18] sm:$0xff] }
0x2578   : > { %v5207_v62 = vpop.xlane.xlu1 %5206 }
0x2579   : > { %v5208_v63 = vmul.f32 0.03125, %v5207_v62 }
0x257b   : > { %v5209_v0 = vadd.f32 1e-06, %v5208_v63 }
0x257d   : > { %6789 = vrsqrt.f32 %v5209_v0  ;;  %v5429_v0 = vld [vmem:[%s8326_s15] sm:$0x1] }
0x258a   : > { %v6790_v1 = vpop.eup %6789 }
0x258b   : > { %v5211_v3 = vmul.f32 %v6790_v1, %v5203_v58 }
0x258d   : > { %v5218_v5 = vmul.f32 %v5906_v2, %v5211_v3  ;;  %v5430_v2 = vld [vmem:[%s8327_s16] sm:$0x1] }
0x258f   : > { %v5225_v7 = vadd.f32 %v5907_v4, %v5218_v5  ;;  %v5526_v5 = vld [vmem:[%s8330_s19 + $0x8] sm:$0xff] }
0x2591   : > { %6665 = vmatmul.mubr.msk.f32.vlgmr.msra.gmra.mxu0 %vm1010_vm2, %v5225_v7  ;;  %v5525_v7 = vld [vmem:[%s8330_s19] sm:$0xff] }
0x2592   : > { %6694 = vmatprep.mubr.msk.f32.mxu0 %vm6860_vm1, %v6859_v57  ;;  %6687 = vmatpush3.msra.mxu0 %v5450_v50 }
0x2593   : > { %6688 = vmatprep.subr.mxu0 %v6859_v57 }
0x2594   : > { %6689 = vmatpush3.msra.mxu0 %v5449_v59 }
0x2595   : > { %6690 = vmatprep.subr.mxu0 %v6859_v57 }
0x2651   : > { %v5308_v18 = vpop.f32.mrf.mxu0 }
0x2652   : > { %v5309_v19 = vadd.f32 %v5913_v17, %v5308_v18 }
0x2653   : > { %v6666_v21 = vpop.f32.mrf.mxu0 }
0x2654   : > { %v5313_v22 = vmul.f32 0.70710677, %v5309_v19  ;;  %v5312_v41 = vmul.f32 0.5, %v5309_v19 }
0x2656   : > { %vm5314_vm9 = vcmp.ge.f32.partialorder %v5313_v22, 0.0 }
0x2657   : > { %v5315_v23 = vsel %vm5314_vm9, 1.0, %v6861_v20 }
0x2658   : > { %v5316_v24 = vmul.f32 %v5315_v23, %v5313_v22 }
0x265a   : > { %v5317_v25 = vmul.f32 0.3275911, %v5316_v24  ;;  %v5329_v26 = vsub.f32 0.0, %v5316_v24 }
0x265c   : > { %v5318_v6 = vadd.f32 1.0, %v5317_v25  ;;  %v5330_v9 = vmul.f32 %v5329_v26, %v5316_v24 }
0x265e   : > { %6791 = vrcp.f32 %v5318_v6  ;;  %v5331_v29 = vmul.f32 1.442695, %v5330_v9 }
0x2660   : > { %6793 = vpow2.f32 %v5331_v29 }
0x266b   : > { %v6792_v27 = vpop.eup %6791 }
0x266c   : > { %v5320_v28 = vmul.f32 1.0614054, %v6792_v27 }
0x266d   : > { %v6794_v38 = vpop.eup %6793 }
0x266e   : > { %v5915_v30 = vadd.f32 -1.4531521, %v5320_v28 }
0x2670   : > { %v5322_v31 = vmul.f32 %v6792_v27, %v5915_v30 }
0x2672   : > { %v5323_v32 = vadd.f32 1.4214138, %v5322_v31 }
0x2674   : > { %v5324_v33 = vmul.f32 %v6792_v27, %v5323_v32 }
0x2676   : > { %v5916_v34 = vadd.f32 -0.28449672, %v5324_v33 }
0x2678   : > { %v5326_v35 = vmul.f32 %v6792_v27, %v5916_v34 }
0x267a   : > { %v5327_v36 = vadd.f32 0.2548296, %v5326_v35 }
0x267c   : > { %v5328_v37 = vmul.f32 %v6792_v27, %v5327_v36 }
0x267e   : > { %v5333_v20 = vmul.f32 %v6794_v38, %v5328_v37 }
0x2680   : > { %v5334_v39 = vsub.f32 1.0, %v5333_v20 }
0x2682   : > { %v5335_v40 = vmul.f32 %v5334_v39, %v5315_v23 }
0x2684   : > { %v5336_v42 = vadd.f32 1.0, %v5335_v40 }
0x2686   : > { %v5337_v43 = vmul.f32 %v5336_v42, %v5312_v41 }
0x2688   : > { %6684 = vmatmul.mubr.msk.f32.vlgmr.msra.gmra.mxu1 %vm3121_vm8, %v5337_v43 }
0x2748   : > { %v5424_v45 = vpop.f32.mrf.mxu1 }
0x2749   : > { %v5425_v46 = vadd.f32 %v5926_v44, %v5424_v45 }
0x274a   : > { %v6685_v47 = vpop.f32.mrf.mxu1 }
0x274b   : > { %v5428_v51 = vadd.f32 %v5425_v46, %v8162_v53  ;;  %v5448_v53 = vld [vmem:[%s8328_s17 + $0x8] sm:$0xff] }
0x274c   : > { %6691 = vmatpush3.msra.mxu0 %v5448_v53 }
0x274d   : > { %v5432_v52 = vsel %vm5431_vm10, %v5428_v51, 0.0  ;;  %6692 = vmatprep.subr.mxu0 %v6859_v57 }
0x274e   : > { %5433 = vadd.xlane.f32.xlu0 %v5432_v52  ;;  %6693 = vmatpush3.msra.mxu0 %v5447_v48 }
0x274f   : > { %6697 = vmatprep.subr.mxu0 %v6859_v57 }
0x27d7   : > { %v5434_v54 = vpop.xlane.xlu0 %5433 }
0x27d8   : > { %v5435_v55 = vmul.f32 0.03125, %v5434_v54 }
0x27da   : > { %v5436_v56 = vsub.f32 %v5428_v51, %v5435_v55 }
0x27dc   : > { %v5437_v58 = vmul.f32 %v5436_v56, %v5436_v56 }
0x27de   : > { %v5438_v49 = vsel %vm5431_vm10, %v5437_v58, 0.0 }
0x27df   : > { %5439 = vadd.xlane.f32.xlu1 %v5438_v49 }
0x2868   : > { %v5440_v60 = vpop.xlane.xlu1 %5439 }
0x2869   : > { %v5441_v61 = vmul.f32 0.03125, %v5440_v60 }
0x286b   : > { %v5442_v62 = vadd.f32 1e-06, %v5441_v61 }
0x286d   : > { %6795 = vrsqrt.f32 %v5442_v62 }
0x287a   : > { %v6796_v63 = vpop.eup %6795 }
0x287b   : > { %v5444_v1 = vmul.f32 %v6796_v63, %v5436_v56 }
0x287d   : > { %v5445_v3 = vmul.f32 %v5444_v1, %v5429_v0 }
0x287f   : > { %v5446_v4 = vadd.f32 %v5445_v3, %v5430_v2 }
0x2881   : > { %6695 = vmatmul.mubr.msk.f32.vlgmr.msra.gmra.mxu0 %vm1010_vm2, %v5446_v4 }
0x2882   : > { %6701 = vmatprep.mubr.msk.f32.mxu0 %vm6860_vm1, %v6859_v57  ;;  %6698 = vmatpush3.msra.mxu0 %v5526_v5 }
0x2883   : > { %6699 = vmatprep.subr.mxu0 %v6859_v57  ;;  %v5527_v57 = vld [vmem:[%s8372_s21] sm:$0x1] }
0x2884   : > { %6700 = vmatpush3.msra.mxu0 %v5525_v7 }
0x2941   : > { %v5521_v10 = vpop.f32.mrf.mxu0 }
0x2942   : > { %v5522_v11 = vadd.f32 %v5521_v10, %v5451_v8 }
0x2943   : > { %v6696_v12 = vpop.f32.mrf.mxu0 }
0x2944   : > { %6702 = vmatmul.mubr.msk.f32.vlgmr.msra.gmra.mxu0 %vm5528_vm11, %v5522_v11 }
0x2a04   : > { %v5598_v13 = vpop.f32.mrf.mxu0 }
0x2a05   : > { %v5599_v14 = vadd.f32 %v5598_v13, %v5527_v57 }
0x2a06   : > { %v6703_v15 = vpop.f32.mrf.mxu0 }
0x2a07   : > { %5603 = vst.msk [vmem:[%s648_s30] sm:$0x1] %vm5602_vm12, %v5599_v14 }
0x2a08   : > { %6810 = shalt.err (!%p6807_p3)
}
0x2a09   : > { %s6811_s21 = scalar_lea.hbm %s8276_s0, 16  ;;  %s6815_s30 = scalar_lea.hbm %s8373_s20, 32 }
0x2a0a   : > { %p6812_p4 = scmp.ne.s32.totalorder %s8276_s0, %s6811_s21  ;;  %p6816_p9 = scmp.lt.s32.totalorder %s8276_s0, %s8373_s20 }
0x2a0b   : > { %p6817_p10 = scmp.lt.s32.totalorder %s6815_s30, %s6811_s21 }
0x2a0c   : > { %p6813_p7 = pnand %p6812_p4, %p7011_p5 }
0x2a0d   : > { %p6818_p11 = por %p6817_p10, %p6816_p9 }
0x2a0e   : > { %p6814_p8 = pneg %p6813_p7 }
0x2a10   : > { %p6819_p12 = pnand %p6818_p11, %p6814_p8 }
0x2a12   : > { %6822 = shalt.err (!%p6819_p12)
}
0x2a13   : > { %6705 = dma.vmem_to_hbm [thread:$0]  (%p7011_p5), %s5618_s28, 16, %s8276_s0, %s5605_s1  }
0x2a14 PF: > { %s8374_s6 = sld [smem:[#allocation7_spill]] }
0x2a15   : > { %s8375_s3 = sld [smem:[#allocation5_spill]] }
0x2a1a   : > { %p6711_p13 = scmp.ge.s32.totalorder %s8374_s6, 2 }
0x2a1b   : > { %s5629_s4 = sand.u32 1, %s8375_s3  }
0x2a1c   : > { %p6708_p0 = pnand %p6711_p13, %p7015_p6  ;;  %s5630_s2 = scalar_lea.sflag [#allocation3], %s5629_s4 }
0x2a1e   : > { %p6709_p1 = pneg %p6708_p0 }
0x2a20   : > { %6840 = dma.done.wait (%p6709_p1), %s5630_s2, 16  }
0x2a21   : > { %6842 = vsyncadd (%p6709_p1), %s5630_s2, 4294967280  ;;  %s8377_s27 = sld [smem:[#allocation8_spill]]  ;;  %s8380_s2 = smov %s6849_s25 }
0x2a22   : > { %s8378_s21 = sld [smem:[#allocation6_spill]] }
0x2a23   : > { %s8379_s26 = sld [smem:[#allocation9_spill]] }
0x2a27   : > { %p31_p2 = scmp.ge.s32.totalorder %s8377_s27, 4  }
0x2a28   : > { %s8381_s25 = smov %s8378_s21 }
0x2a29   :  { %33 = sbr.rel (!%p31_p2) target bundleno = 13 (0xd), region = 201 }
0x2a2e   :  { %5634 = vsyncpa [#allocation3], 1 }
0x2a2f   :  { %5636 = vsyncpa [#allocation3 + $0x1], 1 }

</bundles_post_ra>
